<compile_context>
chip_gen: v6e
topology: v6e:2x2x1
jax: 0.10.0
libtpu: 0.0.40
codegen_flags: <defaults>
</compile_context>

<pallas_src>
import jax
import jax.numpy as jnp
from jax import lax
from jax.experimental import pallas as pl
from jax.experimental.pallas import tpu as pltpu

POOL_SIZES = (5, 9, 13)                      # nn.MaxPool2d(k, 1, k // 2)
_DEFAULT_VMEM_BUDGET = 48 * 1024 * 1024      # safe on v7x (64 MiB VMEM / TC)


# ---------------------------------------------------------------------------
# In-kernel helpers.  Compute layout is (H, W, C): H leading, W on sublanes,
# C on lanes.  Shift distances are static Python ints.
# ---------------------------------------------------------------------------

def _hmax_valid_into(s_ref, x_ref, d):
    """s[h] = max(s[h], x[0, h + d]) for rows with h + d in range ("same" pad).

    Ranged read-modify-write on the scratch ref: no full-tile copies.
    """
    H = s_ref.shape[0]
    if abs(d) >= H:
        return
    if d > 0:
        n = H - d
        s_ref[pl.ds(0, n)] = jnp.maximum(s_ref[pl.ds(0, n)],
                                         x_ref[0, pl.ds(d, n)])
    else:
        a = -d
        n = H - a
        s_ref[pl.ds(a, n)] = jnp.maximum(s_ref[pl.ds(a, n)],
                                         x_ref[0, pl.ds(0, n)])


def _hshift_clamp_out(o_ref, slab_idx, k, src, d, *, init):
    """out[slab k][h] (=|max=) src[clamp(h + d, 0, H - 1)]  (replicate pad).

    `src` is an (H, W, C) value; writes go straight into the output block via
    ranged row windows (early stores, no intermediate full-tile buffers).
    """
    H = src.shape[0]

    def comb(r0, n, val):
        idx = slab_idx(k, r0, n)
        if init:
            o_ref[idx] = val
        else:
            o_ref[idx] = jnp.maximum(o_ref[idx], val)

    if d == 0:
        comb(0, H, src)
        return
    if abs(d) >= H:
        edge = src[H - 1:H] if d > 0 else src[0:1]
        comb(0, H, jnp.broadcast_to(edge, src.shape))
        return
    if d > 0:
        comb(0, H - d, src[d:])
        comb(H - d, d, jnp.broadcast_to(src[H - 1:H], (d,) + src.shape[1:]))
    else:
        a = -d
        comb(a, H - a, src[:H - a])
        comb(0, a, jnp.broadcast_to(src[0:1], (a,) + src.shape[1:]))


def _wshift_clamp(v, d, masks):
    """result[:, w, :] = v[:, clamp(w + d, 0, W - 1), :]  (replicate pad)."""
    W = v.shape[1]
    if d >= W:
        return jnp.broadcast_to(v[:, W - 1:W, :], v.shape)
    if -d >= W:
        return jnp.broadcast_to(v[:, 0:1, :], v.shape)
    rolled = pltpu.roll(v, shift=(-d) % W, axis=1)       # rolled[w] = v[w + d]
    edge = v[:, W - 1:W, :] if d > 0 else v[:, 0:1, :]
    return jnp.where(masks[d], rolled, edge)


def _spp_body(x_ref, o_ref, s_ref, slab_idx):
    """Shared kernel body.  slab_idx(k, r0, n) -> index tuple into o_ref for
    rows [r0, r0+n) of slab k, with k in {0: p13, 1: p9, 2: p5, 3: x}."""
    H, W = s_ref.shape[0], s_ref.shape[1]

    # Hoisted W-position masks (review: compute once per tile, reuse).
    idx_w = lax.broadcasted_iota(jnp.int32, (1, W, 1), 1)
    masks = {d: (idx_w < W - d) if d > 0 else (idx_w >= -d)
             for d in (1, -1, 2, -2, 4, -4)}

    # Slab 3: passthrough x -- final immediately (early store).
    o_ref[slab_idx(3, 0, H)] = x_ref[0]

    # ---- k=5 "same" max pool, separable.  H pass: ranged RMW on scratch ----
    s_ref[...] = x_ref[0]
    for d in (1, -1, 2, -2):
        _hmax_valid_into(s_ref, x_ref, d)

    # ---- k=5 W pass: XLU sublane rolls + hoisted validity masks ----
    h5 = s_ref[...]
    p5 = h5
    for d in (1, -1, 2, -2):
        if abs(d) >= W:
            continue
        rolled = pltpu.roll(h5, shift=(-d) % W, axis=1)
        p5 = jnp.where(masks[d], jnp.maximum(p5, rolled), p5)
    o_ref[slab_idx(2, 0, H)] = p5          # slab 2 = pool5, final (early store)

    # ---- k=9 composed from p5 with edge-clamped +/-2 shifts (exact) ----
    q9 = jnp.maximum(_wshift_clamp(p5, -2, masks), _wshift_clamp(p5, 2, masks))
    _hshift_clamp_out(o_ref, slab_idx, 1, q9, 2, init=True)
    _hshift_clamp_out(o_ref, slab_idx, 1, q9, -2, init=False)

    # ---- k=13 composed from p5 with edge-clamped {-4, 0, +4} shifts ----
    q13 = jnp.maximum(p5, jnp.maximum(_wshift_clamp(p5, -4, masks),
                                      _wshift_clamp(p5, 4, masks)))
    _hshift_clamp_out(o_ref, slab_idx, 0, q13, 0, init=True)
    _hshift_clamp_out(o_ref, slab_idx, 0, q13, 4, init=False)
    _hshift_clamp_out(o_ref, slab_idx, 0, q13, -4, init=False)


def _spp_kernel_packed(x_ref, o_ref, s_ref):
    """Fast path.  x_ref: (1,H,W,C); o_ref: (1,H,W,4C) = [p13|p9|p5|x] slabs."""
    C = x_ref.shape[-1]

    def slab_idx(k, r0, n):
        return (0, pl.ds(r0, n), slice(None), pl.ds(k * C, C))

    _spp_body(x_ref, o_ref, s_ref, slab_idx)


def _spp_kernel_slabs(x_ref, o_ref, s_ref):
    """Channel-tiled fallback.  x_ref: (1,H,W,tc); o_ref: (1,4,H,W,tc)."""

    def slab_idx(k, r0, n):
        return (0, k, pl.ds(r0, n), slice(None), slice(None))

    _spp_body(x_ref, o_ref, s_ref, slab_idx)


# ---------------------------------------------------------------------------
# Wrapper: tiling decisions + pallas_call plumbing
# ---------------------------------------------------------------------------

def _vmem_budget_bytes():
    try:
        info = pltpu.get_tpu_info()
        cap = int(getattr(info, "vmem_capacity_bytes", 0) or 0)
        if cap > 0:
            return min((cap * 3) // 4, 96 * 1024 * 1024)
    except Exception:
        pass
    return _DEFAULT_VMEM_BUDGET


def _step_bytes(H, W, c_tile, itemsize):
    # ~(2x input + 2x 4-slab output blocks + scratch + live value temps).
    return 16 * H * W * c_tile * itemsize


def _pick_tc(C, H, W, itemsize, budget):
    if C % 128 != 0:
        return C            # last block dim must equal full C when unaligned
    tc = 128
    for cand in range(C, 0, -128):
        if C % cand == 0:
            tc = cand
            if _step_bytes(H, W, cand, itemsize) <= budget:
                return cand
    return tc               # 128 (smallest lane-aligned divisor)


def _spp_nhwc(x, vmem_budget_bytes=None):
    """Channels-last SPP: (N, H, W, C) -> (N, H, W, 4C), order [p13|p9|p5|x]."""
    N, H, W, C = x.shape
    itemsize = jnp.dtype(x.dtype).itemsize
    budget = int(vmem_budget_bytes) if vmem_budget_bytes else _vmem_budget_bytes()
    vmem_limit = int(max(budget, _DEFAULT_VMEM_BUDGET))
    cost = pl.CostEstimate(flops=20 * N * H * W * C, transcendentals=0,
                           bytes_accessed=5 * N * H * W * C * itemsize)

    if C % 128 == 0 and _step_bytes(H, W, C, itemsize) <= budget:
        # Fast path: full-C blocks, packed channels-last output, zero layout
        # fixups outside the kernel.
        return pl.pallas_call(
            _spp_kernel_packed,
            out_shape=jax.ShapeDtypeStruct((N, H, W, 4 * C), x.dtype),
            grid=(N,),
            in_specs=[pl.BlockSpec((1, H, W, C), lambda n: (n, 0, 0, 0))],
            out_specs=pl.BlockSpec((1, H, W, 4 * C), lambda n: (n, 0, 0, 0)),
            scratch_shapes=[pltpu.VMEM((H, W, C), x.dtype)],
            compiler_params=pltpu.CompilerParams(
                dimension_semantics=("parallel",),
                vmem_limit_bytes=vmem_limit),
            cost_estimate=cost,
        )(x)

    # Fallback: channel-tiled grid, slab-major output, one layout fixup.
    tc = _pick_tc(C, H, W, itemsize, budget)
    out = pl.pallas_call(
        _spp_kernel_slabs,
        out_shape=jax.ShapeDtypeStruct((N, 4, H, W, C), x.dtype),
        grid=(N, C // tc),
        in_specs=[pl.BlockSpec((1, H, W, tc), lambda n, j: (n, 0, 0, j))],
        out_specs=pl.BlockSpec((1, 4, H, W, tc), lambda n, j: (n, 0, 0, 0, j)),
        scratch_shapes=[pltpu.VMEM((H, W, tc), x.dtype)],
        compiler_params=pltpu.CompilerParams(
            dimension_semantics=("parallel", "parallel"),
            vmem_limit_bytes=vmem_limit),
        cost_estimate=cost,
    )(x)
    return jnp.transpose(out, (0, 2, 3, 1, 4)).reshape(N, H, W, 4 * C)


spp_nhwc = jax.jit(_spp_nhwc, static_argnames=("vmem_budget_bytes",))


@jax.jit
def spatial_pyramid_pooling(x):
    """NCHW drop-in for the PyTorch module: (N, C, H, W) -> (N, 4C, H, W).

    TODO(synk): on TPU, prefer spp_nhwc and keep the surrounding network
    channels-last; this shim pays one transpose per side purely for parity.
    """
    y = _spp_nhwc(jnp.transpose(x, (0, 2, 3, 1)))
    return jnp.transpose(y, (0, 3, 1, 2))


# ---------------------------------------------------------------------------
# Pure-JAX reference (mirrors the PyTorch forward exactly)
# ---------------------------------------------------------------------------

def spp_reference_nchw(x):
    feats = []
    for k in POOL_SIZES[::-1]:
        p = k // 2
        feats.append(lax.reduce_window(
            x, -jnp.inf, lax.max,
            window_dimensions=(1, 1, k, k),
            window_strides=(1, 1, 1, 1),
            padding=((0, 0), (0, 0), (p, p), (p, p))))
    feats.append(x)
    return jnp.concatenate(feats, axis=1)


if __name__ == "__main__":
    k0, k1, k2 = jax.random.split(jax.random.PRNGKey(0), 3)

    # 1) Small NCHW smoke test (C=4 -> slab-major fallback, full-C tile).
    x1 = jax.random.normal(k0, (2, 4, 16, 16), dtype=jnp.float32)
    out1 = jax.block_until_ready(spatial_pyramid_pooling(x1))
    ref1 = spp_reference_nchw(x1)
    assert out1.shape == (2, 16, 16, 16), out1.shape
    assert jnp.allclose(out1, ref1), "mismatch (NCHW wrapper, small C)"

    # 2) Realistic SPP shape: 13x13 (k=13 window overhangs everywhere),
    #    C=256 -> packed fast path (full-C block, zero in-wrapper fixups).
    x2 = jax.random.normal(k1, (1, 256, 13, 13), dtype=jnp.float32)
    out2 = jax.block_until_ready(spatial_pyramid_pooling(x2))
    ref2 = spp_reference_nchw(x2)
    assert out2.shape == (1, 1024, 13, 13), out2.shape
    assert jnp.allclose(out2, ref2), "mismatch (packed fast path)"

    # 3) Channels-last entry point with a tiny VMEM budget to force the
    #    channel-tiled fallback (tc=128, grid=(1, 2)).
    x3 = jax.random.normal(k2, (1, 16, 16, 256), dtype=jnp.float32)
    out3 = jax.block_until_ready(
        spp_nhwc(x3, vmem_budget_bytes=2 * 1024 * 1024))
    ref3 = jnp.transpose(
        spp_reference_nchw(jnp.transpose(x3, (0, 3, 1, 2))), (0, 2, 3, 1))
    assert out3.shape == (1, 16, 16, 1024), out3.shape
    assert jnp.allclose(out3, ref3), "mismatch (channel-tiled fallback)"

    print("KERNEL_OK")
</pallas_src>

<mosaic_0001>
module attributes {stable_mosaic.version = 11 : i64} {
  func.func @_spp_kernel_slabs(%arg0: i32, %arg1: i32, %arg2: memref<1x16x16x4xf32, #tpu.memory_space<vmem>>, %arg3: memref<1x4x16x16x4xf32, #tpu.memory_space<vmem>>, %arg4: memref<16x16x4xf32, #tpu.memory_space<vmem>>) attributes {dimension_semantics = [#tpu.dimension_semantics<parallel>, #tpu.dimension_semantics<parallel>], iteration_bounds = array<i64: 2, 1>, scalar_prefetch = 0 : i64, scratch_operands = 1 : i64, tpu.core_type = #tpu.core_type<tc>, window_params = [{transform_indices = @transform_0, window_bounds = array<i64: 1, 16, 16, 4>}, {transform_indices = @transform_1, window_bounds = array<i64: 1, 4, 16, 16, 4>}]} {
    %0 = tpu.iota {dimensions = array<i32: 1>} : vector<1x16x1xi32>
    %c15_i32 = arith.constant 15 : i32
    %1 = vector.broadcast %c15_i32 : i32 to vector<1x16x1xi32>
    %2 = arith.cmpi slt, %0, %1 : vector<1x16x1xi32>
    %c1_i32 = arith.constant 1 : i32
    %3 = vector.broadcast %c1_i32 : i32 to vector<1x16x1xi32>
    %4 = arith.cmpi sge, %0, %3 : vector<1x16x1xi32>
    %c14_i32 = arith.constant 14 : i32
    %5 = vector.broadcast %c14_i32 : i32 to vector<1x16x1xi32>
    %6 = arith.cmpi slt, %0, %5 : vector<1x16x1xi32>
    %c2_i32 = arith.constant 2 : i32
    %7 = vector.broadcast %c2_i32 : i32 to vector<1x16x1xi32>
    %8 = arith.cmpi sge, %0, %7 : vector<1x16x1xi32>
    %c12_i32 = arith.constant 12 : i32
    %9 = vector.broadcast %c12_i32 : i32 to vector<1x16x1xi32>
    %10 = arith.cmpi slt, %0, %9 : vector<1x16x1xi32>
    %c4_i32 = arith.constant 4 : i32
    %11 = vector.broadcast %c4_i32 : i32 to vector<1x16x1xi32>
    %12 = arith.cmpi sge, %0, %11 : vector<1x16x1xi32>
    %c0 = arith.constant 0 : index
    %c0_0 = arith.constant 0 : index
    %c0_1 = arith.constant 0 : index
    %c0_2 = arith.constant 0 : index
    %13 = vector.load %arg2[%c0, %c0_0, %c0_1, %c0_2] : memref<1x16x16x4xf32, #tpu.memory_space<vmem>>, vector<1x16x16x4xf32>
    %14 = vector.shape_cast %13 : vector<1x16x16x4xf32> to vector<16x16x4xf32>
    %c0_3 = arith.constant 0 : index
    %c3 = arith.constant 3 : index
    %c0_4 = arith.constant 0 : index
    %c0_5 = arith.constant 0 : index
    %c0_6 = arith.constant 0 : index
    %15 = vector.load %arg3[%c0_3, %c3, %c0_4, %c0_5, %c0_6] : memref<1x4x16x16x4xf32, #tpu.memory_space<vmem>>, vector<1x1x16x16x4xf32>
    %16 = vector.shape_cast %15 : vector<1x1x16x16x4xf32> to vector<16x16x4xf32>
    %17 = vector.shape_cast %14 : vector<16x16x4xf32> to vector<1x1x16x16x4xf32>
    tpu.vector_store %arg3[%c0_3, %c3, %c0_4, %c0_5, %c0_6], %17 {strides = array<i32>} : memref<1x4x16x16x4xf32, #tpu.memory_space<vmem>>, vector<1x1x16x16x4xf32>,
    %c0_7 = arith.constant 0 : index
    %c0_8 = arith.constant 0 : index
    %c0_9 = arith.constant 0 : index
    %c0_10 = arith.constant 0 : index
    %18 = vector.load %arg2[%c0_7, %c0_8, %c0_9, %c0_10] : memref<1x16x16x4xf32, #tpu.memory_space<vmem>>, vector<1x16x16x4xf32>
    %19 = vector.shape_cast %18 : vector<1x16x16x4xf32> to vector<16x16x4xf32>
    %c0_11 = arith.constant 0 : index
    %c0_12 = arith.constant 0 : index
    %c0_13 = arith.constant 0 : index
    %20 = vector.load %arg4[%c0_11, %c0_12, %c0_13] : memref<16x16x4xf32, #tpu.memory_space<vmem>>, vector<16x16x4xf32>
    tpu.vector_store %arg4[%c0_11, %c0_12, %c0_13], %19 {strides = array<i32>} : memref<16x16x4xf32, #tpu.memory_space<vmem>>, vector<16x16x4xf32>,
    %c0_14 = arith.constant 0 : index
    %c0_15 = arith.constant 0 : index
    %c0_16 = arith.constant 0 : index
    %21 = vector.load %arg4[%c0_14, %c0_15, %c0_16] : memref<16x16x4xf32, #tpu.memory_space<vmem>>, vector<15x16x4xf32>
    %c0_17 = arith.constant 0 : index
    %c1 = arith.constant 1 : index
    %c0_18 = arith.constant 0 : index
    %c0_19 = arith.constant 0 : index
    %22 = vector.load %arg2[%c0_17, %c1, %c0_18, %c0_19] : memref<1x16x16x4xf32, #tpu.memory_space<vmem>>, vector<1x15x16x4xf32>
    %23 = vector.shape_cast %22 : vector<1x15x16x4xf32> to vector<15x16x4xf32>
    %24 = arith.maximumf %21, %23 : vector<15x16x4xf32>
    %c0_20 = arith.constant 0 : index
    %c0_21 = arith.constant 0 : index
    %c0_22 = arith.constant 0 : index
    %25 = vector.load %arg4[%c0_20, %c0_21, %c0_22] : memref<16x16x4xf32, #tpu.memory_space<vmem>>, vector<15x16x4xf32>
    tpu.vector_store %arg4[%c0_20, %c0_21, %c0_22], %24 {strides = array<i32>} : memref<16x16x4xf32, #tpu.memory_space<vmem>>, vector<15x16x4xf32>,
    %c1_23 = arith.constant 1 : index
    %c0_24 = arith.constant 0 : index
    %c0_25 = arith.constant 0 : index
    %26 = vector.load %arg4[%c1_23, %c0_24, %c0_25] : memref<16x16x4xf32, #tpu.memory_space<vmem>>, vector<15x16x4xf32>
    %c0_26 = arith.constant 0 : index
    %c0_27 = arith.constant 0 : index
    %c0_28 = arith.constant 0 : index
    %c0_29 = arith.constant 0 : index
    %27 = vector.load %arg2[%c0_26, %c0_27, %c0_28, %c0_29] : memref<1x16x16x4xf32, #tpu.memory_space<vmem>>, vector<1x15x16x4xf32>
    %28 = vector.shape_cast %27 : vector<1x15x16x4xf32> to vector<15x16x4xf32>
    %29 = arith.maximumf %26, %28 : vector<15x16x4xf32>
    %c1_30 = arith.constant 1 : index
    %c0_31 = arith.constant 0 : index
    %c0_32 = arith.constant 0 : index
    %30 = vector.load %arg4[%c1_30, %c0_31, %c0_32] : memref<16x16x4xf32, #tpu.memory_space<vmem>>, vector<15x16x4xf32>
    tpu.vector_store %arg4[%c1_30, %c0_31, %c0_32], %29 {strides = array<i32>} : memref<16x16x4xf32, #tpu.memory_space<vmem>>, vector<15x16x4xf32>,
    %c0_33 = arith.constant 0 : index
    %c0_34 = arith.constant 0 : index
    %c0_35 = arith.constant 0 : index
    %31 = vector.load %arg4[%c0_33, %c0_34, %c0_35] : memref<16x16x4xf32, #tpu.memory_space<vmem>>, vector<14x16x4xf32>
    %c0_36 = arith.constant 0 : index
    %c2 = arith.constant 2 : index
    %c0_37 = arith.constant 0 : index
    %c0_38 = arith.constant 0 : index
    %32 = vector.load %arg2[%c0_36, %c2, %c0_37, %c0_38] : memref<1x16x16x4xf32, #tpu.memory_space<vmem>>, vector<1x14x16x4xf32>
    %33 = vector.shape_cast %32 : vector<1x14x16x4xf32> to vector<14x16x4xf32>
    %34 = arith.maximumf %31, %33 : vector<14x16x4xf32>
    %c0_39 = arith.constant 0 : index
    %c0_40 = arith.constant 0 : index
    %c0_41 = arith.constant 0 : index
    %35 = vector.load %arg4[%c0_39, %c0_40, %c0_41] : memref<16x16x4xf32, #tpu.memory_space<vmem>>, vector<14x16x4xf32>
    tpu.vector_store %arg4[%c0_39, %c0_40, %c0_41], %34 {strides = array<i32>} : memref<16x16x4xf32, #tpu.memory_space<vmem>>, vector<14x16x4xf32>,
    %c2_42 = arith.constant 2 : index
    %c0_43 = arith.constant 0 : index
    %c0_44 = arith.constant 0 : index
    %36 = vector.load %arg4[%c2_42, %c0_43, %c0_44] : memref<16x16x4xf32, #tpu.memory_space<vmem>>, vector<14x16x4xf32>
    %c0_45 = arith.constant 0 : index
    %c0_46 = arith.constant 0 : index
    %c0_47 = arith.constant 0 : index
    %c0_48 = arith.constant 0 : index
    %37 = vector.load %arg2[%c0_45, %c0_46, %c0_47, %c0_48] : memref<1x16x16x4xf32, #tpu.memory_space<vmem>>, vector<1x14x16x4xf32>
    %38 = vector.shape_cast %37 : vector<1x14x16x4xf32> to vector<14x16x4xf32>
    %39 = arith.maximumf %36, %38 : vector<14x16x4xf32>
    %c2_49 = arith.constant 2 : index
    %c0_50 = arith.constant 0 : index
    %c0_51 = arith.constant 0 : index
    %40 = vector.load %arg4[%c2_49, %c0_50, %c0_51] : memref<16x16x4xf32, #tpu.memory_space<vmem>>, vector<14x16x4xf32>
    tpu.vector_store %arg4[%c2_49, %c0_50, %c0_51], %39 {strides = array<i32>} : memref<16x16x4xf32, #tpu.memory_space<vmem>>, vector<14x16x4xf32>,
    %c0_52 = arith.constant 0 : index
    %c0_53 = arith.constant 0 : index
    %c0_54 = arith.constant 0 : index
    %41 = vector.load %arg4[%c0_52, %c0_53, %c0_54] : memref<16x16x4xf32, #tpu.memory_space<vmem>>, vector<16x16x4xf32>
    %c15_i32_55 = arith.constant 15 : i32
    %42 = tpu.dynamic_rotate %41 by %c15_i32_55 dim 1 : vector<16x16x4xf32>, i32 -> vector<16x16x4xf32>
    %43 = arith.maximumf %41, %42 : vector<16x16x4xf32>
    %44 = vector.shape_cast %2 : vector<1x16x1xi1> to vector<1x16x1xi1>
    %45 = vector.broadcast %44 : vector<1x16x1xi1> to vector<16x16x4xi1>
    %46 = arith.select %45, %43, %41 : vector<16x16x4xi1>, vector<16x16x4xf32>
    %c1_i32_56 = arith.constant 1 : i32
    %47 = tpu.dynamic_rotate %41 by %c1_i32_56 dim 1 : vector<16x16x4xf32>, i32 -> vector<16x16x4xf32>
    %48 = arith.maximumf %46, %47 : vector<16x16x4xf32>
    %49 = vector.shape_cast %4 : vector<1x16x1xi1> to vector<1x16x1xi1>
    %50 = vector.broadcast %49 : vector<1x16x1xi1> to vector<16x16x4xi1>
    %51 = arith.select %50, %48, %46 : vector<16x16x4xi1>, vector<16x16x4xf32>
    %c14_i32_57 = arith.constant 14 : i32
    %52 = tpu.dynamic_rotate %41 by %c14_i32_57 dim 1 : vector<16x16x4xf32>, i32 -> vector<16x16x4xf32>
    %53 = arith.maximumf %51, %52 : vector<16x16x4xf32>
    %54 = vector.shape_cast %6 : vector<1x16x1xi1> to vector<1x16x1xi1>
    %55 = vector.broadcast %54 : vector<1x16x1xi1> to vector<16x16x4xi1>
    %56 = arith.select %55, %53, %51 : vector<16x16x4xi1>, vector<16x16x4xf32>
    %c2_i32_58 = arith.constant 2 : i32
    %57 = tpu.dynamic_rotate %41 by %c2_i32_58 dim 1 : vector<16x16x4xf32>, i32 -> vector<16x16x4xf32>
    %58 = arith.maximumf %56, %57 : vector<16x16x4xf32>
    %59 = vector.shape_cast %8 : vector<1x16x1xi1> to vector<1x16x1xi1>
    %60 = vector.broadcast %59 : vector<1x16x1xi1> to vector<16x16x4xi1>
    %61 = arith.select %60, %58, %56 : vector<16x16x4xi1>, vector<16x16x4xf32>
    %c0_59 = arith.constant 0 : index
    %c2_60 = arith.constant 2 : index
    %c0_61 = arith.constant 0 : index
    %c0_62 = arith.constant 0 : index
    %c0_63 = arith.constant 0 : index
    %62 = vector.load %arg3[%c0_59, %c2_60, %c0_61, %c0_62, %c0_63] : memref<1x4x16x16x4xf32, #tpu.memory_space<vmem>>, vector<1x1x16x16x4xf32>
    %63 = vector.shape_cast %62 : vector<1x1x16x16x4xf32> to vector<16x16x4xf32>
    %64 = vector.shape_cast %61 : vector<16x16x4xf32> to vector<1x1x16x16x4xf32>
    tpu.vector_store %arg3[%c0_59, %c2_60, %c0_61, %c0_62, %c0_63], %64 {strides = array<i32>} : memref<1x4x16x16x4xf32, #tpu.memory_space<vmem>>, vector<1x1x16x16x4xf32>,
    %c2_i32_64 = arith.constant 2 : i32
    %65 = tpu.dynamic_rotate %61 by %c2_i32_64 dim 1 : vector<16x16x4xf32>, i32 -> vector<16x16x4xf32>
    %66 = vector.extract_strided_slice %61 {offsets = [0, 0, 0], sizes = [16, 1, 4], strides = [1, 1, 1]} : vector<16x16x4xf32> to vector<16x1x4xf32>
    %67 = vector.shape_cast %8 : vector<1x16x1xi1> to vector<1x16x1xi1>
    %68 = vector.broadcast %67 : vector<1x16x1xi1> to vector<16x16x4xi1>
    %69 = vector.shape_cast %66 : vector<16x1x4xf32> to vector<16x1x4xf32>
    %70 = vector.broadcast %69 : vector<16x1x4xf32> to vector<16x16x4xf32>
    %71 = arith.select %68, %65, %70 : vector<16x16x4xi1>, vector<16x16x4xf32>
    %c14_i32_65 = arith.constant 14 : i32
    %72 = tpu.dynamic_rotate %61 by %c14_i32_65 dim 1 : vector<16x16x4xf32>, i32 -> vector<16x16x4xf32>
    %73 = vector.extract_strided_slice %61 {offsets = [0, 15, 0], sizes = [16, 1, 4], strides = [1, 1, 1]} : vector<16x16x4xf32> to vector<16x1x4xf32>
    %74 = vector.shape_cast %6 : vector<1x16x1xi1> to vector<1x16x1xi1>
    %75 = vector.broadcast %74 : vector<1x16x1xi1> to vector<16x16x4xi1>
    %76 = vector.shape_cast %73 : vector<16x1x4xf32> to vector<16x1x4xf32>
    %77 = vector.broadcast %76 : vector<16x1x4xf32> to vector<16x16x4xf32>
    %78 = arith.select %75, %72, %77 : vector<16x16x4xi1>, vector<16x16x4xf32>
    %79 = arith.maximumf %71, %78 : vector<16x16x4xf32>
    %80 = vector.extract_strided_slice %79 {offsets = [2, 0, 0], sizes = [14, 16, 4], strides = [1, 1, 1]} : vector<16x16x4xf32> to vector<14x16x4xf32>
    %c0_66 = arith.constant 0 : index
    %c1_67 = arith.constant 1 : index
    %c0_68 = arith.constant 0 : index
    %c0_69 = arith.constant 0 : index
    %c0_70 = arith.constant 0 : index
    %81 = vector.load %arg3[%c0_66, %c1_67, %c0_68, %c0_69, %c0_70] : memref<1x4x16x16x4xf32, #tpu.memory_space<vmem>>, vector<1x1x14x16x4xf32>
    %82 = vector.shape_cast %81 : vector<1x1x14x16x4xf32> to vector<14x16x4xf32>
    %83 = vector.shape_cast %80 : vector<14x16x4xf32> to vector<1x1x14x16x4xf32>
    tpu.vector_store %arg3[%c0_66, %c1_67, %c0_68, %c0_69, %c0_70], %83 {strides = array<i32>} : memref<1x4x16x16x4xf32, #tpu.memory_space<vmem>>, vector<1x1x14x16x4xf32>,
    %84 = vector.extract_strided_slice %79 {offsets = [15, 0, 0], sizes = [1, 16, 4], strides = [1, 1, 1]} : vector<16x16x4xf32> to vector<1x16x4xf32>
    %85 = vector.shape_cast %84 : vector<1x16x4xf32> to vector<1x16x4xf32>
    %86 = vector.broadcast %85 : vector<1x16x4xf32> to vector<2x16x4xf32>
    %c0_71 = arith.constant 0 : index
    %c1_72 = arith.constant 1 : index
    %c14 = arith.constant 14 : index
    %c0_73 = arith.constant 0 : index
    %c0_74 = arith.constant 0 : index
    %87 = vector.load %arg3[%c0_71, %c1_72, %c14, %c0_73, %c0_74] : memref<1x4x16x16x4xf32, #tpu.memory_space<vmem>>, vector<1x1x2x16x4xf32>
    %88 = vector.shape_cast %87 : vector<1x1x2x16x4xf32> to vector<2x16x4xf32>
    %89 = vector.shape_cast %86 : vector<2x16x4xf32> to vector<1x1x2x16x4xf32>
    tpu.vector_store %arg3[%c0_71, %c1_72, %c14, %c0_73, %c0_74], %89 {strides = array<i32>} : memref<1x4x16x16x4xf32, #tpu.memory_space<vmem>>, vector<1x1x2x16x4xf32>,
    %90 = vector.extract_strided_slice %79 {offsets = [0, 0, 0], sizes = [14, 16, 4], strides = [1, 1, 1]} : vector<16x16x4xf32> to vector<14x16x4xf32>
    %c0_75 = arith.constant 0 : index
    %c1_76 = arith.constant 1 : index
    %c2_77 = arith.constant 2 : index
    %c0_78 = arith.constant 0 : index
    %c0_79 = arith.constant 0 : index
    %91 = vector.load %arg3[%c0_75, %c1_76, %c2_77, %c0_78, %c0_79] : memref<1x4x16x16x4xf32, #tpu.memory_space<vmem>>, vector<1x1x14x16x4xf32>
    %92 = vector.shape_cast %91 : vector<1x1x14x16x4xf32> to vector<14x16x4xf32>
    %93 = arith.maximumf %92, %90 : vector<14x16x4xf32>
    %c0_80 = arith.constant 0 : index
    %c1_81 = arith.constant 1 : index
    %c2_82 = arith.constant 2 : index
    %c0_83 = arith.constant 0 : index
    %c0_84 = arith.constant 0 : index
    %94 = vector.load %arg3[%c0_80, %c1_81, %c2_82, %c0_83, %c0_84] : memref<1x4x16x16x4xf32, #tpu.memory_space<vmem>>, vector<1x1x14x16x4xf32>
    %95 = vector.shape_cast %94 : vector<1x1x14x16x4xf32> to vector<14x16x4xf32>
    %96 = vector.shape_cast %93 : vector<14x16x4xf32> to vector<1x1x14x16x4xf32>
    tpu.vector_store %arg3[%c0_80, %c1_81, %c2_82, %c0_83, %c0_84], %96 {strides = array<i32>} : memref<1x4x16x16x4xf32, #tpu.memory_space<vmem>>, vector<1x1x14x16x4xf32>,
    %97 = vector.extract_strided_slice %79 {offsets = [0, 0, 0], sizes = [1, 16, 4], strides = [1, 1, 1]} : vector<16x16x4xf32> to vector<1x16x4xf32>
    %98 = vector.shape_cast %97 : vector<1x16x4xf32> to vector<1x16x4xf32>
    %99 = vector.broadcast %98 : vector<1x16x4xf32> to vector<2x16x4xf32>
    %c0_85 = arith.constant 0 : index
    %c1_86 = arith.constant 1 : index
    %c0_87 = arith.constant 0 : index
    %c0_88 = arith.constant 0 : index
    %c0_89 = arith.constant 0 : index
    %100 = vector.load %arg3[%c0_85, %c1_86, %c0_87, %c0_88, %c0_89] : memref<1x4x16x16x4xf32, #tpu.memory_space<vmem>>, vector<1x1x2x16x4xf32>
    %101 = vector.shape_cast %100 : vector<1x1x2x16x4xf32> to vector<2x16x4xf32>
    %102 = arith.maximumf %101, %99 : vector<2x16x4xf32>
    %c0_90 = arith.constant 0 : index
    %c1_91 = arith.constant 1 : index
    %c0_92 = arith.constant 0 : index
    %c0_93 = arith.constant 0 : index
    %c0_94 = arith.constant 0 : index
    %103 = vector.load %arg3[%c0_90, %c1_91, %c0_92, %c0_93, %c0_94] : memref<1x4x16x16x4xf32, #tpu.memory_space<vmem>>, vector<1x1x2x16x4xf32>
    %104 = vector.shape_cast %103 : vector<1x1x2x16x4xf32> to vector<2x16x4xf32>
    %105 = vector.shape_cast %102 : vector<2x16x4xf32> to vector<1x1x2x16x4xf32>
    tpu.vector_store %arg3[%c0_90, %c1_91, %c0_92, %c0_93, %c0_94], %105 {strides = array<i32>} : memref<1x4x16x16x4xf32, #tpu.memory_space<vmem>>, vector<1x1x2x16x4xf32>,
    %c4_i32_95 = arith.constant 4 : i32
    %106 = tpu.dynamic_rotate %61 by %c4_i32_95 dim 1 : vector<16x16x4xf32>, i32 -> vector<16x16x4xf32>
    %107 = vector.extract_strided_slice %61 {offsets = [0, 0, 0], sizes = [16, 1, 4], strides = [1, 1, 1]} : vector<16x16x4xf32> to vector<16x1x4xf32>
    %108 = vector.shape_cast %12 : vector<1x16x1xi1> to vector<1x16x1xi1>
    %109 = vector.broadcast %108 : vector<1x16x1xi1> to vector<16x16x4xi1>
    %110 = vector.shape_cast %107 : vector<16x1x4xf32> to vector<16x1x4xf32>
    %111 = vector.broadcast %110 : vector<16x1x4xf32> to vector<16x16x4xf32>
    %112 = arith.select %109, %106, %111 : vector<16x16x4xi1>, vector<16x16x4xf32>
    %c12_i32_96 = arith.constant 12 : i32
    %113 = tpu.dynamic_rotate %61 by %c12_i32_96 dim 1 : vector<16x16x4xf32>, i32 -> vector<16x16x4xf32>
    %114 = vector.extract_strided_slice %61 {offsets = [0, 15, 0], sizes = [16, 1, 4], strides = [1, 1, 1]} : vector<16x16x4xf32> to vector<16x1x4xf32>
    %115 = vector.shape_cast %10 : vector<1x16x1xi1> to vector<1x16x1xi1>
    %116 = vector.broadcast %115 : vector<1x16x1xi1> to vector<16x16x4xi1>
    %117 = vector.shape_cast %114 : vector<16x1x4xf32> to vector<16x1x4xf32>
    %118 = vector.broadcast %117 : vector<16x1x4xf32> to vector<16x16x4xf32>
    %119 = arith.select %116, %113, %118 : vector<16x16x4xi1>, vector<16x16x4xf32>
    %120 = arith.maximumf %112, %119 : vector<16x16x4xf32>
    %121 = arith.maximumf %61, %120 : vector<16x16x4xf32>
    %c0_97 = arith.constant 0 : index
    %c0_98 = arith.constant 0 : index
    %c0_99 = arith.constant 0 : index
    %c0_100 = arith.constant 0 : index
    %c0_101 = arith.constant 0 : index
    %122 = vector.load %arg3[%c0_97, %c0_98, %c0_99, %c0_100, %c0_101] : memref<1x4x16x16x4xf32, #tpu.memory_space<vmem>>, vector<1x1x16x16x4xf32>
    %123 = vector.shape_cast %122 : vector<1x1x16x16x4xf32> to vector<16x16x4xf32>
    %124 = vector.shape_cast %121 : vector<16x16x4xf32> to vector<1x1x16x16x4xf32>
    tpu.vector_store %arg3[%c0_97, %c0_98, %c0_99, %c0_100, %c0_101], %124 {strides = array<i32>} : memref<1x4x16x16x4xf32, #tpu.memory_space<vmem>>, vector<1x1x16x16x4xf32>,
    %125 = vector.extract_strided_slice %121 {offsets = [4, 0, 0], sizes = [12, 16, 4], strides = [1, 1, 1]} : vector<16x16x4xf32> to vector<12x16x4xf32>
    %c0_102 = arith.constant 0 : index
    %c0_103 = arith.constant 0 : index
    %c0_104 = arith.constant 0 : index
    %c0_105 = arith.constant 0 : index
    %c0_106 = arith.constant 0 : index
    %126 = vector.load %arg3[%c0_102, %c0_103, %c0_104, %c0_105, %c0_106] : memref<1x4x16x16x4xf32, #tpu.memory_space<vmem>>, vector<1x1x12x16x4xf32>
    %127 = vector.shape_cast %126 : vector<1x1x12x16x4xf32> to vector<12x16x4xf32>
    %128 = arith.maximumf %127, %125 : vector<12x16x4xf32>
    %c0_107 = arith.constant 0 : index
    %c0_108 = arith.constant 0 : index
    %c0_109 = arith.constant 0 : index
    %c0_110 = arith.constant 0 : index
    %c0_111 = arith.constant 0 : index
    %129 = vector.load %arg3[%c0_107, %c0_108, %c0_109, %c0_110, %c0_111] : memref<1x4x16x16x4xf32, #tpu.memory_space<vmem>>, vector<1x1x12x16x4xf32>
    %130 = vector.shape_cast %129 : vector<1x1x12x16x4xf32> to vector<12x16x4xf32>
    %131 = vector.shape_cast %128 : vector<12x16x4xf32> to vector<1x1x12x16x4xf32>
    tpu.vector_store %arg3[%c0_107, %c0_108, %c0_109, %c0_110, %c0_111], %131 {strides = array<i32>} : memref<1x4x16x16x4xf32, #tpu.memory_space<vmem>>, vector<1x1x12x16x4xf32>,
    %132 = vector.extract_strided_slice %121 {offsets = [15, 0, 0], sizes = [1, 16, 4], strides = [1, 1, 1]} : vector<16x16x4xf32> to vector<1x16x4xf32>
    %133 = vector.shape_cast %132 : vector<1x16x4xf32> to vector<1x16x4xf32>
    %134 = vector.broadcast %133 : vector<1x16x4xf32> to vector<4x16x4xf32>
    %c0_112 = arith.constant 0 : index
    %c0_113 = arith.constant 0 : index
    %c12 = arith.constant 12 : index
    %c0_114 = arith.constant 0 : index
    %c0_115 = arith.constant 0 : index
    %135 = vector.load %arg3[%c0_112, %c0_113, %c12, %c0_114, %c0_115] : memref<1x4x16x16x4xf32, #tpu.memory_space<vmem>>, vector<1x1x4x16x4xf32>
    %136 = vector.shape_cast %135 : vector<1x1x4x16x4xf32> to vector<4x16x4xf32>
    %137 = arith.maximumf %136, %134 : vector<4x16x4xf32>
    %c0_116 = arith.constant 0 : index
    %c0_117 = arith.constant 0 : index
    %c12_118 = arith.constant 12 : index
    %c0_119 = arith.constant 0 : index
    %c0_120 = arith.constant 0 : index
    %138 = vector.load %arg3[%c0_116, %c0_117, %c12_118, %c0_119, %c0_120] : memref<1x4x16x16x4xf32, #tpu.memory_space<vmem>>, vector<1x1x4x16x4xf32>
    %139 = vector.shape_cast %138 : vector<1x1x4x16x4xf32> to vector<4x16x4xf32>
    %140 = vector.shape_cast %137 : vector<4x16x4xf32> to vector<1x1x4x16x4xf32>
    tpu.vector_store %arg3[%c0_116, %c0_117, %c12_118, %c0_119, %c0_120], %140 {strides = array<i32>} : memref<1x4x16x16x4xf32, #tpu.memory_space<vmem>>, vector<1x1x4x16x4xf32>,
    %141 = vector.extract_strided_slice %121 {offsets = [0, 0, 0], sizes = [12, 16, 4], strides = [1, 1, 1]} : vector<16x16x4xf32> to vector<12x16x4xf32>
    %c0_121 = arith.constant 0 : index
    %c0_122 = arith.constant 0 : index
    %c4 = arith.constant 4 : index
    %c0_123 = arith.constant 0 : index
    %c0_124 = arith.constant 0 : index
    %142 = vector.load %arg3[%c0_121, %c0_122, %c4, %c0_123, %c0_124] : memref<1x4x16x16x4xf32, #tpu.memory_space<vmem>>, vector<1x1x12x16x4xf32>
    %143 = vector.shape_cast %142 : vector<1x1x12x16x4xf32> to vector<12x16x4xf32>
    %144 = arith.maximumf %143, %141 : vector<12x16x4xf32>
    %c0_125 = arith.constant 0 : index
    %c0_126 = arith.constant 0 : index
    %c4_127 = arith.constant 4 : index
    %c0_128 = arith.constant 0 : index
    %c0_129 = arith.constant 0 : index
    %145 = vector.load %arg3[%c0_125, %c0_126, %c4_127, %c0_128, %c0_129] : memref<1x4x16x16x4xf32, #tpu.memory_space<vmem>>, vector<1x1x12x16x4xf32>
    %146 = vector.shape_cast %145 : vector<1x1x12x16x4xf32> to vector<12x16x4xf32>
    %147 = vector.shape_cast %144 : vector<12x16x4xf32> to vector<1x1x12x16x4xf32>
    tpu.vector_store %arg3[%c0_125, %c0_126, %c4_127, %c0_128, %c0_129], %147 {strides = array<i32>} : memref<1x4x16x16x4xf32, #tpu.memory_space<vmem>>, vector<1x1x12x16x4xf32>,
    %148 = vector.extract_strided_slice %121 {offsets = [0, 0, 0], sizes = [1, 16, 4], strides = [1, 1, 1]} : vector<16x16x4xf32> to vector<1x16x4xf32>
    %149 = vector.shape_cast %148 : vector<1x16x4xf32> to vector<1x16x4xf32>
    %150 = vector.broadcast %149 : vector<1x16x4xf32> to vector<4x16x4xf32>
    %c0_130 = arith.constant 0 : index
    %c0_131 = arith.constant 0 : index
    %c0_132 = arith.constant 0 : index
    %c0_133 = arith.constant 0 : index
    %c0_134 = arith.constant 0 : index
    %151 = vector.load %arg3[%c0_130, %c0_131, %c0_132, %c0_133, %c0_134] : memref<1x4x16x16x4xf32, #tpu.memory_space<vmem>>, vector<1x1x4x16x4xf32>
    %152 = vector.shape_cast %151 : vector<1x1x4x16x4xf32> to vector<4x16x4xf32>
    %153 = arith.maximumf %152, %150 : vector<4x16x4xf32>
    %c0_135 = arith.constant 0 : index
    %c0_136 = arith.constant 0 : index
    %c0_137 = arith.constant 0 : index
    %c0_138 = arith.constant 0 : index
    %c0_139 = arith.constant 0 : index
    %154 = vector.load %arg3[%c0_135, %c0_136, %c0_137, %c0_138, %c0_139] : memref<1x4x16x16x4xf32, #tpu.memory_space<vmem>>, vector<1x1x4x16x4xf32>
    %155 = vector.shape_cast %154 : vector<1x1x4x16x4xf32> to vector<4x16x4xf32>
    %156 = vector.shape_cast %153 : vector<4x16x4xf32> to vector<1x1x4x16x4xf32>
    tpu.vector_store %arg3[%c0_135, %c0_136, %c0_137, %c0_138, %c0_139], %156 {strides = array<i32>} : memref<1x4x16x16x4xf32, #tpu.memory_space<vmem>>, vector<1x1x4x16x4xf32>,
    return
  }
  func.func @transform_0(%arg0: i32, %arg1: i32) -> (i32, i32, i32, i32) {
    %c0_i32 = arith.constant 0 : i32
    %c0_i32_0 = arith.constant 0 : i32
    %c0_i32_1 = arith.constant 0 : i32
    return %arg0, %c0_i32, %c0_i32_0, %arg1 : i32, i32, i32, i32
  }
  func.func @transform_1(%arg0: i32, %arg1: i32) -> (i32, i32, i32, i32, i32) {
    %c0_i32 = arith.constant 0 : i32
    %c0_i32_0 = arith.constant 0 : i32
    %c0_i32_1 = arith.constant 0 : i32
    %c0_i32_2 = arith.constant 0 : i32
    return %arg0, %c0_i32, %c0_i32_0, %c0_i32_1, %arg1 : i32, i32, i32, i32, i32
  }
}

</mosaic_0001>

<bundles_post_ra>
// kernel: spatial_pyramid_pooling.1
= control target key start
LH: loop header
LB: loop body
LE: loop exit
PB: predicated region body
PF: predicated region fallthrough
CT: control target
= control target key end

     0   :  { %s2704_s6 = smov 0   ;;  %s2706_s7 = smov 0   ;;  %s5310_s0 = inlined_call_operand.vmem [shape: f32[2,16,16,4], index: 0, kind: input, shape index: {}]   ;;  %s5311_s1 = inlined_call_operand.vmem [shape: f32[2,4,16,16,4], index: 1, kind: output, shape index: {}]  }
   0x1   :  { %s2708_s8 = smov 0  }
   0x2 LB: > { %s23_s9 = sadd.s32 1, %s2688_s7  ;;  %p2355_p0 = scmp.ge.s32.totalorder %s2692_s8, 1  ;;  %s2692_s8 = sphi %s2708_s8, %s11_s8   ;;  %s2688_s7 = sphi %s2706_s7, %s5453_s7   ;;  %s2684_s6 = sphi %s2704_s6, %s5452_s6  }
   0x3   : > { %p25_p1 = scmp.ge.s32.totalorder %s23_s9, 2  ;;  %p106_p2 = scmp.lt.s32.totalorder %s2692_s8, 3 }
   0x5   : > { %s5455_s9 = smov (%p25_p1, %s23_s9), 0  ;;  %p107_p3 = pnand %p2355_p0, %p106_p2 }
   0x7   : > { %110 = sbr.rel (%p107_p3) target bundleno = 343 (0x157), region = 24 }
   0xc   : > { %p132_p4 = scmp.lt.s32.totalorder %s2684_s6, 1  ;;  %vm196_vm0 = vcmask 31744  }
   0xe   : > { %s5457_s6 = smov (!%p132_p4, %s2684_s6), 1 }
   0xf   : > { %s2644_s10 = sshll.u32 %s5457_s6, 8  ;;  %s2645_s14 = sshll.u32 %s5457_s6, 10 }
  0x10   : > { %s2728_s13 = scalar_lea.vmem %s5310_s0, %s2644_s10  ;;  %s3247_s17 = scalar_lea.vmem %s5311_s1, %s2645_s14 }
  0x11   : > { %v2731_v0 = vld [vmem:[%s2728_s13 + $0x10] sm:$0xff]  ;;  %v2734_v1 = vld [vmem:[%s2728_s13 + $0x18] sm:$0xff]  ;;  %v2737_v2 = vld [vmem:[%s2728_s13 + $0x20] sm:$0xff] }
  0x12   : > { %263 = vst.msk [vmem:[#allocation2 + $0x10] sm:$0xff] %vm196_vm0, %v2731_v0  ;;  %264 = vst.msk [vmem:[#allocation2 + $0x18] sm:$0xff] %vm196_vm0, %v2734_v1  ;;  %v2746_v3 = vld [vmem:[%s2728_s13 + $0x28] sm:$0xff]  ;;  %v2749_v4 = vld [vmem:[%s2728_s13 + $0x30] sm:$0xff] }
  0x13   : > { %265 = vst.msk [vmem:[#allocation2 + $0x20] sm:$0xff] %vm196_vm0, %v2737_v2  ;;  %v2752_v5 = vld [vmem:[%s2728_s13 + $0x38] sm:$0xff]  ;;  %266 = vst.msk [vmem:[#allocation2 + $0x28] sm:$0xff] %vm196_vm0, %v2746_v3  ;;  %v2761_v6 = vld [vmem:[%s2728_s13 + $0x40] sm:$0xff] }
  0x14   : > { %267 = vst.msk [vmem:[#allocation2 + $0x30] sm:$0xff] %vm196_vm0, %v2749_v4  ;;  %268 = vst.msk [vmem:[#allocation2 + $0x38] sm:$0xff] %vm196_vm0, %v2752_v5  ;;  %v2764_v7 = vld [vmem:[%s2728_s13 + $0x48] sm:$0xff]  ;;  %v2767_v8 = vld [vmem:[%s2728_s13 + $0x50] sm:$0xff] }
  0x15   : > { %269 = vst.msk [vmem:[#allocation2 + $0x40] sm:$0xff] %vm196_vm0, %v2761_v6  ;;  %270 = vst.msk [vmem:[#allocation2 + $0x48] sm:$0xff] %vm196_vm0, %v2764_v7  ;;  %v2776_v9 = vld [vmem:[%s2728_s13 + $0x58] sm:$0xff]  ;;  %v2779_v10 = vld [vmem:[%s2728_s13 + $0x60] sm:$0xff] }
  0x16   : > { %271 = vst.msk [vmem:[#allocation2 + $0x50] sm:$0xff] %vm196_vm0, %v2767_v8  ;;  %v2782_v11 = vld [vmem:[%s2728_s13 + $0x68] sm:$0xff]  ;;  %272 = vst.msk [vmem:[#allocation2 + $0x58] sm:$0xff] %vm196_vm0, %v2776_v9  ;;  %v2791_v12 = vld [vmem:[%s2728_s13 + $0x70] sm:$0xff] }
  0x17   : > { %273 = vst.msk [vmem:[#allocation2 + $0x60] sm:$0xff] %vm196_vm0, %v2779_v10  ;;  %274 = vst.msk [vmem:[#allocation2 + $0x68] sm:$0xff] %vm196_vm0, %v2782_v11  ;;  %v2794_v13 = vld [vmem:[%s2728_s13 + $0x78] sm:$0xff]  ;;  %v2797_v14 = vld [vmem:[%s2728_s13 + $0x80] sm:$0xff] }
  0x18   : > { %275 = vst.msk [vmem:[#allocation2 + $0x70] sm:$0xff] %vm196_vm0, %v2791_v12  ;;  %276 = vst.msk [vmem:[#allocation2 + $0x78] sm:$0xff] %vm196_vm0, %v2794_v13  ;;  %v2806_v15 = vld [vmem:[%s2728_s13 + $0x88] sm:$0xff]  ;;  %v2809_v16 = vld [vmem:[%s2728_s13 + $0x90] sm:$0xff] }
  0x19   : > { %277 = vst.msk [vmem:[#allocation2 + $0x80] sm:$0xff] %vm196_vm0, %v2797_v14  ;;  %v2812_v17 = vld [vmem:[%s2728_s13 + $0x98] sm:$0xff]  ;;  %278 = vst.msk [vmem:[#allocation2 + $0x88] sm:$0xff] %vm196_vm0, %v2806_v15  ;;  %v2821_v18 = vld [vmem:[%s2728_s13 + $0xa0] sm:$0xff] }
  0x1a   : > { %279 = vst.msk [vmem:[#allocation2 + $0x90] sm:$0xff] %vm196_vm0, %v2809_v16  ;;  %280 = vst.msk [vmem:[#allocation2 + $0x98] sm:$0xff] %vm196_vm0, %v2812_v17  ;;  %v2824_v19 = vld [vmem:[%s2728_s13 + $0xa8] sm:$0xff]  ;;  %v2827_v20 = vld [vmem:[%s2728_s13 + $0xb0] sm:$0xff] }
  0x1b   : > { %281 = vst.msk [vmem:[#allocation2 + $0xa0] sm:$0xff] %vm196_vm0, %v2821_v18  ;;  %282 = vst.msk [vmem:[#allocation2 + $0xa8] sm:$0xff] %vm196_vm0, %v2824_v19  ;;  %v2836_v21 = vld [vmem:[%s2728_s13 + $0xb8] sm:$0xff]  ;;  %v2839_v22 = vld [vmem:[%s2728_s13 + $0xc0] sm:$0xff] }
  0x1c   : > { %283 = vst.msk [vmem:[#allocation2 + $0xb0] sm:$0xff] %vm196_vm0, %v2827_v20  ;;  %v2842_v23 = vld [vmem:[%s2728_s13 + $0xc8] sm:$0xff]  ;;  %284 = vst.msk [vmem:[#allocation2 + $0xb8] sm:$0xff] %vm196_vm0, %v2836_v21  ;;  %v2851_v24 = vld [vmem:[%s2728_s13 + $0xd0] sm:$0xff] }
  0x1d   : > { %285 = vst.msk [vmem:[#allocation2 + $0xc0] sm:$0xff] %vm196_vm0, %v2839_v22  ;;  %286 = vst.msk [vmem:[#allocation2 + $0xc8] sm:$0xff] %vm196_vm0, %v2842_v23  ;;  %v2854_v25 = vld [vmem:[%s2728_s13 + $0xd8] sm:$0xff]  ;;  %v2857_v26 = vld [vmem:[%s2728_s13 + $0xe0] sm:$0xff] }
  0x1e   : > { %287 = vst.msk [vmem:[#allocation2 + $0xd0] sm:$0xff] %vm196_vm0, %v2851_v24  ;;  %288 = vst.msk [vmem:[#allocation2 + $0xd8] sm:$0xff] %vm196_vm0, %v2854_v25  ;;  %v2866_v27 = vld [vmem:[%s2728_s13 + $0xe8] sm:$0xff]  ;;  %v2869_v28 = vld [vmem:[%s2728_s13 + $0xf0] sm:$0xff] }
  0x1f   : > { %289 = vst.msk [vmem:[#allocation2 + $0xe0] sm:$0xff] %vm196_vm0, %v2857_v26  ;;  %v2872_v29 = vld [vmem:[%s2728_s13 + $0xf8] sm:$0xff]  ;;  %290 = vst.msk [vmem:[#allocation2 + $0xe8] sm:$0xff] %vm196_vm0, %v2866_v27  ;;  %v2881_v30 = vld [vmem:[%s2728_s13] sm:$0xff] }
  0x20   : > { %291 = vst.msk [vmem:[#allocation2 + $0xf0] sm:$0xff] %vm196_vm0, %v2869_v28  ;;  %292 = vst.msk [vmem:[#allocation2 + $0xf8] sm:$0xff] %vm196_vm0, %v2872_v29  ;;  %v2884_v31 = vld [vmem:[%s2728_s13 + $0x8] sm:$0xff]  ;;  %v295_v32 = vld [vmem:[#allocation2 + $0x10] sm:$0xff] }
  0x21   : > { %261 = vst.msk [vmem:[#allocation2] sm:$0xff] %vm196_vm0, %v2881_v30  ;;  %262 = vst.msk [vmem:[#allocation2 + $0x8] sm:$0xff] %vm196_vm0, %v2884_v31  ;;  %v356_v33 = vmax.f32 %v295_v32, %v2737_v2  ;;  %v296_v34 = vld [vmem:[#allocation2 + $0x18] sm:$0xff]  ;;  %v297_v35 = vld [vmem:[#allocation2 + $0x20] sm:$0xff] }
  0x22   : > { %v298_v36 = vld [vmem:[#allocation2 + $0x28] sm:$0xff]  ;;  %v357_v37 = vmax.f32 %v296_v34, %v2746_v3  ;;  %v358_v38 = vmax.f32 %v297_v35, %v2749_v4  ;;  %v299_v40 = vld [vmem:[#allocation2 + $0x30] sm:$0xff]  ;;  %v300_v41 = vld [vmem:[#allocation2 + $0x38] sm:$0xff] }
  0x23   : > { %v359_v39 = vmax.f32 %v298_v36, %v2752_v5  ;;  %v301_v42 = vld [vmem:[#allocation2 + $0x40] sm:$0xff]  ;;  %386 = vst.msk [vmem:[#allocation2 + $0x10] sm:$0xff] %vm196_vm0, %v356_v33  ;;  %v360_v43 = vmax.f32 %v299_v40, %v2761_v6  ;;  %v361_v44 = vmax.f32 %v300_v41, %v2764_v7  ;;  %v302_v46 = vld [vmem:[#allocation2 + $0x48] sm:$0xff]  ;;  %v303_v47 = vld [vmem:[#allocation2 + $0x50] sm:$0xff] }
  0x24   : > { %v362_v45 = vmax.f32 %v301_v42, %v2767_v8  ;;  %v304_v48 = vld [vmem:[#allocation2 + $0x58] sm:$0xff]  ;;  %387 = vst.msk [vmem:[#allocation2 + $0x18] sm:$0xff] %vm196_vm0, %v357_v37  ;;  %388 = vst.msk [vmem:[#allocation2 + $0x20] sm:$0xff] %vm196_vm0, %v358_v38  ;;  %v363_v49 = vmax.f32 %v302_v46, %v2776_v9  ;;  %v364_v50 = vmax.f32 %v303_v47, %v2779_v10  ;;  %v305_v52 = vld [vmem:[#allocation2 + $0x60] sm:$0xff] }
  0x25   : > { %389 = vst.msk [vmem:[#allocation2 + $0x28] sm:$0xff] %vm196_vm0, %v359_v39  ;;  %v365_v51 = vmax.f32 %v304_v48, %v2782_v11  ;;  %v306_v53 = vld [vmem:[#allocation2 + $0x68] sm:$0xff]  ;;  %v307_v54 = vld [vmem:[#allocation2 + $0x70] sm:$0xff]  ;;  %390 = vst.msk [vmem:[#allocation2 + $0x30] sm:$0xff] %vm196_vm0, %v360_v43  ;;  %v366_v55 = vmax.f32 %v305_v52, %v2791_v12 }
  0x26   : > { %391 = vst.msk [vmem:[#allocation2 + $0x38] sm:$0xff] %vm196_vm0, %v361_v44  ;;  %392 = vst.msk [vmem:[#allocation2 + $0x40] sm:$0xff] %vm196_vm0, %v362_v45  ;;  %v367_v56 = vmax.f32 %v306_v53, %v2794_v13  ;;  %v368_v57 = vmax.f32 %v307_v54, %v2797_v14  ;;  %v308_v58 = vld [vmem:[#allocation2 + $0x78] sm:$0xff]  ;;  %v309_v59 = vld [vmem:[#allocation2 + $0x80] sm:$0xff] }
  0x27   : > { %v310_v60 = vld [vmem:[#allocation2 + $0x88] sm:$0xff]  ;;  %393 = vst.msk [vmem:[#allocation2 + $0x48] sm:$0xff] %vm196_vm0, %v363_v49  ;;  %394 = vst.msk [vmem:[#allocation2 + $0x50] sm:$0xff] %vm196_vm0, %v364_v50  ;;  %v369_v61 = vmax.f32 %v308_v58, %v2806_v15  ;;  %v370_v62 = vmax.f32 %v309_v59, %v2809_v16  ;;  %v311_v32 = vld [vmem:[#allocation2 + $0x90] sm:$0xff] }
  0x28   : > { %395 = vst.msk [vmem:[#allocation2 + $0x58] sm:$0xff] %vm196_vm0, %v365_v51  ;;  %v371_v63 = vmax.f32 %v310_v60, %v2812_v17  ;;  %v312_v33 = vld [vmem:[#allocation2 + $0x98] sm:$0xff]  ;;  %v313_v34 = vld [vmem:[#allocation2 + $0xa0] sm:$0xff]  ;;  %396 = vst.msk [vmem:[#allocation2 + $0x60] sm:$0xff] %vm196_vm0, %v366_v55  ;;  %v372_v35 = vmax.f32 %v311_v32, %v2821_v18 }
  0x29   : > { %397 = vst.msk [vmem:[#allocation2 + $0x68] sm:$0xff] %vm196_vm0, %v367_v56  ;;  %398 = vst.msk [vmem:[#allocation2 + $0x70] sm:$0xff] %vm196_vm0, %v368_v57  ;;  %v373_v36 = vmax.f32 %v312_v33, %v2824_v19  ;;  %v374_v37 = vmax.f32 %v313_v34, %v2827_v20  ;;  %v314_v38 = vld [vmem:[#allocation2 + $0xa8] sm:$0xff]  ;;  %v315_v39 = vld [vmem:[#allocation2 + $0xb0] sm:$0xff] }
  0x2a   : > { %v316_v40 = vld [vmem:[#allocation2 + $0xb8] sm:$0xff]  ;;  %399 = vst.msk [vmem:[#allocation2 + $0x78] sm:$0xff] %vm196_vm0, %v369_v61  ;;  %400 = vst.msk [vmem:[#allocation2 + $0x80] sm:$0xff] %vm196_vm0, %v370_v62  ;;  %v375_v41 = vmax.f32 %v314_v38, %v2836_v21  ;;  %v376_v42 = vmax.f32 %v315_v39, %v2839_v22  ;;  %v317_v44 = vld [vmem:[#allocation2 + $0xc0] sm:$0xff] }
  0x2b   : > { %401 = vst.msk [vmem:[#allocation2 + $0x88] sm:$0xff] %vm196_vm0, %v371_v63  ;;  %v377_v43 = vmax.f32 %v316_v40, %v2842_v23  ;;  %v318_v45 = vld [vmem:[#allocation2 + $0xc8] sm:$0xff]  ;;  %v319_v46 = vld [vmem:[#allocation2 + $0xd0] sm:$0xff]  ;;  %402 = vst.msk [vmem:[#allocation2 + $0x90] sm:$0xff] %vm196_vm0, %v372_v35  ;;  %v378_v47 = vmax.f32 %v317_v44, %v2851_v24 }
  0x2c   : > { %403 = vst.msk [vmem:[#allocation2 + $0x98] sm:$0xff] %vm196_vm0, %v373_v36  ;;  %404 = vst.msk [vmem:[#allocation2 + $0xa0] sm:$0xff] %vm196_vm0, %v374_v37  ;;  %v379_v48 = vmax.f32 %v318_v45, %v2854_v25  ;;  %v380_v49 = vmax.f32 %v319_v46, %v2857_v26  ;;  %v320_v50 = vld [vmem:[#allocation2 + $0xd8] sm:$0xff]  ;;  %v321_v51 = vld [vmem:[#allocation2 + $0xe0] sm:$0xff] }
  0x2d   : > { %v322_v52 = vld [vmem:[#allocation2 + $0xe8] sm:$0xff]  ;;  %405 = vst.msk [vmem:[#allocation2 + $0xa8] sm:$0xff] %vm196_vm0, %v375_v41  ;;  %406 = vst.msk [vmem:[#allocation2 + $0xb0] sm:$0xff] %vm196_vm0, %v376_v42  ;;  %v381_v53 = vmax.f32 %v320_v50, %v2866_v27  ;;  %v382_v54 = vmax.f32 %v321_v51, %v2869_v28  ;;  %v443_v56 = vld [vmem:[#allocation2 + $0xf0] sm:$0xff] }
  0x2e   : > { %407 = vst.msk [vmem:[#allocation2 + $0xb8] sm:$0xff] %vm196_vm0, %v377_v43  ;;  %v383_v55 = vmax.f32 %v322_v52, %v2872_v29  ;;  %v444_v57 = vld [vmem:[#allocation2 + $0xf8] sm:$0xff]  ;;  %v293_v58 = vld [vmem:[#allocation2] sm:$0xff]  ;;  %408 = vst.msk [vmem:[#allocation2 + $0xc0] sm:$0xff] %vm196_vm0, %v378_v47  ;;  %v503_v59 = vmax.f32 %v443_v56, %v2857_v26 }
  0x2f   : > { %409 = vst.msk [vmem:[#allocation2 + $0xc8] sm:$0xff] %vm196_vm0, %v379_v48  ;;  %410 = vst.msk [vmem:[#allocation2 + $0xd0] sm:$0xff] %vm196_vm0, %v380_v49  ;;  %v504_v60 = vmax.f32 %v444_v57, %v2866_v27  ;;  %v354_v61 = vmax.f32 %v293_v58, %v2731_v0  ;;  %v294_v62 = vld [vmem:[#allocation2 + $0x8] sm:$0xff]  ;;  %v415_v63 = vld [vmem:[#allocation2 + $0x10] sm:$0xff] }
  0x30   : > { %v416_v32 = vld [vmem:[#allocation2 + $0x18] sm:$0xff]  ;;  %411 = vst.msk [vmem:[#allocation2 + $0xd8] sm:$0xff] %vm196_vm0, %v381_v53  ;;  %412 = vst.msk [vmem:[#allocation2 + $0xe0] sm:$0xff] %vm196_vm0, %v382_v54  ;;  %v355_v33 = vmax.f32 %v294_v62, %v2734_v1  ;;  %v475_v34 = vmax.f32 %v415_v63, %v2881_v30  ;;  %v417_v36 = vld [vmem:[#allocation2 + $0x20] sm:$0xff]  ;;  %v148_v63 = vlaneseq }
  0x31   : > { %413 = vst.msk [vmem:[#allocation2 + $0xe8] sm:$0xff] %vm196_vm0, %v383_v55  ;;  %v476_v35 = vmax.f32 %v416_v32, %v2884_v31  ;;  %v418_v37 = vld [vmem:[#allocation2 + $0x28] sm:$0xff]  ;;  %v419_v38 = vld [vmem:[#allocation2 + $0x30] sm:$0xff]  ;;  %533 = vst.msk [vmem:[#allocation2 + $0xf0] sm:$0xff] %vm196_vm0, %v503_v59  ;;  %v477_v39 = vmax.f32 %v417_v36, %v2731_v0 }
  0x32   : > { %534 = vst.msk [vmem:[#allocation2 + $0xf8] sm:$0xff] %vm196_vm0, %v504_v60  ;;  %384 = vst.msk [vmem:[#allocation2] sm:$0xff] %vm196_vm0, %v354_v61  ;;  %v478_v40 = vmax.f32 %v418_v37, %v2734_v1  ;;  %v479_v41 = vmax.f32 %v419_v38, %v2737_v2  ;;  %v420_v42 = vld [vmem:[#allocation2 + $0x38] sm:$0xff]  ;;  %v421_v43 = vld [vmem:[#allocation2 + $0x40] sm:$0xff] }
  0x33   : > { %v422_v44 = vld [vmem:[#allocation2 + $0x48] sm:$0xff]  ;;  %385 = vst.msk [vmem:[#allocation2 + $0x8] sm:$0xff] %vm196_vm0, %v355_v33  ;;  %505 = vst.msk [vmem:[#allocation2 + $0x10] sm:$0xff] %vm196_vm0, %v475_v34  ;;  %v480_v45 = vmax.f32 %v420_v42, %v2746_v3  ;;  %v481_v46 = vmax.f32 %v421_v43, %v2749_v4  ;;  %v423_v48 = vld [vmem:[#allocation2 + $0x50] sm:$0xff] }
  0x34   : > { %506 = vst.msk [vmem:[#allocation2 + $0x18] sm:$0xff] %vm196_vm0, %v476_v35  ;;  %v482_v47 = vmax.f32 %v422_v44, %v2752_v5  ;;  %v424_v49 = vld [vmem:[#allocation2 + $0x58] sm:$0xff]  ;;  %v425_v50 = vld [vmem:[#allocation2 + $0x60] sm:$0xff]  ;;  %507 = vst.msk [vmem:[#allocation2 + $0x20] sm:$0xff] %vm196_vm0, %v477_v39  ;;  %v483_v51 = vmax.f32 %v423_v48, %v2761_v6 }
  0x35   : > { %508 = vst.msk [vmem:[#allocation2 + $0x28] sm:$0xff] %vm196_vm0, %v478_v40  ;;  %509 = vst.msk [vmem:[#allocation2 + $0x30] sm:$0xff] %vm196_vm0, %v479_v41  ;;  %v484_v52 = vmax.f32 %v424_v49, %v2764_v7  ;;  %v485_v53 = vmax.f32 %v425_v50, %v2767_v8  ;;  %v426_v54 = vld [vmem:[#allocation2 + $0x68] sm:$0xff]  ;;  %v427_v55 = vld [vmem:[#allocation2 + $0x70] sm:$0xff] }
  0x36   : > { %v428_v56 = vld [vmem:[#allocation2 + $0x78] sm:$0xff]  ;;  %510 = vst.msk [vmem:[#allocation2 + $0x38] sm:$0xff] %vm196_vm0, %v480_v45  ;;  %511 = vst.msk [vmem:[#allocation2 + $0x40] sm:$0xff] %vm196_vm0, %v481_v46  ;;  %v486_v57 = vmax.f32 %v426_v54, %v2776_v9  ;;  %v487_v58 = vmax.f32 %v427_v55, %v2779_v10  ;;  %v429_v60 = vld [vmem:[#allocation2 + $0x80] sm:$0xff] }
  0x37   : > { %512 = vst.msk [vmem:[#allocation2 + $0x48] sm:$0xff] %vm196_vm0, %v482_v47  ;;  %v488_v59 = vmax.f32 %v428_v56, %v2782_v11  ;;  %v430_v61 = vld [vmem:[#allocation2 + $0x88] sm:$0xff]  ;;  %v431_v62 = vld [vmem:[#allocation2 + $0x90] sm:$0xff]  ;;  %513 = vst.msk [vmem:[#allocation2 + $0x50] sm:$0xff] %vm196_vm0, %v483_v51  ;;  %v489_v32 = vmax.f32 %v429_v60, %v2791_v12  ;;  %v3000_v56 = vshrl.u32 %v148_v63, 7 }
  0x38   : > { %514 = vst.msk [vmem:[#allocation2 + $0x58] sm:$0xff] %vm196_vm0, %v484_v52  ;;  %515 = vst.msk [vmem:[#allocation2 + $0x60] sm:$0xff] %vm196_vm0, %v485_v53  ;;  %v490_v33 = vmax.f32 %v430_v61, %v2794_v13  ;;  %v491_v34 = vmax.f32 %v431_v62, %v2797_v14  ;;  %v432_v35 = vld [vmem:[#allocation2 + $0x98] sm:$0xff]  ;;  %v433_v36 = vld [vmem:[#allocation2 + $0xa0] sm:$0xff] }
  0x39   : > { %v434_v37 = vld [vmem:[#allocation2 + $0xa8] sm:$0xff]  ;;  %516 = vst.msk [vmem:[#allocation2 + $0x68] sm:$0xff] %vm196_vm0, %v486_v57  ;;  %517 = vst.msk [vmem:[#allocation2 + $0x70] sm:$0xff] %vm196_vm0, %v487_v58  ;;  %v492_v38 = vmax.f32 %v432_v35, %v2806_v15  ;;  %v493_v39 = vmax.f32 %v433_v36, %v2809_v16  ;;  %v435_v41 = vld [vmem:[#allocation2 + $0xb0] sm:$0xff]  ;;  %vm825_vm1 = vcmp.lt.s32.totalorder %v3000_v56, 7  ;;  %vm958_vm2 = vcmp.lt.s32.totalorder %v3000_v56, 1 }
  0x3a   : > { %518 = vst.msk [vmem:[#allocation2 + $0x78] sm:$0xff] %vm196_vm0, %v488_v59  ;;  %v494_v40 = vmax.f32 %v434_v37, %v2812_v17  ;;  %v436_v42 = vld [vmem:[#allocation2 + $0xb8] sm:$0xff]  ;;  %v437_v43 = vld [vmem:[#allocation2 + $0xc0] sm:$0xff]  ;;  %519 = vst.msk [vmem:[#allocation2 + $0x80] sm:$0xff] %vm196_vm0, %v489_v32  ;;  %v495_v44 = vmax.f32 %v435_v41, %v2821_v18  ;;  %vm1091_vm4 = vcmp.lt.s32.totalorder %v3000_v56, 6  ;;  %vm1224_vm5 = vcmp.lt.s32.totalorder %v3000_v56, 2 }
  0x3b   : > { %520 = vst.msk [vmem:[#allocation2 + $0x88] sm:$0xff] %vm196_vm0, %v490_v33  ;;  %521 = vst.msk [vmem:[#allocation2 + $0x90] sm:$0xff] %vm196_vm0, %v491_v34  ;;  %v496_v45 = vmax.f32 %v436_v42, %v2824_v19  ;;  %v497_v46 = vmax.f32 %v437_v43, %v2827_v20  ;;  %v438_v47 = vld [vmem:[#allocation2 + $0xc8] sm:$0xff]  ;;  %v439_v48 = vld [vmem:[#allocation2 + $0xd0] sm:$0xff]  ;;  %v3021_v43 = vadd.s32 8, %v3000_v56  ;;  %vm153_vm6 = vcmp.ge.s32.totalorder %v3000_v56, 1 }
  0x3c   : > { %v440_v49 = vld [vmem:[#allocation2 + $0xd8] sm:$0xff]  ;;  %522 = vst.msk [vmem:[#allocation2 + $0x98] sm:$0xff] %vm196_vm0, %v492_v38  ;;  %523 = vst.msk [vmem:[#allocation2 + $0xa0] sm:$0xff] %vm196_vm0, %v493_v39  ;;  %v498_v50 = vmax.f32 %v438_v47, %v2836_v21  ;;  %v499_v51 = vmax.f32 %v439_v48, %v2839_v22  ;;  %v441_v53 = vld [vmem:[#allocation2 + $0xe0] sm:$0xff]  ;;  %vm157_vm8 = vcmp.ge.s32.totalorder %v3000_v56, 2  ;;  %vm1873_vm9 = vcmp.lt.s32.totalorder %v3000_v56, 4 }
  0x3d   : > { %524 = vst.msk [vmem:[#allocation2 + $0xa8] sm:$0xff] %vm196_vm0, %v494_v40  ;;  %v500_v52 = vmax.f32 %v440_v49, %v2842_v23  ;;  %v442_v54 = vld [vmem:[#allocation2 + $0xe8] sm:$0xff]  ;;  %v675_v55 = vld [vmem:[#allocation2 + $0xf0] sm:$0xff]  ;;  %525 = vst.msk [vmem:[#allocation2 + $0xb0] sm:$0xff] %vm196_vm0, %v495_v44  ;;  %v501_v57 = vmax.f32 %v441_v53, %v2851_v24  ;;  %vm152_vm3 = vcmp.lt.s32.totalorder %v3021_v43, 15  ;;  %vm156_vm7 = vcmp.lt.s32.totalorder %v3021_v43, 14 }
  0x3e   : > { %526 = vst.msk [vmem:[#allocation2 + $0xb8] sm:$0xff] %vm196_vm0, %v496_v45  ;;  %527 = vst.msk [vmem:[#allocation2 + $0xc0] sm:$0xff] %vm196_vm0, %v497_v46  ;;  %v502_v58 = vmax.f32 %v442_v54, %v2854_v25  ;;  %v731_v59 = vmax.f32 %v675_v55, %v2851_v24  ;;  %v676_v60 = vld [vmem:[#allocation2 + $0xf8] sm:$0xff]  ;;  %v535_v61 = vld [vmem:[#allocation2] sm:$0xff]  ;;  %vm161_vm10 = vcmp.ge.s32.totalorder %v3000_v56, 4  ;;  %vm160_vm11 = vcmp.lt.s32.totalorder %v3021_v43, 12 }
  0x3f   : > { %v536_v62 = vld [vmem:[#allocation2 + $0x8] sm:$0xff]  ;;  %528 = vst.msk [vmem:[#allocation2 + $0xc8] sm:$0xff] %vm196_vm0, %v498_v50  ;;  %529 = vst.msk [vmem:[#allocation2 + $0xd0] sm:$0xff] %vm196_vm0, %v499_v51  ;;  %v732_v63 = vmax.f32 %v676_v60, %v2854_v25  ;;  %v592_v32 = vmax.f32 %v535_v61, %v2737_v2  ;;  %v537_v34 = vld [vmem:[#allocation2 + $0x10] sm:$0xff] }
  0x40   : > { %530 = vst.msk [vmem:[#allocation2 + $0xd8] sm:$0xff] %vm196_vm0, %v500_v52  ;;  %v593_v33 = vmax.f32 %v536_v62, %v2746_v3  ;;  %v538_v35 = vld [vmem:[#allocation2 + $0x18] sm:$0xff]  ;;  %v539_v36 = vld [vmem:[#allocation2 + $0x20] sm:$0xff]  ;;  %531 = vst.msk [vmem:[#allocation2 + $0xe0] sm:$0xff] %vm196_vm0, %v501_v57  ;;  %v594_v37 = vmax.f32 %v537_v34, %v2749_v4 }
  0x41   : > { %532 = vst.msk [vmem:[#allocation2 + $0xe8] sm:$0xff] %vm196_vm0, %v502_v58  ;;  %759 = vst.msk [vmem:[#allocation2 + $0xf0] sm:$0xff] %vm196_vm0, %v731_v59  ;;  %v595_v38 = vmax.f32 %v538_v35, %v2752_v5  ;;  %v596_v39 = vmax.f32 %v539_v36, %v2761_v6  ;;  %v540_v40 = vld [vmem:[#allocation2 + $0x28] sm:$0xff]  ;;  %v541_v41 = vld [vmem:[#allocation2 + $0x30] sm:$0xff] }
  0x42   : > { %v542_v42 = vld [vmem:[#allocation2 + $0x38] sm:$0xff]  ;;  %760 = vst.msk [vmem:[#allocation2 + $0xf8] sm:$0xff] %vm196_vm0, %v732_v63  ;;  %620 = vst.msk [vmem:[#allocation2] sm:$0xff] %vm196_vm0, %v592_v32  ;;  %v597_v44 = vmax.f32 %v540_v40, %v2764_v7  ;;  %v598_v45 = vmax.f32 %v541_v41, %v2767_v8  ;;  %v543_v47 = vld [vmem:[#allocation2 + $0x40] sm:$0xff] }
  0x43   : > { %621 = vst.msk [vmem:[#allocation2 + $0x8] sm:$0xff] %vm196_vm0, %v593_v33  ;;  %v599_v46 = vmax.f32 %v542_v42, %v2776_v9  ;;  %v544_v48 = vld [vmem:[#allocation2 + $0x48] sm:$0xff]  ;;  %v545_v49 = vld [vmem:[#allocation2 + $0x50] sm:$0xff]  ;;  %622 = vst.msk [vmem:[#allocation2 + $0x10] sm:$0xff] %vm196_vm0, %v594_v37  ;;  %v600_v50 = vmax.f32 %v543_v47, %v2779_v10 }
  0x44   : > { %623 = vst.msk [vmem:[#allocation2 + $0x18] sm:$0xff] %vm196_vm0, %v595_v38  ;;  %624 = vst.msk [vmem:[#allocation2 + $0x20] sm:$0xff] %vm196_vm0, %v596_v39  ;;  %v601_v51 = vmax.f32 %v544_v48, %v2782_v11  ;;  %v602_v52 = vmax.f32 %v545_v49, %v2791_v12  ;;  %v546_v53 = vld [vmem:[#allocation2 + $0x58] sm:$0xff]  ;;  %v547_v54 = vld [vmem:[#allocation2 + $0x60] sm:$0xff] }
  0x45   : > { %v548_v55 = vld [vmem:[#allocation2 + $0x68] sm:$0xff]  ;;  %625 = vst.msk [vmem:[#allocation2 + $0x28] sm:$0xff] %vm196_vm0, %v597_v44  ;;  %626 = vst.msk [vmem:[#allocation2 + $0x30] sm:$0xff] %vm196_vm0, %v598_v45  ;;  %v603_v57 = vmax.f32 %v546_v53, %v2794_v13  ;;  %v604_v58 = vmax.f32 %v547_v54, %v2797_v14  ;;  %v549_v60 = vld [vmem:[#allocation2 + $0x70] sm:$0xff] }
  0x46   : > { %627 = vst.msk [vmem:[#allocation2 + $0x38] sm:$0xff] %vm196_vm0, %v599_v46  ;;  %v605_v59 = vmax.f32 %v548_v55, %v2806_v15  ;;  %v550_v61 = vld [vmem:[#allocation2 + $0x78] sm:$0xff]  ;;  %v551_v62 = vld [vmem:[#allocation2 + $0x80] sm:$0xff]  ;;  %628 = vst.msk [vmem:[#allocation2 + $0x40] sm:$0xff] %vm196_vm0, %v600_v50  ;;  %v606_v63 = vmax.f32 %v549_v60, %v2809_v16  ;;  %v3063_v50 = vsub.s32 0, %v3000_v56 }
  0x47   : > { %629 = vst.msk [vmem:[#allocation2 + $0x48] sm:$0xff] %vm196_vm0, %v601_v51  ;;  %630 = vst.msk [vmem:[#allocation2 + $0x50] sm:$0xff] %vm196_vm0, %v602_v52  ;;  %v607_v32 = vmax.f32 %v550_v61, %v2812_v17  ;;  %v608_v33 = vmax.f32 %v551_v62, %v2821_v18  ;;  %v552_v34 = vld [vmem:[#allocation2 + $0x88] sm:$0xff]  ;;  %v553_v35 = vld [vmem:[#allocation2 + $0x90] sm:$0xff] }
  0x48   : > { %v554_v36 = vld [vmem:[#allocation2 + $0x98] sm:$0xff]  ;;  %631 = vst.msk [vmem:[#allocation2 + $0x58] sm:$0xff] %vm196_vm0, %v603_v57  ;;  %632 = vst.msk [vmem:[#allocation2 + $0x60] sm:$0xff] %vm196_vm0, %v604_v58  ;;  %v609_v37 = vmax.f32 %v552_v34, %v2824_v19  ;;  %v610_v38 = vmax.f32 %v553_v35, %v2827_v20  ;;  %v555_v40 = vld [vmem:[#allocation2 + $0xa0] sm:$0xff]  ;;  %v3075_v57 = vsub.s32 7, %v3000_v56 }
  0x49   : > { %633 = vst.msk [vmem:[#allocation2 + $0x68] sm:$0xff] %vm196_vm0, %v605_v59  ;;  %v611_v39 = vmax.f32 %v554_v36, %v2836_v21  ;;  %v556_v41 = vld [vmem:[#allocation2 + $0xa8] sm:$0xff]  ;;  %v557_v42 = vld [vmem:[#allocation2 + $0xb0] sm:$0xff]  ;;  %634 = vst.msk [vmem:[#allocation2 + $0x70] sm:$0xff] %vm196_vm0, %v606_v63  ;;  %v612_v44 = vmax.f32 %v555_v40, %v2839_v22 }
  0x4a   : > { %635 = vst.msk [vmem:[#allocation2 + $0x78] sm:$0xff] %vm196_vm0, %v607_v32  ;;  %636 = vst.msk [vmem:[#allocation2 + $0x80] sm:$0xff] %vm196_vm0, %v608_v33  ;;  %v613_v45 = vmax.f32 %v556_v41, %v2842_v23  ;;  %v614_v46 = vmax.f32 %v557_v42, %v2851_v24  ;;  %v558_v47 = vld [vmem:[#allocation2 + $0xb8] sm:$0xff]  ;;  %v559_v48 = vld [vmem:[#allocation2 + $0xc0] sm:$0xff] }
  0x4b   : > { %v560_v49 = vld [vmem:[#allocation2 + $0xc8] sm:$0xff]  ;;  %v3065_v51 = vld [vmem:[#allocation2 + $0xf0] sm:$0xff]  ;;  %637 = vst.msk [vmem:[#allocation2 + $0x88] sm:$0xff] %vm196_vm0, %v609_v37  ;;  %638 = vst.msk [vmem:[#allocation2 + $0x90] sm:$0xff] %vm196_vm0, %v610_v38  ;;  %v615_v52 = vmax.f32 %v558_v47, %v2854_v25  ;;  %v616_v24 = vmax.f32 %v559_v48, %v2857_v26 }
  0x4c   : > { %639 = vst.msk [vmem:[#allocation2 + $0x98] sm:$0xff] %vm196_vm0, %v611_v39  ;;  %v617_v53 = vmax.f32 %v560_v49, %v2866_v27  ;;  %v561_v54 = vld [vmem:[#allocation2 + $0xd0] sm:$0xff]  ;;  %v562_v55 = vld [vmem:[#allocation2 + $0xd8] sm:$0xff]  ;;  %v808_v58 = vrot.slane %v3065_v51, 1  ;;  %v941_v59 = vrot.slane %v3065_v51, 7  ;;  %640 = vst.msk [vmem:[#allocation2 + $0xa0] sm:$0xff] %vm196_vm0, %v612_v44 }
  0x4d   : > { %v3079_v60 = vld [vmem:[#allocation2 + $0xf8] sm:$0xff]  ;;  %641 = vst.msk [vmem:[#allocation2 + $0xa8] sm:$0xff] %vm196_vm0, %v613_v45  ;;  %642 = vst.msk [vmem:[#allocation2 + $0xb0] sm:$0xff] %vm196_vm0, %v614_v46  ;;  %v618_v25 = vmax.f32 %v561_v54, %v2869_v28  ;;  %v619_v26 = vmax.f32 %v562_v55, %v2872_v29  ;;  %v673_v27 = vld [vmem:[#allocation2 + $0xe0] sm:$0xff]  ;;  %v1074_v34 = vrot.slane %v3065_v51, 2  ;;  %v1207_v38 = vrot.slane %v3065_v51, 6 }
  0x4e   : > { %v824_v61 = vrot.slane %v3079_v60, 1  ;;  %v957_v62 = vrot.slane %v3079_v60, 7  ;;  %643 = vst.msk [vmem:[#allocation2 + $0xb8] sm:$0xff] %vm196_vm0, %v615_v52  ;;  %644 = vst.msk [vmem:[#allocation2 + $0xc0] sm:$0xff] %vm196_vm0, %v616_v24  ;;  %v729_v63 = vmax.f32 %v673_v27, %v2839_v22  ;;  %v674_v32 = vld [vmem:[#allocation2 + $0xe8] sm:$0xff]  ;;  %v649_v33 = vld [vmem:[#allocation2 + $0x20] sm:$0xff] }
  0x4f   : > { %645 = vst.msk [vmem:[#allocation2 + $0xc8] sm:$0xff] %vm196_vm0, %v617_v53  ;;  %646 = vst.msk [vmem:[#allocation2 + $0xd0] sm:$0xff] %vm196_vm0, %v618_v25  ;;  %v730_v28 = vmax.f32 %v674_v32, %v2842_v23  ;;  %v705_v29 = vmax.f32 %v649_v33, %v2881_v30  ;;  %v650_v35 = vld [vmem:[#allocation2 + $0x28] sm:$0xff]  ;;  %v651_v36 = vld [vmem:[#allocation2 + $0x30] sm:$0xff]  ;;  %v1090_v22 = vrot.slane %v3079_v60, 2 }
  0x50   : > { %647 = vst.msk [vmem:[#allocation2 + $0xd8] sm:$0xff] %vm196_vm0, %v619_v26  ;;  %v652_v37 = vld [vmem:[#allocation2 + $0x38] sm:$0xff]  ;;  %v857_v23 = vsel %vm825_vm1, %v824_v61, %v808_v58  ;;  %v974_v30 = vsel %vm958_vm2, %v941_v59, %v957_v62  ;;  %757 = vst.msk [vmem:[#allocation2 + $0xe0] sm:$0xff] %vm196_vm0, %v729_v63  ;;  %v706_v39 = vmax.f32 %v650_v35, %v2884_v31  ;;  %v653_v41 = vld [vmem:[#allocation2 + $0x40] sm:$0xff] }
  0x51   : > { %v707_v40 = vmax.f32 %v651_v36, %v2731_v0  ;;  %v654_v42 = vld [vmem:[#allocation2 + $0x48] sm:$0xff]  ;;  %v655_v44 = vld [vmem:[#allocation2 + $0x50] sm:$0xff]  ;;  %v889_v45 = vmax.f32 %v3079_v60, %v857_v23  ;;  %758 = vst.msk [vmem:[#allocation2 + $0xe8] sm:$0xff] %vm196_vm0, %v730_v28  ;;  %733 = vst.msk [vmem:[#allocation2 + $0x20] sm:$0xff] %vm196_vm0, %v705_v29  ;;  %v708_v46 = vmax.f32 %v652_v37, %v2734_v1 }
  0x52   : > { %v709_v47 = vmax.f32 %v653_v41, %v2737_v2  ;;  %v710_v48 = vmax.f32 %v654_v42, %v2746_v3  ;;  %v656_v49 = vld [vmem:[#allocation2 + $0x58] sm:$0xff]  ;;  %v657_v52 = vld [vmem:[#allocation2 + $0x60] sm:$0xff]  ;;  %v658_v31 = vld [vmem:[#allocation2 + $0x68] sm:$0xff]  ;;  %734 = vst.msk [vmem:[#allocation2 + $0x28] sm:$0xff] %vm196_vm0, %v706_v39  ;;  %v711_v0 = vmax.f32 %v655_v44, %v2749_v4 }
  0x53   : > { %735 = vst.msk [vmem:[#allocation2 + $0x30] sm:$0xff] %vm196_vm0, %v707_v40  ;;  %v712_v24 = vmax.f32 %v656_v49, %v2752_v5  ;;  %v713_v53 = vmax.f32 %v657_v52, %v2761_v6  ;;  %v714_v54 = vmax.f32 %v658_v31, %v2764_v7  ;;  %v659_v1 = vld [vmem:[#allocation2 + $0x70] sm:$0xff]  ;;  %v660_v55 = vld [vmem:[#allocation2 + $0x78] sm:$0xff]  ;;  %v661_v2 = vld [vmem:[#allocation2 + $0x80] sm:$0xff]  ;;  %v925_v3 = vsel %vm152_vm3, %v889_v45, %v3079_v60 }
  0x54   : > { %736 = vst.msk [vmem:[#allocation2 + $0x38] sm:$0xff] %vm196_vm0, %v708_v46  ;;  %737 = vst.msk [vmem:[#allocation2 + $0x40] sm:$0xff] %vm196_vm0, %v709_v47  ;;  %v715_v4 = vmax.f32 %v659_v1, %v2767_v8  ;;  %v716_v5 = vmax.f32 %v660_v55, %v2776_v9  ;;  %v717_v6 = vmax.f32 %v661_v2, %v2779_v10  ;;  %v662_v7 = vld [vmem:[#allocation2 + $0x88] sm:$0xff]  ;;  %v663_v25 = vld [vmem:[#allocation2 + $0x90] sm:$0xff] }
  0x55   : > { %738 = vst.msk [vmem:[#allocation2 + $0x48] sm:$0xff] %vm196_vm0, %v710_v48  ;;  %v664_v26 = vld [vmem:[#allocation2 + $0x98] sm:$0xff]  ;;  %v3139_v27 = vmax.f32 %v925_v3, %v974_v30  ;;  %v3141_v63 = vld [vmem:[#allocation2 + $0x8] sm:$0xff]  ;;  %739 = vst.msk [vmem:[#allocation2 + $0x50] sm:$0xff] %vm196_vm0, %v711_v0  ;;  %v718_v8 = vmax.f32 %v662_v7, %v2782_v11  ;;  %v719_v9 = vmax.f32 %v663_v25, %v2791_v12 }
  0x56   : > { %740 = vst.msk [vmem:[#allocation2 + $0x58] sm:$0xff] %vm196_vm0, %v712_v24  ;;  %741 = vst.msk [vmem:[#allocation2 + $0x60] sm:$0xff] %vm196_vm0, %v713_v53  ;;  %v720_v10 = vmax.f32 %v664_v26, %v2794_v13  ;;  %v665_v32 = vld [vmem:[#allocation2 + $0xa0] sm:$0xff]  ;;  %v666_v33 = vld [vmem:[#allocation2 + $0xa8] sm:$0xff]  ;;  %v841_v13 = vsel %vm825_vm1, %v808_v58, %v824_v61  ;;  %v1107_v58 = vsel %vm1091_vm4, %v1074_v34, %v1090_v22  ;;  %v809_v41 = vrot.slane %v3141_v63, 1 }
  0x57   : > { %742 = vst.msk [vmem:[#allocation2 + $0x68] sm:$0xff] %vm196_vm0, %v714_v54  ;;  %v667_v28 = vld [vmem:[#allocation2 + $0xb0] sm:$0xff]  ;;  %743 = vst.msk [vmem:[#allocation2 + $0x70] sm:$0xff] %vm196_vm0, %v715_v4  ;;  %v721_v29 = vmax.f32 %v665_v32, %v2797_v14  ;;  %v722_v35 = vmax.f32 %v666_v33, %v2806_v15  ;;  %v668_v11 = vld [vmem:[#allocation2 + $0xb8] sm:$0xff]  ;;  %v888_v39 = vmax.f32 %v3065_v51, %v841_v13  ;;  %v942_v44 = vrot.slane %v3141_v63, 7 }
  0x58   : > { %744 = vst.msk [vmem:[#allocation2 + $0x78] sm:$0xff] %vm196_vm0, %v716_v5  ;;  %745 = vst.msk [vmem:[#allocation2 + $0x80] sm:$0xff] %vm196_vm0, %v717_v6  ;;  %v723_v36 = vmax.f32 %v667_v28, %v2809_v16  ;;  %v669_v37 = vld [vmem:[#allocation2 + $0xc0] sm:$0xff]  ;;  %v670_v12 = vld [vmem:[#allocation2 + $0xc8] sm:$0xff]  ;;  %v724_v14 = vmax.f32 %v668_v11, %v2812_v17  ;;  %v1075_v0 = vrot.slane %v3141_v63, 2  ;;  %v1208_v54 = vrot.slane %v3141_v63, 6 }
  0x59   : > { %746 = vst.msk [vmem:[#allocation2 + $0x88] sm:$0xff] %vm196_vm0, %v718_v8  ;;  %747 = vst.msk [vmem:[#allocation2 + $0x90] sm:$0xff] %vm196_vm0, %v719_v9  ;;  %v725_v15 = vmax.f32 %v669_v37, %v2821_v18  ;;  %v726_v16 = vmax.f32 %v670_v12, %v2824_v19  ;;  %v671_v23 = vld [vmem:[#allocation2 + $0xd0] sm:$0xff]  ;;  %v672_v30 = vld [vmem:[#allocation2 + $0xd8] sm:$0xff]  ;;  %v990_v19 = vsel %vm958_vm2, %v957_v62, %v941_v59  ;;  %v1223_v59 = vrot.slane %v3079_v60, 6 }
  0x5a   : > { %748 = vst.msk [vmem:[#allocation2 + $0x98] sm:$0xff] %vm196_vm0, %v720_v10  ;;  %v3169_v40 = vld [vmem:[#allocation2] sm:$0xff]  ;;  %749 = vst.msk [vmem:[#allocation2 + $0xa0] sm:$0xff] %vm196_vm0, %v721_v29  ;;  %v727_v17 = vmax.f32 %v671_v23, %v2827_v20  ;;  %v728_v18 = vmax.f32 %v672_v30, %v2836_v21  ;;  %v1021_v20 = vmax.f32 %v888_v39, %v990_v19  ;;  %v3222_v47 = vld [vmem:[#allocation2 + $0x10] sm:$0xff] }
  0x5b   : > { %750 = vst.msk [vmem:[#allocation2 + $0xa8] sm:$0xff] %vm196_vm0, %v722_v35  ;;  %751 = vst.msk [vmem:[#allocation2 + $0xb0] sm:$0xff] %vm196_vm0, %v723_v36  ;;  %v1123_v21 = vsel %vm1091_vm4, %v1090_v22, %v1074_v34  ;;  %v793_v61 = vrot.slane %v3169_v40, 1  ;;  %v926_v42 = vrot.slane %v3169_v40, 7  ;;  %v3209_v34 = vld [vmem:[#allocation2 + $0x18] sm:$0xff]  ;;  %v1240_v22 = vsel %vm1224_vm5, %v1207_v38, %v1223_v59  ;;  %v3298_v35 = vld [vmem:[#allocation2 + $0xe8] sm:$0xff] }
  0x5c   : > { %752 = vst.msk [vmem:[#allocation2 + $0xb8] sm:$0xff] %vm196_vm0, %v724_v14  ;;  %753 = vst.msk [vmem:[#allocation2 + $0xc0] sm:$0xff] %vm196_vm0, %v725_v15  ;;  %v1155_v62 = vmax.f32 %v3139_v27, %v1123_v21  ;;  %v1057_v60 = vsel %vm153_vm6, %v1021_v20, %v888_v39  ;;  %v1256_v45 = vsel %vm1224_vm5, %v1223_v59, %v1207_v38  ;;  %v1059_v46 = vrot.slane %v3169_v40, 2  ;;  %v789_v13 = vld [vmem:[#allocation2 + $0xe0] sm:$0xff] }
  0x5d   : > { %754 = vst.msk [vmem:[#allocation2 + $0xc8] sm:$0xff] %vm196_vm0, %v726_v16  ;;  %755 = vst.msk [vmem:[#allocation2 + $0xd0] sm:$0xff] %vm196_vm0, %v727_v17  ;;  %v1154_v48 = vmax.f32 %v1057_v60, %v1107_v58  ;;  %v842_v52 = vsel %vm825_vm1, %v809_v41, %v793_v61  ;;  %v959_v51 = vsel %vm958_vm2, %v926_v42, %v942_v44  ;;  %v1192_v24 = vrot.slane %v3169_v40, 6 }
  0x5e   : > { %756 = vst.msk [vmem:[#allocation2 + $0xd8] sm:$0xff] %vm196_vm0, %v728_v18  ;;  %v1191_v49 = vsel %vm156_vm7, %v1155_v62, %v3139_v27  ;;  %v859_v31 = vmax.f32 %v3141_v63, %v842_v52  ;;  %v794_v1 = vrot.slane %v3222_v47, 1  ;;  %v810_v55 = vrot.slane %v3209_v34, 1 }
  0x5f   : > { %v3239_v38 = vmax.f32 %v1191_v49, %v1240_v22  ;;  %v1287_v53 = vmax.f32 %v1154_v48, %v1256_v45  ;;  %v1108_v5 = vsel %vm1091_vm4, %v1075_v0, %v1059_v46  ;;  %v1225_v25 = vsel %vm1224_vm5, %v1192_v24, %v1208_v54 }
  0x60   : > { %v895_v4 = vsel %vm152_vm3, %v859_v31, %v3141_v63  ;;  %v843_v26 = vsel %vm825_vm1, %v810_v55, %v794_v1  ;;  %v927_v10 = vrot.slane %v3222_v47, 7  ;;  %v943_v33 = vrot.slane %v3209_v34, 7 }
  0x61   : > { %v1872_v2 = vrot.slane %v3239_v38, 4  ;;  %2481 = vst.msk [vmem:[%s3247_s17 + $0x2f8] sm:$0xff] %vm196_vm0, %v3239_v38  ;;  %v3258_v3 = vrot.slane %v3239_v38, %v3075_v57  ;;  %v3271_v6 = vsel %vm157_vm8, %v1287_v53, %v1154_v48  ;;  %v992_v7 = vmax.f32 %v895_v4, %v959_v51 }
  0x62   : > { %v3287_v27 = vrot.slane %v3271_v6, %v3063_v50  ;;  %v1856_v8 = vrot.slane %v3271_v6, 4  ;;  %2480 = vst.msk [vmem:[%s3247_s17 + $0x2f0] sm:$0xff] %vm196_vm0, %v3271_v6  ;;  %v861_v9 = vmax.f32 %v3209_v34, %v843_v26  ;;  %v1060_v28 = vrot.slane %v3222_v47, 2 }
  0x63   : > { %v1125_v32 = vmax.f32 %v992_v7, %v1108_v5  ;;  %v1076_v29 = vrot.slane %v3209_v34, 2  ;;  %v1193_v12 = vrot.slane %v3222_v47, 6  ;;  %v960_v23 = vsel %vm958_vm2, %v927_v10, %v943_v33 }
  0x64   : > { %v1889_v36 = vsel %vm1873_vm9, %v1856_v8, %v1872_v2  ;;  %v1905_v11 = vsel %vm1873_vm9, %v1872_v2, %v1856_v8  ;;  %v897_v37 = vsel %vm152_vm3, %v861_v9, %v3209_v34  ;;  %v1209_v58 = vrot.slane %v3209_v34, 6 }
  0x65   : > { %v1940_v14 = vsel %vm161_vm10, %v1905_v11, %v3287_v27  ;;  %v1977_v15 = vsel %vm160_vm11, %v1905_v11, %v3258_v3  ;;  %v1161_v16 = vsel %vm156_vm7, %v1125_v32, %v992_v7  ;;  %v994_v18 = vmax.f32 %v897_v37, %v960_v23 }
  0x66   : > { %v2008_v30 = vmax.f32 %v1940_v14, %v1889_v36  ;;  %v2009_v39 = vmax.f32 %v1889_v36, %v1977_v15  ;;  %v3318_v17 = vmax.f32 %v1161_v16, %v1225_v25  ;;  %v1109_v19 = vsel %vm1091_vm4, %v1076_v29, %v1060_v28 }
  0x67   : > { %v807_v20 = vrot.slane %v789_v13, 1  ;;  %v823_v21 = vrot.slane %v3298_v35, 1  ;;  %v1127_v60 = vmax.f32 %v994_v18, %v1109_v19  ;;  %v940_v22 = vrot.slane %v789_v13, 7 }
  0x68   : > { %5366 = vst [vmem:[#allocation3_spill] sm:$0xff] %v3318_v17  ;;  %v3325_v59 = vmax.f32 %v3271_v6, %v2008_v30  ;;  %v3328_v62 = vmax.f32 %v3239_v38, %v2009_v39  ;;  %2451 = vst.msk [vmem:[%s3247_s17 + $0x208] sm:$0xff] %vm196_vm0, %v3318_v17  ;;  %v1226_v45 = vsel %vm1224_vm5, %v1193_v12, %v1209_v58  ;;  %v956_v49 = vrot.slane %v3298_v35, 7 }
  0x69   : > { %v856_v48 = vsel %vm825_vm1, %v823_v21, %v807_v20  ;;  %v1073_v52 = vrot.slane %v789_v13, 2  ;;  %v1163_v51 = vsel %vm156_vm7, %v1127_v60, %v994_v18  ;;  %v1089_v53 = vrot.slane %v3298_v35, 2 }
  0x6a   : > { %5367 = vst [vmem:[#allocation4_spill] sm:$0xff] %v3325_v59  ;;  %5368 = vst [vmem:[#allocation5_spill] sm:$0xff] %v3328_v62  ;;  %v887_v31 = vmax.f32 %v3298_v35, %v856_v48  ;;  %v1206_v2 = vrot.slane %v789_v13, 6  ;;  %v3348_v4 = vmax.f32 %v1163_v51, %v1226_v45  ;;  %v973_v5 = vsel %vm958_vm2, %v940_v22, %v956_v49 }
  0x6b   : > { %2072 = vst.msk [vmem:[%s3247_s17 + $0xf0] sm:$0xff] %vm196_vm0, %v3325_v59  ;;  %2073 = vst.msk [vmem:[%s3247_s17 + $0xf8] sm:$0xff] %vm196_vm0, %v3328_v62  ;;  %v1222_v7 = vrot.slane %v3298_v35, 6  ;;  %v826_v25 = vsel %vm825_vm1, %v793_v61, %v809_v41  ;;  %v1122_v8 = vsel %vm1091_vm4, %v1089_v53, %v1073_v52  ;;  %v975_v32 = vsel %vm958_vm2, %v942_v44, %v926_v42 }
  0x6c   : > { %5369 = vst [vmem:[#allocation6_spill] sm:$0xff] %v3348_v4  ;;  %v923_v26 = vsel %vm152_vm3, %v887_v31, %v3298_v35  ;;  %v858_v9 = vmax.f32 %v3169_v40, %v826_v25  ;;  %2453 = vst.msk [vmem:[%s3247_s17 + $0x218] sm:$0xff] %vm196_vm0, %v3348_v4  ;;  %v1092_v35 = vsel %vm1091_vm4, %v1059_v46, %v1075_v0  ;;  %v1857_v36 = vrot.slane %v3318_v17, 4 }
  0x6d   : > { %v1020_v61 = vmax.f32 %v923_v26, %v973_v5  ;;  %v1239_v41 = vsel %vm1224_vm5, %v1206_v2, %v1222_v7  ;;  %v1241_v42 = vsel %vm1224_vm5, %v1208_v54, %v1192_v24  ;;  %v827_v11 = vsel %vm825_vm1, %v794_v1, %v810_v55 }
  0x6e   : > { %v991_v44 = vmax.f32 %v858_v9, %v975_v32  ;;  %v976_v46 = vsel %vm958_vm2, %v943_v33, %v927_v10  ;;  %v860_v40 = vmax.f32 %v3222_v47, %v827_v11  ;;  %v1093_v63 = vsel %vm1091_vm4, %v1060_v28, %v1076_v29 }
  0x6f   : > { %v1153_v0 = vmax.f32 %v1020_v61, %v1122_v8  ;;  %v1242_v24 = vsel %vm1224_vm5, %v1209_v58, %v1193_v12  ;;  %v840_v54 = vsel %vm825_vm1, %v807_v20, %v823_v21  ;;  %v989_v1 = vsel %vm958_vm2, %v956_v49, %v940_v22 }
  0x70   : > { %v1027_v34 = vsel %vm153_vm6, %v991_v44, %v858_v9  ;;  %v1106_v55 = vsel %vm1091_vm4, %v1073_v52, %v1089_v53  ;;  %v993_v33 = vmax.f32 %v860_v40, %v976_v46  ;;  %v886_v28 = vmax.f32 %v789_v13, %v840_v54 }
  0x71   : > { %v1189_v47 = vsel %vm156_vm7, %v1153_v0, %v1020_v61  ;;  %v1124_v10 = vmax.f32 %v1027_v34, %v1092_v35  ;;  %v1255_v37 = vsel %vm1224_vm5, %v1222_v7, %v1206_v2  ;;  %v3418_v12 = vrot.slane %v3318_v17, %v3075_v57 }
  0x72   : > { %v3412_v29 = vmax.f32 %v1189_v47, %v1239_v41  ;;  %v1373_v14 = vrot.slane %v3271_v6, 6  ;;  %v1029_v16 = vsel %vm153_vm6, %v993_v33, %v860_v40  ;;  %v1019_v23 = vmax.f32 %v886_v28, %v989_v1  ;;  %v765_v47 = vld [vmem:[#allocation2 + $0x20] sm:$0xff] }
  0x73   : > { %5370 = vst [vmem:[#allocation7_spill] sm:$0xff] %v3418_v12  ;;  %v1257_v15 = vmax.f32 %v1124_v10, %v1241_v42  ;;  %v1389_v30 = vrot.slane %v3239_v38, 6  ;;  %v1126_v13 = vmax.f32 %v1029_v16, %v1093_v63  ;;  %v1533_v60 = vrot.slane %v3271_v6, 2  ;;  %v766_v16 = vld [vmem:[#allocation2 + $0x28] sm:$0xff] }
  0x74   : > { %2479 = vst.msk [vmem:[%s3247_s17 + $0x2e8] sm:$0xff] %vm196_vm0, %v3412_v29  ;;  %v1388_v39 = vrot.slane %v3412_v29, 6  ;;  %v1548_v18 = vrot.slane %v3412_v29, 2  ;;  %v3431_v19 = vrot.slane %v3412_v29, %v3075_v57  ;;  %v1055_v20 = vsel %vm153_vm6, %v1019_v23, %v886_v28 }
  0x75   : > { %v3435_v58 = vsel %vm157_vm8, %v1257_v15, %v1124_v10  ;;  %v1421_v21 = vsel %vm1224_vm5, %v1389_v30, %v1373_v14  ;;  %v1259_v49 = vmax.f32 %v1126_v13, %v1242_v24  ;;  %v1152_v52 = vmax.f32 %v1055_v20, %v1106_v55  ;;  %v2585_v15 = vld [vmem:[%s3247_s17 + $0xf8] sm:$0xff] }
  0x76   : > { %5371 = vst [vmem:[#allocation8_spill] sm:$0xff] %v3435_v58  ;;  %2450 = vst.msk [vmem:[%s3247_s17 + $0x200] sm:$0xff] %vm196_vm0, %v3435_v58  ;;  %v3448_v45 = vrot.slane %v3435_v58, %v3063_v50  ;;  %v1841_v48 = vrot.slane %v3435_v58, 4  ;;  %v1516_v51 = vsel %vm157_vm8, %v1421_v21, %v3287_v27  ;;  %v1549_v31 = vrot.slane %v3239_v38, 2 }
  0x77   : > { %v1405_v6 = vsel %vm1224_vm5, %v1373_v14, %v1389_v30  ;;  %v3461_v2 = vsel %vm157_vm8, %v1259_v49, %v1126_v13  ;;  %v1858_v7 = vrot.slane %v3348_v4, 4  ;;  %v1285_v38 = vmax.f32 %v1152_v52, %v1255_v37  ;;  %v2584_v14 = vld [vmem:[%s3247_s17 + $0xf0] sm:$0xff] }
  0x78   : > { %5372 = vst [vmem:[#allocation9_spill] sm:$0xff] %v3448_v45  ;;  %v1890_v53 = vsel %vm1873_vm9, %v1857_v36, %v1841_v48  ;;  %5373 = vst [vmem:[#allocation10_spill] sm:$0xff] %v3461_v2  ;;  %v1874_v5 = vsel %vm1873_vm9, %v1841_v48, %v1857_v36  ;;  %v1565_v26 = vsel %vm1091_vm4, %v1533_v60, %v1549_v31  ;;  %v1842_v44 = vrot.slane %v3461_v2, 4 }
  0x79   : > { %2452 = vst.msk [vmem:[%s3247_s17 + $0x210] sm:$0xff] %vm196_vm0, %v3461_v2  ;;  %v1947_v27 = vsel %vm160_vm11, %v1890_v53, %v3418_v12  ;;  %v1910_v25 = vsel %vm161_vm10, %v1890_v53, %v3448_v45  ;;  %v1708_v32 = vmax.f32 %v1516_v51, %v1565_v26  ;;  %v1581_v61 = vsel %vm1091_vm4, %v1549_v31, %v1533_v60 }
  0x7a   : > { %v1979_v8 = vmax.f32 %v1874_v5, %v1947_v27  ;;  %v1978_v9 = vmax.f32 %v1910_v25, %v1874_v5  ;;  %v3481_v41 = vsel %vm157_vm8, %v1285_v38, %v1152_v52  ;;  %v1677_v35 = vsel %vm156_vm7, %v1581_v61, %v3258_v3 }
  0x7b   : > { %v3488_v42 = vrot.slane %v3461_v2, %v3063_v50  ;;  %2478 = vst.msk [vmem:[%s3247_s17 + $0x2e0] sm:$0xff] %vm196_vm0, %v3481_v41  ;;  %v1372_v46 = vrot.slane %v3481_v41, 6  ;;  %v1481_v3 = vrot.slane %v3481_v41, %v3063_v50  ;;  %2508 = vst.msk [vmem:[%s3247_s17 + $0x1d0] sm:$0xff] %vm196_vm0, %v1708_v32  ;;  %v1532_v0 = vrot.slane %v3481_v41, 2 }
  0x7c   : > { %v3495_v36 = vmax.f32 %v3318_v17, %v1979_v8  ;;  %v3498_v11 = vmax.f32 %v3435_v58, %v1978_v9  ;;  %2510 = vst.msk [vmem:[%s3247_s17 + $0x1e0] sm:$0xff] %vm196_vm0, %v1708_v32  ;;  %2512 = vst.msk [vmem:[%s3247_s17 + $0x1f0] sm:$0xff] %vm196_vm0, %v1708_v32  ;;  %v1709_v40 = vmax.f32 %v1405_v6, %v1677_v35  ;;  %v1871_v60 = vrot.slane %v3412_v29, 4 }
  0x7d   : > { %5374 = vst [vmem:[#allocation11_spill] sm:$0xff] %v3488_v42  ;;  %v1875_v63 = vsel %vm1873_vm9, %v1842_v44, %v1858_v7  ;;  %v1891_v24 = vsel %vm1873_vm9, %v1858_v7, %v1842_v44  ;;  %v1420_v34 = vsel %vm1224_vm5, %v1388_v39, %v1372_v46  ;;  %v1404_v54 = vsel %vm1224_vm5, %v1372_v46, %v1388_v39  ;;  %v767_v46 = vld [vmem:[#allocation2 + $0x30] sm:$0xff] }
  0x7e   : > { %5375 = vst [vmem:[#allocation12_spill] sm:$0xff] %v3495_v36  ;;  %5376 = vst [vmem:[#allocation13_spill] sm:$0xff] %v3498_v11  ;;  %v1912_v1 = vsel %vm161_vm10, %v1891_v24, %v3488_v42  ;;  %v3529_v55 = vrot.slane %v3348_v4, %v3075_v57  ;;  %v1514_v10 = vsel %vm157_vm8, %v1420_v34, %v1481_v3  ;;  %v1855_v39 = vrot.slane %v3481_v41, 4 }
  0x7f   : > { %2043 = vst.msk [vmem:[%s3247_s17 + $0x8] sm:$0xff] %vm196_vm0, %v3495_v36  ;;  %2042 = vst.msk [vmem:[%s3247_s17] sm:$0xff] %vm196_vm0, %v3498_v11  ;;  %v1564_v33 = vsel %vm1091_vm4, %v1532_v0, %v1548_v18  ;;  %v1580_v28 = vsel %vm1091_vm4, %v1548_v18, %v1532_v0  ;;  %v1980_v37 = vmax.f32 %v1912_v1, %v1875_v63  ;;  %v795_v52 = vrot.slane %v765_v47, 1 }
  0x80   : > { %5377 = vst [vmem:[#allocation14_spill] sm:$0xff] %v3529_v55  ;;  %2509 = vst.msk [vmem:[%s3247_s17 + $0x1d8] sm:$0xff] %vm196_vm0, %v1709_v40  ;;  %v1706_v23 = vmax.f32 %v1514_v10, %v1564_v33  ;;  %v1675_v30 = vsel %vm156_vm7, %v1580_v28, %v3431_v19  ;;  %v1949_v13 = vsel %vm160_vm11, %v1891_v24, %v3529_v55  ;;  %v811_v51 = vrot.slane %v766_v16, 1  ;;  %v768_v24 = vld [vmem:[#allocation2 + $0x38] sm:$0xff] }
  0x81   : > { %2511 = vst.msk [vmem:[%s3247_s17 + $0x1e8] sm:$0xff] %vm196_vm0, %v1709_v40  ;;  %2513 = vst.msk [vmem:[%s3247_s17 + $0x1f8] sm:$0xff] %vm196_vm0, %v1709_v40  ;;  %v1707_v18 = vmax.f32 %v1404_v54, %v1675_v30  ;;  %v3553_v20 = vmax.f32 %v3461_v2, %v1980_v37  ;;  %v1981_v21 = vmax.f32 %v1875_v63, %v1949_v13  ;;  %v928_v5 = vrot.slane %v765_v47, 7 }
  0x82   : > { %2506 = vst.msk [vmem:[%s3247_s17 + $0x1c0] sm:$0xff] %vm196_vm0, %v1706_v23  ;;  %v2161_v48 = vmax.f32 %v2584_v14, %v3325_v59  ;;  %v2162_v49 = vmax.f32 %v2585_v15, %v3328_v62  ;;  %v1888_v6 = vsel %vm1873_vm9, %v1855_v39, %v1871_v60  ;;  %v1904_v53 = vsel %vm1873_vm9, %v1871_v60, %v1855_v39 }
  0x83   : > { %5378 = vst [vmem:[#allocation15_spill] sm:$0xff] %v3553_v20  ;;  %2507 = vst.msk [vmem:[%s3247_s17 + $0x1c8] sm:$0xff] %vm196_vm0, %v1707_v18  ;;  %v3566_v31 = vmax.f32 %v3348_v4, %v1981_v21  ;;  %v1938_v7 = vsel %vm161_vm10, %v1904_v53, %v1481_v3  ;;  %v1975_v38 = vsel %vm160_vm11, %v1904_v53, %v3431_v19  ;;  %v944_v32 = vrot.slane %v766_v16, 7 }
  0x84   : > { %2044 = vst.msk [vmem:[%s3247_s17 + $0x10] sm:$0xff] %vm196_vm0, %v3553_v20  ;;  %2592 = vst.msk [vmem:[%s3247_s17 + $0xf0] sm:$0xff] %vm196_vm0, %v2161_v48  ;;  %v828_v27 = vsel %vm825_vm1, %v795_v52, %v811_v51  ;;  %v844_v25 = vsel %vm825_vm1, %v811_v51, %v795_v52  ;;  %v2006_v26 = vmax.f32 %v1938_v7, %v1888_v6  ;;  %v1061_v19 = vrot.slane %v765_v47, 2 }
  0x85   : > { %5379 = vst [vmem:[#allocation16_spill] sm:$0xff] %v3566_v31  ;;  %2593 = vst.msk [vmem:[%s3247_s17 + $0xf8] sm:$0xff] %vm196_vm0, %v2162_v49  ;;  %v2007_v8 = vmax.f32 %v1888_v6, %v1975_v38  ;;  %v862_v9 = vmax.f32 %v765_v47, %v828_v27  ;;  %v1077_v61 = vrot.slane %v766_v16, 2  ;;  %v1194_v35 = vrot.slane %v765_v47, 6  ;;  %v769_v6 = vld [vmem:[#allocation2 + $0x40] sm:$0xff]  ;;  %v770_v27 = vld [vmem:[#allocation2 + $0x48] sm:$0xff] }
  0x86   : > { %2045 = vst.msk [vmem:[%s3247_s17 + $0x18] sm:$0xff] %vm196_vm0, %v3566_v31  ;;  %v1210_v44 = vrot.slane %v766_v16, 6  ;;  %v3589_v3 = vmax.f32 %v3481_v41, %v2006_v26  ;;  %v977_v40 = vsel %vm958_vm2, %v944_v32, %v928_v5  ;;  %v863_v63 = vmax.f32 %v766_v16, %v844_v25 }
  0x87   : > { %v3592_v0 = vmax.f32 %v3412_v29, %v2007_v8  ;;  %v995_v34 = vmax.f32 %v862_v9, %v977_v40  ;;  %v1094_v54 = vsel %vm1091_vm4, %v1061_v19, %v1077_v61  ;;  %v1110_v1 = vsel %vm1091_vm4, %v1077_v61, %v1061_v19 }
  0x88   : > { %5380 = vst [vmem:[#allocation17_spill] sm:$0xff] %v3589_v3  ;;  %v1243_v47 = vsel %vm1224_vm5, %v1210_v44, %v1194_v35  ;;  %2070 = vst.msk [vmem:[%s3247_s17 + $0xe0] sm:$0xff] %vm196_vm0, %v3589_v3  ;;  %v899_v29 = vsel %vm152_vm3, %v863_v63, %v766_v16  ;;  %v961_v41 = vsel %vm958_vm2, %v928_v5, %v944_v32  ;;  %v796_v33 = vrot.slane %v767_v46, 1 }
  0x89   : > { %5381 = vst [vmem:[#allocation18_spill] sm:$0xff] %v3592_v0  ;;  %2071 = vst.msk [vmem:[%s3247_s17 + $0xe8] sm:$0xff] %vm196_vm0, %v3592_v0  ;;  %v1227_v10 = vsel %vm1224_vm5, %v1194_v35, %v1210_v44  ;;  %v1031_v28 = vsel %vm153_vm6, %v995_v34, %v862_v9  ;;  %v996_v37 = vmax.f32 %v899_v29, %v961_v41  ;;  %v812_v14 = vrot.slane %v768_v24, 1 }
  0x8a   : > { %v929_v15 = vrot.slane %v767_v46, 7  ;;  %v1128_v23 = vmax.f32 %v1031_v28, %v1094_v54  ;;  %v945_v30 = vrot.slane %v768_v24, 7  ;;  %v1062_v13 = vrot.slane %v767_v46, 2 }
  0x8b   : > { %v1078_v39 = vrot.slane %v768_v24, 2  ;;  %v1129_v18 = vmax.f32 %v996_v37, %v1110_v1  ;;  %v829_v16 = vsel %vm825_vm1, %v796_v33, %v812_v14  ;;  %v845_v21 = vsel %vm825_vm1, %v812_v14, %v796_v33 }
  0x8c   : > { %v1195_v60 = vrot.slane %v767_v46, 6  ;;  %v1261_v48 = vmax.f32 %v1128_v23, %v1243_v47  ;;  %v864_v49 = vmax.f32 %v767_v46, %v829_v16  ;;  %v978_v52 = vsel %vm958_vm2, %v945_v30, %v929_v15 }
  0x8d   : > { %v1095_v51 = vsel %vm1091_vm4, %v1062_v13, %v1078_v39  ;;  %v1165_v53 = vsel %vm156_vm7, %v1129_v18, %v996_v37  ;;  %v1111_v5 = vsel %vm1091_vm4, %v1078_v39, %v1062_v13  ;;  %v1211_v7 = vrot.slane %v768_v24, 6  ;;  %v772_v18 = vld [vmem:[#allocation2 + $0x58] sm:$0xff] }
  0x8e   : > { %v865_v38 = vmax.f32 %v768_v24, %v845_v21  ;;  %v3630_v25 = vsel %vm157_vm8, %v1261_v48, %v1128_v23  ;;  %v3632_v26 = vmax.f32 %v1165_v53, %v1227_v10  ;;  %v997_v8 = vmax.f32 %v864_v49, %v978_v52 }
  0x8f   : > { %v962_v9 = vsel %vm958_vm2, %v929_v15, %v945_v30  ;;  %2454 = vst.msk [vmem:[%s3247_s17 + $0x220] sm:$0xff] %vm196_vm0, %v3630_v25  ;;  %v1244_v32 = vsel %vm1224_vm5, %v1211_v7, %v1195_v60  ;;  %v1228_v61 = vsel %vm1224_vm5, %v1195_v60, %v1211_v7  ;;  %v797_v35 = vrot.slane %v769_v6, 1  ;;  %v771_v15 = vld [vmem:[#allocation2 + $0x50] sm:$0xff] }
  0x90   : > { %v901_v19 = vsel %vm152_vm3, %v865_v38, %v768_v24  ;;  %2455 = vst.msk [vmem:[%s3247_s17 + $0x228] sm:$0xff] %vm196_vm0, %v3632_v26  ;;  %v1033_v44 = vsel %vm153_vm6, %v997_v8, %v864_v49  ;;  %v813_v40 = vrot.slane %v770_v27, 1  ;;  %v930_v63 = vrot.slane %v769_v6, 7 }
  0x91   : > { %v998_v46 = vmax.f32 %v901_v19, %v962_v9  ;;  %v1130_v34 = vmax.f32 %v1033_v44, %v1095_v51  ;;  %v946_v54 = vrot.slane %v770_v27, 7  ;;  %v1063_v1 = vrot.slane %v769_v6, 2 }
  0x92   : > { %v1079_v47 = vrot.slane %v770_v27, 2  ;;  %v830_v24 = vsel %vm825_vm1, %v797_v35, %v813_v40  ;;  %v846_v41 = vsel %vm825_vm1, %v813_v40, %v797_v35  ;;  %v1196_v10 = vrot.slane %v769_v6, 6 }
  0x93   : > { %v1131_v29 = vmax.f32 %v998_v46, %v1111_v5  ;;  %v1263_v33 = vmax.f32 %v1130_v34, %v1244_v32  ;;  %v866_v28 = vmax.f32 %v769_v6, %v830_v24  ;;  %v979_v37 = vsel %vm958_vm2, %v946_v54, %v930_v63 }
  0x94   : > { %v1096_v14 = vsel %vm1091_vm4, %v1063_v1, %v1079_v47  ;;  %v1112_v30 = vsel %vm1091_vm4, %v1079_v47, %v1063_v1  ;;  %v1212_v13 = vrot.slane %v770_v27, 6  ;;  %v867_v39 = vmax.f32 %v770_v27, %v846_v41  ;;  %v774_v41 = vld [vmem:[#allocation2 + $0x68] sm:$0xff] }
  0x95   : > { %v1167_v23 = vsel %vm156_vm7, %v1131_v29, %v998_v46  ;;  %v3664_v16 = vsel %vm157_vm8, %v1263_v33, %v1130_v34  ;;  %v999_v60 = vmax.f32 %v866_v28, %v979_v37  ;;  %v963_v48 = vsel %vm958_vm2, %v930_v63, %v946_v54  ;;  %v773_v54 = vld [vmem:[#allocation2 + $0x60] sm:$0xff] }
  0x96   : > { %v3666_v21 = vmax.f32 %v1167_v23, %v1228_v61  ;;  %2456 = vst.msk [vmem:[%s3247_s17 + $0x230] sm:$0xff] %vm196_vm0, %v3664_v16  ;;  %v1245_v49 = vsel %vm1224_vm5, %v1212_v13, %v1196_v10  ;;  %v903_v52 = vsel %vm152_vm3, %v867_v39, %v770_v27  ;;  %v1229_v51 = vsel %vm1224_vm5, %v1196_v10, %v1212_v13 }
  0x97   : > { %v798_v6 = vrot.slane %v771_v15, 1  ;;  %v1035_v53 = vsel %vm153_vm6, %v999_v60, %v866_v28  ;;  %v1000_v5 = vmax.f32 %v903_v52, %v963_v48  ;;  %v814_v7 = vrot.slane %v772_v18, 1 }
  0x98   : > { %2457 = vst.msk [vmem:[%s3247_s17 + $0x238] sm:$0xff] %vm196_vm0, %v3666_v21  ;;  %v931_v38 = vrot.slane %v771_v15, 7  ;;  %v1132_v8 = vmax.f32 %v1035_v53, %v1096_v14  ;;  %v947_v9 = vrot.slane %v772_v18, 7  ;;  %v1064_v32 = vrot.slane %v771_v15, 2 }
  0x99   : > { %v1080_v19 = vrot.slane %v772_v18, 2  ;;  %v1133_v61 = vmax.f32 %v1000_v5, %v1112_v30  ;;  %v831_v27 = vsel %vm825_vm1, %v798_v6, %v814_v7  ;;  %v847_v35 = vsel %vm825_vm1, %v814_v7, %v798_v6 }
  0x9a   : > { %v1197_v44 = vrot.slane %v771_v15, 6  ;;  %v1265_v46 = vmax.f32 %v1132_v8, %v1245_v49  ;;  %v868_v40 = vmax.f32 %v771_v15, %v831_v27  ;;  %v980_v63 = vsel %vm958_vm2, %v947_v9, %v931_v38 }
  0x9b   : > { %v1097_v34 = vsel %vm1091_vm4, %v1064_v32, %v1080_v19  ;;  %v1169_v1 = vsel %vm156_vm7, %v1133_v61, %v1000_v5  ;;  %v1113_v47 = vsel %vm1091_vm4, %v1080_v19, %v1064_v32  ;;  %v1213_v29 = vrot.slane %v772_v18, 6  ;;  %v775_v19 = vld [vmem:[#allocation2 + $0x70] sm:$0xff] }
  0x9c   : > { %v869_v24 = vmax.f32 %v772_v18, %v847_v35  ;;  %v3698_v10 = vsel %vm157_vm8, %v1265_v46, %v1132_v8  ;;  %v3700_v33 = vmax.f32 %v1169_v1, %v1229_v51  ;;  %v1001_v28 = vmax.f32 %v868_v40, %v980_v63  ;;  %v776_v46 = vld [vmem:[#allocation2 + $0x78] sm:$0xff] }
  0x9d   : > { %v964_v37 = vsel %vm958_vm2, %v931_v38, %v947_v9  ;;  %2458 = vst.msk [vmem:[%s3247_s17 + $0x240] sm:$0xff] %vm196_vm0, %v3698_v10  ;;  %v1246_v14 = vsel %vm1224_vm5, %v1213_v29, %v1197_v44  ;;  %v1230_v23 = vsel %vm1224_vm5, %v1197_v44, %v1213_v29  ;;  %v799_v30 = vrot.slane %v773_v54, 1 }
  0x9e   : > { %v905_v15 = vsel %vm152_vm3, %v869_v24, %v772_v18  ;;  %2459 = vst.msk [vmem:[%s3247_s17 + $0x248] sm:$0xff] %vm196_vm0, %v3700_v33  ;;  %v1037_v13 = vsel %vm153_vm6, %v1001_v28, %v868_v40  ;;  %v815_v60 = vrot.slane %v774_v41, 1  ;;  %v932_v48 = vrot.slane %v773_v54, 7 }
  0x9f   : > { %v1002_v39 = vmax.f32 %v905_v15, %v964_v37  ;;  %v1134_v49 = vmax.f32 %v1037_v13, %v1097_v34  ;;  %v948_v52 = vrot.slane %v774_v41, 7  ;;  %v1065_v51 = vrot.slane %v773_v54, 2 }
  0xa0   : > { %v1081_v6 = vrot.slane %v774_v41, 2  ;;  %v832_v18 = vsel %vm825_vm1, %v799_v30, %v815_v60  ;;  %v848_v5 = vsel %vm825_vm1, %v815_v60, %v799_v30  ;;  %v1198_v7 = vrot.slane %v773_v54, 6 }
  0xa1   : > { %v1135_v53 = vmax.f32 %v1002_v39, %v1113_v47  ;;  %v1267_v38 = vmax.f32 %v1134_v49, %v1246_v14  ;;  %v870_v8 = vmax.f32 %v773_v54, %v832_v18  ;;  %v981_v9 = vsel %vm958_vm2, %v948_v52, %v932_v48  ;;  %v777_v18 = vld [vmem:[#allocation2 + $0x80] sm:$0xff] }
  0xa2   : > { %v1098_v32 = vsel %vm1091_vm4, %v1065_v51, %v1081_v6  ;;  %v1114_v27 = vsel %vm1091_vm4, %v1081_v6, %v1065_v51  ;;  %v1214_v35 = vrot.slane %v774_v41, 6  ;;  %v871_v44 = vmax.f32 %v774_v41, %v848_v5 }
  0xa3   : > { %v1171_v61 = vsel %vm156_vm7, %v1135_v53, %v1002_v39  ;;  %v3732_v40 = vsel %vm157_vm8, %v1267_v38, %v1134_v49  ;;  %v1003_v34 = vmax.f32 %v870_v8, %v981_v9  ;;  %v965_v54 = vsel %vm958_vm2, %v932_v48, %v948_v52  ;;  %v778_v9 = vld [vmem:[#allocation2 + $0x88] sm:$0xff] }
  0xa4   : > { %v3734_v63 = vmax.f32 %v1171_v61, %v1230_v23  ;;  %2460 = vst.msk [vmem:[%s3247_s17 + $0x250] sm:$0xff] %vm196_vm0, %v3732_v40  ;;  %v1247_v1 = vsel %vm1224_vm5, %v1214_v35, %v1198_v7  ;;  %v907_v47 = vsel %vm152_vm3, %v871_v44, %v774_v41  ;;  %v1231_v29 = vsel %vm1224_vm5, %v1198_v7, %v1214_v35 }
  0xa5   : > { %v800_v24 = vrot.slane %v775_v19, 1  ;;  %v1039_v28 = vsel %vm153_vm6, %v1003_v34, %v870_v8  ;;  %v1004_v37 = vmax.f32 %v907_v47, %v965_v54  ;;  %v816_v14 = vrot.slane %v776_v46, 1 }
  0xa6   : > { %2461 = vst.msk [vmem:[%s3247_s17 + $0x258] sm:$0xff] %vm196_vm0, %v3734_v63  ;;  %v933_v15 = vrot.slane %v775_v19, 7  ;;  %v1136_v23 = vmax.f32 %v1039_v28, %v1098_v32  ;;  %v949_v30 = vrot.slane %v776_v46, 7  ;;  %v1066_v13 = vrot.slane %v775_v19, 2 }
  0xa7   : > { %v1082_v39 = vrot.slane %v776_v46, 2  ;;  %v1137_v60 = vmax.f32 %v1004_v37, %v1114_v27  ;;  %v833_v41 = vsel %vm825_vm1, %v800_v24, %v816_v14  ;;  %v849_v48 = vsel %vm825_vm1, %v816_v14, %v800_v24 }
  0xa8   : > { %v1199_v49 = vrot.slane %v775_v19, 6  ;;  %v1269_v52 = vmax.f32 %v1136_v23, %v1247_v1  ;;  %v872_v51 = vmax.f32 %v775_v19, %v833_v41  ;;  %v982_v6 = vsel %vm958_vm2, %v949_v30, %v933_v15 }
  0xa9   : > { %v1099_v53 = vsel %vm1091_vm4, %v1066_v13, %v1082_v39  ;;  %v1173_v5 = vsel %vm156_vm7, %v1137_v60, %v1004_v37  ;;  %v1115_v7 = vsel %vm1091_vm4, %v1082_v39, %v1066_v13  ;;  %v1215_v38 = vrot.slane %v776_v46, 6 }
  0xaa   : > { %v873_v8 = vmax.f32 %v776_v46, %v849_v48  ;;  %v3766_v32 = vsel %vm157_vm8, %v1269_v52, %v1136_v23  ;;  %v3768_v19 = vmax.f32 %v1173_v5, %v1231_v29  ;;  %v1005_v61 = vmax.f32 %v872_v51, %v982_v6  ;;  %v780_v5 = vld [vmem:[#allocation2 + $0x98] sm:$0xff] }
  0xab   : > { %v966_v27 = vsel %vm958_vm2, %v933_v15, %v949_v30  ;;  %2462 = vst.msk [vmem:[%s3247_s17 + $0x260] sm:$0xff] %vm196_vm0, %v3766_v32  ;;  %v1248_v35 = vsel %vm1224_vm5, %v1215_v38, %v1199_v49  ;;  %v1232_v34 = vsel %vm1224_vm5, %v1199_v49, %v1215_v38  ;;  %v801_v54 = vrot.slane %v777_v18, 1  ;;  %v779_v49 = vld [vmem:[#allocation2 + $0x90] sm:$0xff] }
  0xac   : > { %v909_v44 = vsel %vm152_vm3, %v873_v8, %v776_v46  ;;  %2463 = vst.msk [vmem:[%s3247_s17 + $0x268] sm:$0xff] %vm196_vm0, %v3768_v19  ;;  %v1041_v1 = vsel %vm153_vm6, %v1005_v61, %v872_v51  ;;  %v817_v29 = vrot.slane %v778_v9, 1  ;;  %v934_v24 = vrot.slane %v777_v18, 7 }
  0xad   : > { %v1006_v47 = vmax.f32 %v909_v44, %v966_v27  ;;  %v1138_v28 = vmax.f32 %v1041_v1, %v1099_v53  ;;  %v950_v37 = vrot.slane %v778_v9, 7  ;;  %v1067_v14 = vrot.slane %v777_v18, 2 }
  0xae   : > { %v1083_v15 = vrot.slane %v778_v9, 2  ;;  %v834_v46 = vsel %vm825_vm1, %v801_v54, %v817_v29  ;;  %v850_v30 = vsel %vm825_vm1, %v817_v29, %v801_v54  ;;  %v1200_v13 = vrot.slane %v777_v18, 6 }
  0xaf   : > { %v1139_v23 = vmax.f32 %v1006_v47, %v1115_v7  ;;  %v1271_v39 = vmax.f32 %v1138_v28, %v1248_v35  ;;  %v874_v60 = vmax.f32 %v777_v18, %v834_v46  ;;  %v983_v41 = vsel %vm958_vm2, %v950_v37, %v934_v24 }
  0xb0   : > { %v1100_v48 = vsel %vm1091_vm4, %v1067_v14, %v1083_v15  ;;  %v1116_v51 = vsel %vm1091_vm4, %v1083_v15, %v1067_v14  ;;  %v1216_v6 = vrot.slane %v778_v9, 6  ;;  %v875_v53 = vmax.f32 %v778_v9, %v850_v30 }
  0xb1   : > { %v1175_v52 = vsel %vm156_vm7, %v1139_v23, %v1006_v47  ;;  %v3800_v18 = vsel %vm157_vm8, %v1271_v39, %v1138_v28  ;;  %v1007_v38 = vmax.f32 %v874_v60, %v983_v41  ;;  %v967_v8 = vsel %vm958_vm2, %v934_v24, %v950_v37 }
  0xb2   : > { %v3802_v7 = vmax.f32 %v1175_v52, %v1232_v34  ;;  %2464 = vst.msk [vmem:[%s3247_s17 + $0x270] sm:$0xff] %vm196_vm0, %v3800_v18  ;;  %v1249_v61 = vsel %vm1224_vm5, %v1216_v6, %v1200_v13  ;;  %v911_v27 = vsel %vm152_vm3, %v875_v53, %v778_v9  ;;  %v1233_v35 = vsel %vm1224_vm5, %v1200_v13, %v1216_v6 }
  0xb3   : > { %v802_v44 = vrot.slane %v779_v49, 1  ;;  %v1043_v34 = vsel %vm153_vm6, %v1007_v38, %v874_v60  ;;  %v1008_v54 = vmax.f32 %v911_v27, %v967_v8  ;;  %v818_v1 = vrot.slane %v780_v5, 1  ;;  %v3828_v60 = vld [vmem:[#allocation2 + $0xa0] sm:$0xff]  ;;  %v164_v27 = vld [vmem:[%s2728_s13 + $0x8] sm:$0xff] }
  0xb4   : > { %2465 = vst.msk [vmem:[%s3247_s17 + $0x278] sm:$0xff] %vm196_vm0, %v3802_v7  ;;  %v935_v47 = vrot.slane %v779_v49, 7  ;;  %v1140_v29 = vmax.f32 %v1043_v34, %v1100_v48  ;;  %v951_v24 = vrot.slane %v780_v5, 7  ;;  %v1068_v28 = vrot.slane %v779_v49, 2  ;;  %2361 = vst.msk [vmem:[%s3247_s17 + $0x308] sm:$0xff] %vm196_vm0, %v164_v27 }
  0xb5   : > { %v1084_v37 = vrot.slane %v780_v5, 2  ;;  %v1141_v14 = vmax.f32 %v1008_v54, %v1116_v51  ;;  %v835_v9 = vsel %vm825_vm1, %v802_v44, %v818_v1  ;;  %v851_v15 = vsel %vm825_vm1, %v818_v1, %v802_v44  ;;  %v3836_v51 = vld [vmem:[#allocation2 + $0xa8] sm:$0xff]  ;;  %v165_v44 = vld [vmem:[%s2728_s13 + $0x10] sm:$0xff] }
  0xb6   : > { %v1201_v23 = vrot.slane %v779_v49, 6  ;;  %v1273_v46 = vmax.f32 %v1140_v29, %v1249_v61  ;;  %v876_v30 = vmax.f32 %v779_v49, %v835_v9  ;;  %v984_v13 = vsel %vm958_vm2, %v951_v24, %v935_v47  ;;  %v163_v61 = vld [vmem:[%s2728_s13] sm:$0xff]  ;;  %2362 = vst.msk [vmem:[%s3247_s17 + $0x310] sm:$0xff] %vm196_vm0, %v165_v44  ;;  %v169_v9 = vld [vmem:[%s2728_s13 + $0x30] sm:$0xff] }
  0xb7   : > { %v1101_v39 = vsel %vm1091_vm4, %v1068_v28, %v1084_v37  ;;  %v1177_v41 = vsel %vm156_vm7, %v1141_v14, %v1008_v54  ;;  %v3834_v48 = vsel %vm1091_vm4, %v1084_v37, %v1068_v28  ;;  %v1217_v52 = vrot.slane %v780_v5, 6  ;;  %2360 = vst.msk [vmem:[%s3247_s17 + $0x300] sm:$0xff] %vm196_vm0, %v163_v61  ;;  %2366 = vst.msk [vmem:[%s3247_s17 + $0x330] sm:$0xff] %vm196_vm0, %v169_v9  ;;  %v178_v9 = vld [vmem:[%s2728_s13 + $0x78] sm:$0xff] }
  0xb8   : > { %v877_v49 = vmax.f32 %v780_v5, %v851_v15  ;;  %v3840_v6 = vsel %vm157_vm8, %v1273_v46, %v1140_v29  ;;  %v3842_v53 = vmax.f32 %v1177_v41, %v1233_v35  ;;  %v1009_v38 = vmax.f32 %v876_v30, %v984_v13  ;;  %v167_v29 = vld [vmem:[%s2728_s13 + $0x20] sm:$0xff]  ;;  %v170_v15 = vld [vmem:[%s2728_s13 + $0x38] sm:$0xff]  ;;  %2375 = vst.msk [vmem:[%s3247_s17 + $0x378] sm:$0xff] %vm196_vm0, %v178_v9  ;;  %v189_v9 = vld [vmem:[%s2728_s13 + $0xd0] sm:$0xff] }
  0xb9   : > { %v968_v8 = vsel %vm958_vm2, %v935_v47, %v951_v24  ;;  %2466 = vst.msk [vmem:[%s3247_s17 + $0x280] sm:$0xff] %vm196_vm0, %v3840_v6  ;;  %v3854_v34 = vsel %vm1224_vm5, %v1217_v52, %v1201_v23  ;;  %v3860_v54 = vsel %vm1224_vm5, %v1201_v23, %v1217_v52  ;;  %v803_v1 = vrot.slane %v3828_v60, 1  ;;  %v166_v47 = vld [vmem:[%s2728_s13 + $0x18] sm:$0xff]  ;;  %v168_v24 = vld [vmem:[%s2728_s13 + $0x28] sm:$0xff]  ;;  %2364 = vst.msk [vmem:[%s3247_s17 + $0x320] sm:$0xff] %vm196_vm0, %v167_v29 }
  0xba   : > { %v913_v35 = vsel %vm152_vm3, %v877_v49, %v780_v5  ;;  %2467 = vst.msk [vmem:[%s3247_s17 + $0x288] sm:$0xff] %vm196_vm0, %v3842_v53  ;;  %v1045_v5 = vsel %vm153_vm6, %v1009_v38, %v876_v30  ;;  %v819_v37 = vrot.slane %v3836_v51, 1  ;;  %v936_v14 = vrot.slane %v3828_v60, 7  ;;  %2363 = vst.msk [vmem:[%s3247_s17 + $0x318] sm:$0xff] %vm196_vm0, %v166_v47  ;;  %v171_v23 = vld [vmem:[%s2728_s13 + $0x40] sm:$0xff]  ;;  %v3891_v52 = vld [vmem:[#allocation2 + $0xb0] sm:$0xff] }
  0xbb   : > { %v1010_v28 = vmax.f32 %v913_v35, %v968_v8  ;;  %2365 = vst.msk [vmem:[%s3247_s17 + $0x328] sm:$0xff] %vm196_vm0, %v168_v24  ;;  %v1142_v46 = vmax.f32 %v1045_v5, %v1101_v39  ;;  %v952_v30 = vrot.slane %v3836_v51, 7  ;;  %v1069_v13 = vrot.slane %v3828_v60, 2  ;;  %2367 = vst.msk [vmem:[%s3247_s17 + $0x338] sm:$0xff] %vm196_vm0, %v170_v15  ;;  %v172_v39 = vld [vmem:[%s2728_s13 + $0x48] sm:$0xff]  ;;  %v173_v49 = vld [vmem:[%s2728_s13 + $0x50] sm:$0xff] }
  0xbc   : > { %v1085_v41 = vrot.slane %v3836_v51, 2  ;;  %2368 = vst.msk [vmem:[%s3247_s17 + $0x340] sm:$0xff] %vm196_vm0, %v171_v23  ;;  %v174_v38 = vld [vmem:[%s2728_s13 + $0x58] sm:$0xff]  ;;  %v836_v61 = vsel %vm825_vm1, %v803_v1, %v819_v37  ;;  %v852_v27 = vsel %vm825_vm1, %v819_v37, %v803_v1  ;;  %v1202_v44 = vrot.slane %v3828_v60, 6  ;;  %2369 = vst.msk [vmem:[%s3247_s17 + $0x348] sm:$0xff] %vm196_vm0, %v172_v39  ;;  %v176_v47 = vld [vmem:[%s2728_s13 + $0x68] sm:$0xff] }
  0xbd   : > { %v1143_v8 = vmax.f32 %v1010_v28, %v3834_v48  ;;  %v3908_v35 = vld [vmem:[#allocation2 + $0xb8] sm:$0xff]  ;;  %2370 = vst.msk [vmem:[%s3247_s17 + $0x350] sm:$0xff] %vm196_vm0, %v173_v49  ;;  %2371 = vst.msk [vmem:[%s3247_s17 + $0x358] sm:$0xff] %vm196_vm0, %v174_v38  ;;  %v175_v48 = vld [vmem:[%s2728_s13 + $0x60] sm:$0xff]  ;;  %v1275_v1 = vmax.f32 %v1142_v46, %v3854_v34  ;;  %v878_v24 = vmax.f32 %v3828_v60, %v836_v61  ;;  %v1218_v39 = vrot.slane %v3836_v51, 6 }
  0xbe   : > { %v177_v29 = vld [vmem:[%s2728_s13 + $0x70] sm:$0xff]  ;;  %v985_v5 = vsel %vm958_vm2, %v952_v30, %v936_v14  ;;  %v1102_v37 = vsel %vm1091_vm4, %v1069_v13, %v1085_v41  ;;  %2372 = vst.msk [vmem:[%s3247_s17 + $0x360] sm:$0xff] %vm196_vm0, %v175_v48  ;;  %2373 = vst.msk [vmem:[%s3247_s17 + $0x368] sm:$0xff] %vm196_vm0, %v176_v47  ;;  %v179_v34 = vld [vmem:[%s2728_s13 + $0x80] sm:$0xff]  ;;  %v3938_v23 = vsel %vm1091_vm4, %v1085_v41, %v1069_v13  ;;  %v1539_v36 = vrot.slane %v3734_v63, 2 }
  0xbf   : > { %2374 = vst.msk [vmem:[%s3247_s17 + $0x370] sm:$0xff] %vm196_vm0, %v177_v29  ;;  %v180_v15 = vld [vmem:[%s2728_s13 + $0x88] sm:$0xff]  ;;  %v1179_v60 = vsel %vm156_vm7, %v1143_v8, %v1010_v28  ;;  %v879_v49 = vmax.f32 %v3836_v51, %v852_v27  ;;  %2376 = vst.msk [vmem:[%s3247_s17 + $0x380] sm:$0xff] %vm196_vm0, %v179_v34  ;;  %v181_v28 = vld [vmem:[%s2728_s13 + $0x90] sm:$0xff]  ;;  %v3953_v13 = vsel %vm157_vm8, %v1275_v1, %v1142_v46  ;;  %v804_v29 = vrot.slane %v3891_v52, 1 }
  0xc0   : > { %2377 = vst.msk [vmem:[%s3247_s17 + $0x388] sm:$0xff] %vm196_vm0, %v180_v15  ;;  %v182_v38 = vld [vmem:[%s2728_s13 + $0x98] sm:$0xff]  ;;  %v183_v8 = vld [vmem:[%s2728_s13 + $0xa0] sm:$0xff]  ;;  %v3956_v41 = vmax.f32 %v1179_v60, %v3860_v54  ;;  %v1011_v61 = vmax.f32 %v878_v24, %v985_v5  ;;  %v969_v27 = vsel %vm958_vm2, %v936_v14, %v952_v30  ;;  %2378 = vst.msk [vmem:[%s3247_s17 + $0x390] sm:$0xff] %vm196_vm0, %v181_v28  ;;  %v820_v34 = vrot.slane %v3908_v35, 1 }
  0xc1   : > { %2379 = vst.msk [vmem:[%s3247_s17 + $0x398] sm:$0xff] %vm196_vm0, %v182_v38  ;;  %2380 = vst.msk [vmem:[%s3247_s17 + $0x3a0] sm:$0xff] %vm196_vm0, %v183_v8  ;;  %v184_v46 = vld [vmem:[%s2728_s13 + $0xa8] sm:$0xff]  ;;  %v185_v48 = vld [vmem:[%s2728_s13 + $0xb0] sm:$0xff]  ;;  %v1251_v54 = vsel %vm1224_vm5, %v1218_v39, %v1202_v44  ;;  %v915_v14 = vsel %vm152_vm3, %v879_v49, %v3836_v51  ;;  %v1235_v30 = vsel %vm1224_vm5, %v1202_v44, %v1218_v39  ;;  %v937_v15 = vrot.slane %v3891_v52, 7 }
  0xc2   : > { %v186_v47 = vld [vmem:[%s2728_s13 + $0xb8] sm:$0xff]  ;;  %2468 = vst.msk [vmem:[%s3247_s17 + $0x290] sm:$0xff] %vm196_vm0, %v3953_v13  ;;  %2381 = vst.msk [vmem:[%s3247_s17 + $0x3a8] sm:$0xff] %vm196_vm0, %v184_v46  ;;  %v187_v1 = vld [vmem:[%s2728_s13 + $0xc0] sm:$0xff]  ;;  %v1047_v51 = vsel %vm153_vm6, %v1011_v61, %v878_v24  ;;  %v1012_v44 = vmax.f32 %v915_v14, %v969_v27  ;;  %v953_v28 = vrot.slane %v3908_v35, 7  ;;  %v1070_v38 = vrot.slane %v3891_v52, 2 }
  0xc3   : > { %2382 = vst.msk [vmem:[%s3247_s17 + $0x3b0] sm:$0xff] %vm196_vm0, %v185_v48  ;;  %2383 = vst.msk [vmem:[%s3247_s17 + $0x3b8] sm:$0xff] %vm196_vm0, %v186_v47  ;;  %v188_v5 = vld [vmem:[%s2728_s13 + $0xc8] sm:$0xff]  ;;  %v190_v60 = vld [vmem:[%s2728_s13 + $0xd8] sm:$0xff]  ;;  %v1144_v24 = vmax.f32 %v1047_v51, %v1102_v37  ;;  %v1086_v8 = vrot.slane %v3908_v35, 2  ;;  %v837_v48 = vsel %vm825_vm1, %v804_v29, %v820_v34  ;;  %v853_v37 = vsel %vm825_vm1, %v820_v34, %v804_v29 }
  0xc4   : > { %2469 = vst.msk [vmem:[%s3247_s17 + $0x298] sm:$0xff] %vm196_vm0, %v3956_v41  ;;  %2384 = vst.msk [vmem:[%s3247_s17 + $0x3c0] sm:$0xff] %vm196_vm0, %v187_v1  ;;  %v191_v39 = vld [vmem:[%s2728_s13 + $0xe0] sm:$0xff]  ;;  %v192_v49 = vld [vmem:[%s2728_s13 + $0xe8] sm:$0xff]  ;;  %v1145_v46 = vmax.f32 %v1012_v44, %v3938_v23  ;;  %v1203_v47 = vrot.slane %v3891_v52, 6  ;;  %v880_v1 = vmax.f32 %v3891_v52, %v837_v48  ;;  %v1219_v34 = vrot.slane %v3908_v35, 6 }
  0xc5   : > { %2385 = vst.msk [vmem:[%s3247_s17 + $0x3c8] sm:$0xff] %vm196_vm0, %v188_v5  ;;  %2386 = vst.msk [vmem:[%s3247_s17 + $0x3d0] sm:$0xff] %vm196_vm0, %v189_v9  ;;  %v193_v61 = vld [vmem:[%s2728_s13 + $0xf0] sm:$0xff]  ;;  %v194_v27 = vld [vmem:[%s2728_s13 + $0xf8] sm:$0xff]  ;;  %v1277_v14 = vmax.f32 %v1144_v24, %v1251_v54  ;;  %v986_v5 = vsel %vm958_vm2, %v953_v28, %v937_v15  ;;  %v1103_v23 = vsel %vm1091_vm4, %v1070_v38, %v1086_v8  ;;  %v1524_v11 = vrot.slane %v3766_v32, 2 }
  0xc6   : > { %2387 = vst.msk [vmem:[%s3247_s17 + $0x3d8] sm:$0xff] %vm196_vm0, %v190_v60  ;;  %2388 = vst.msk [vmem:[%s3247_s17 + $0x3e0] sm:$0xff] %vm196_vm0, %v191_v39  ;;  %v785_v9 = vld [vmem:[#allocation2 + $0xc0] sm:$0xff]  ;;  %v1181_v29 = vsel %vm156_vm7, %v1145_v46, %v1012_v44  ;;  %v1119_v51 = vsel %vm1091_vm4, %v1086_v8, %v1070_v38  ;;  %v881_v54 = vmax.f32 %v3908_v35, %v853_v37  ;;  %v786_v60 = vld [vmem:[#allocation2 + $0xc8] sm:$0xff]  ;;  %v1541_v55 = vrot.slane %v3802_v7, 2 }
  0xc7   : > { %2389 = vst.msk [vmem:[%s3247_s17 + $0x3e8] sm:$0xff] %vm196_vm0, %v192_v49  ;;  %2390 = vst.msk [vmem:[%s3247_s17 + $0x3f0] sm:$0xff] %vm196_vm0, %v193_v61  ;;  %v4039_v52 = vsel %vm157_vm8, %v1277_v14, %v1144_v24  ;;  %v4041_v39 = vmax.f32 %v1181_v29, %v1235_v30  ;;  %v1013_v49 = vmax.f32 %v880_v1, %v986_v5  ;;  %v805_v8 = vrot.slane %v785_v9, 1 }
  0xc8   : > { %2391 = vst.msk [vmem:[%s3247_s17 + $0x3f8] sm:$0xff] %vm196_vm0, %v194_v27  ;;  %v970_v61 = vsel %vm958_vm2, %v937_v15, %v953_v28  ;;  %2470 = vst.msk [vmem:[%s3247_s17 + $0x2a0] sm:$0xff] %vm196_vm0, %v4039_v52  ;;  %v1252_v44 = vsel %vm1224_vm5, %v1219_v34, %v1203_v47  ;;  %v917_v38 = vsel %vm152_vm3, %v881_v54, %v3908_v35  ;;  %v821_v28 = vrot.slane %v786_v60, 1 }
  0xc9   : > { %v1236_v24 = vsel %vm1224_vm5, %v1203_v47, %v1219_v34  ;;  %2471 = vst.msk [vmem:[%s3247_s17 + $0x2a8] sm:$0xff] %vm196_vm0, %v4041_v39  ;;  %v1049_v30 = vsel %vm153_vm6, %v1013_v49, %v880_v1  ;;  %v1014_v15 = vmax.f32 %v917_v38, %v970_v61  ;;  %v938_v27 = vrot.slane %v785_v9, 7  ;;  %v787_v49 = vld [vmem:[#allocation2 + $0xd0] sm:$0xff] }
  0xca   : > { %v1146_v46 = vmax.f32 %v1049_v30, %v1103_v23  ;;  %v954_v48 = vrot.slane %v786_v60, 7  ;;  %v1071_v37 = vrot.slane %v785_v9, 2  ;;  %v1087_v14 = vrot.slane %v786_v60, 2  ;;  %v788_v30 = vld [vmem:[#allocation2 + $0xd8] sm:$0xff] }
  0xcb   : > { %v1147_v5 = vmax.f32 %v1014_v15, %v1119_v51  ;;  %v838_v35 = vsel %vm825_vm1, %v805_v8, %v821_v28  ;;  %v854_v47 = vsel %vm825_vm1, %v821_v28, %v805_v8  ;;  %v1204_v29 = vrot.slane %v785_v9, 6 }
  0xcc   : > { %v1279_v34 = vmax.f32 %v1146_v46, %v1252_v44  ;;  %v882_v54 = vmax.f32 %v785_v9, %v838_v35  ;;  %v987_v1 = vsel %vm958_vm2, %v954_v48, %v938_v27  ;;  %v1104_v23 = vsel %vm1091_vm4, %v1071_v37, %v1087_v14 }
  0xcd   : > { %v1183_v51 = vsel %vm156_vm7, %v1147_v5, %v1014_v15  ;;  %v1120_v61 = vsel %vm1091_vm4, %v1087_v14, %v1071_v37  ;;  %v1220_v38 = vrot.slane %v786_v60, 6  ;;  %v883_v8 = vmax.f32 %v786_v60, %v854_v47 }
  0xce   : > { %v4074_v9 = vsel %vm157_vm8, %v1279_v34, %v1146_v46  ;;  %v4076_v44 = vmax.f32 %v1183_v51, %v1236_v24  ;;  %v1015_v28 = vmax.f32 %v882_v54, %v987_v1  ;;  %v971_v35 = vsel %vm958_vm2, %v938_v27, %v954_v48 }
  0xcf   : > { %2472 = vst.msk [vmem:[%s3247_s17 + $0x2b0] sm:$0xff] %vm196_vm0, %v4074_v9  ;;  %v1253_v15 = vsel %vm1224_vm5, %v1220_v38, %v1204_v29  ;;  %v919_v37 = vsel %vm152_vm3, %v883_v8, %v786_v60  ;;  %v1237_v14 = vsel %vm1224_vm5, %v1204_v29, %v1220_v38  ;;  %v806_v46 = vrot.slane %v787_v49, 1 }
  0xd0   : > { %5382 = vst [vmem:[#allocation19_spill] sm:$0xff] %v4076_v44  ;;  %2473 = vst.msk [vmem:[%s3247_s17 + $0x2b8] sm:$0xff] %vm196_vm0, %v4076_v44  ;;  %v1051_v24 = vsel %vm153_vm6, %v1015_v28, %v882_v54  ;;  %v1016_v27 = vmax.f32 %v919_v37, %v971_v35  ;;  %v822_v48 = vrot.slane %v788_v30, 1  ;;  %v939_v5 = vrot.slane %v787_v49, 7 }
  0xd1   : > { %v1148_v47 = vmax.f32 %v1051_v24, %v1104_v23  ;;  %v955_v34 = vrot.slane %v788_v30, 7  ;;  %v1072_v1 = vrot.slane %v787_v49, 2  ;;  %v1088_v51 = vrot.slane %v788_v30, 2 }
  0xd2   : > { %v1149_v22 = vmax.f32 %v1016_v27, %v1120_v61  ;;  %v839_v60 = vsel %vm825_vm1, %v806_v46, %v822_v48  ;;  %v855_v29 = vsel %vm825_vm1, %v822_v48, %v806_v46  ;;  %v1205_v38 = vrot.slane %v787_v49, 6 }
  0xd3   : > { %v1281_v8 = vmax.f32 %v1148_v47, %v1253_v15  ;;  %v884_v31 = vmax.f32 %v787_v49, %v839_v60  ;;  %v988_v54 = vsel %vm958_vm2, %v955_v34, %v939_v5  ;;  %v1105_v23 = vsel %vm1091_vm4, %v1072_v1, %v1088_v51 }
  0xd4   : > { %v1185_v61 = vsel %vm156_vm7, %v1149_v22, %v1016_v27  ;;  %v1121_v28 = vsel %vm1091_vm4, %v1088_v51, %v1072_v1  ;;  %v1221_v35 = vrot.slane %v788_v30, 6  ;;  %v885_v37 = vmax.f32 %v788_v30, %v855_v29 }
  0xd5   : > { %v4108_v46 = vsel %vm157_vm8, %v1281_v8, %v1148_v47  ;;  %v4110_v49 = vmax.f32 %v1185_v61, %v1237_v14  ;;  %v1017_v15 = vmax.f32 %v884_v31, %v988_v54  ;;  %v972_v24 = vsel %vm958_vm2, %v939_v5, %v955_v34 }
  0xd6   : > { %5383 = vst [vmem:[#allocation20_spill] sm:$0xff] %v4108_v46  ;;  %2474 = vst.msk [vmem:[%s3247_s17 + $0x2c0] sm:$0xff] %vm196_vm0, %v4108_v46  ;;  %v1254_v22 = vsel %vm1224_vm5, %v1221_v35, %v1205_v38  ;;  %v921_v27 = vsel %vm152_vm3, %v885_v37, %v788_v30  ;;  %v1238_v48 = vsel %vm1224_vm5, %v1205_v38, %v1221_v35  ;;  %v1360_v47 = vrot.slane %v3630_v25, 6 }
  0xd7   : > { %5384 = vst [vmem:[#allocation21_spill] sm:$0xff] %v4110_v49  ;;  %2475 = vst.msk [vmem:[%s3247_s17 + $0x2c8] sm:$0xff] %vm196_vm0, %v4110_v49  ;;  %v1053_v14 = vsel %vm153_vm6, %v1017_v15, %v884_v31  ;;  %v1018_v5 = vmax.f32 %v921_v27, %v972_v24  ;;  %v1376_v34 = vrot.slane %v3632_v26, 6  ;;  %v4132_v1 = vrot.slane %v3630_v25, %v3063_v50 }
  0xd8   : > { %v1150_v51 = vmax.f32 %v1053_v14, %v1105_v23  ;;  %v1520_v30 = vrot.slane %v3630_v25, 2  ;;  %v1536_v60 = vrot.slane %v3632_v26, 2  ;;  %v4138_v29 = vrot.slane %v3632_v26, %v3075_v57 }
  0xd9   : > { %v1151_v38 = vmax.f32 %v1018_v5, %v1121_v28  ;;  %v1408_v31 = vsel %vm1224_vm5, %v1376_v34, %v1360_v47  ;;  %v1392_v8 = vsel %vm1224_vm5, %v1360_v47, %v1376_v34  ;;  %v1361_v54 = vrot.slane %v3664_v16, 6 }
  0xda   : > { %v1283_v23 = vmax.f32 %v1150_v51, %v1254_v22  ;;  %v1490_v61 = vsel %vm157_vm8, %v1408_v31, %v4132_v1  ;;  %v1552_v35 = vsel %vm1091_vm4, %v1520_v30, %v1536_v60  ;;  %v1568_v28 = vsel %vm1091_vm4, %v1536_v60, %v1520_v30 }
  0xdb   : > { %v1187_v37 = vsel %vm156_vm7, %v1151_v38, %v1018_v5  ;;  %v4154_v15 = vmax.f32 %v1490_v61, %v1552_v35  ;;  %v1651_v24 = vsel %vm156_vm7, %v1568_v28, %v4138_v29  ;;  %v1377_v22 = vrot.slane %v3666_v21, 6 }
  0xdc   : > { %v4162_v27 = vsel %vm157_vm8, %v1283_v23, %v1150_v51  ;;  %v4164_v47 = vmax.f32 %v1187_v37, %v1238_v48  ;;  %v4166_v14 = vmax.f32 %v1392_v8, %v1651_v24  ;;  %v4170_v34 = vrot.slane %v3664_v16, %v3063_v50 }
  0xdd   : > { %5385 = vst [vmem:[#allocation22_spill] sm:$0xff] %v4154_v15  ;;  %5386 = vst [vmem:[#allocation23_spill] sm:$0xff] %v4162_v27  ;;  %v1409_v5 = vsel %vm1224_vm5, %v1377_v22, %v1361_v54  ;;  %v1521_v51 = vrot.slane %v3664_v16, 2  ;;  %v1537_v48 = vrot.slane %v3666_v21, 2  ;;  %v1393_v30 = vsel %vm1224_vm5, %v1361_v54, %v1377_v22 }
  0xde   : > { %5387 = vst [vmem:[#allocation24_spill] sm:$0xff] %v4166_v14  ;;  %2476 = vst.msk [vmem:[%s3247_s17 + $0x2d0] sm:$0xff] %vm196_vm0, %v4162_v27  ;;  %v1492_v60 = vsel %vm157_vm8, %v1409_v5, %v4170_v34  ;;  %v4195_v38 = vrot.slane %v3666_v21, %v3075_v57  ;;  %v1362_v31 = vrot.slane %v3698_v10, 6  ;;  %v1378_v8 = vrot.slane %v3700_v33, 6 }
  0xdf   : > { %2482 = vst.msk [vmem:[%s3247_s17 + $0x100] sm:$0xff] %vm196_vm0, %v4154_v15  ;;  %2477 = vst.msk [vmem:[%s3247_s17 + $0x2d8] sm:$0xff] %vm196_vm0, %v4164_v47  ;;  %v1553_v54 = vsel %vm1091_vm4, %v1521_v51, %v1537_v48  ;;  %v1569_v23 = vsel %vm1091_vm4, %v1537_v48, %v1521_v51  ;;  %v4205_v61 = vrot.slane %v3698_v10, %v3063_v50  ;;  %v1522_v35 = vrot.slane %v3698_v10, 2 }
  0xe0   : > { %2483 = vst.msk [vmem:[%s3247_s17 + $0x108] sm:$0xff] %vm196_vm0, %v4166_v14  ;;  %v4208_v28 = vmax.f32 %v1492_v60, %v1553_v54  ;;  %v1653_v37 = vsel %vm156_vm7, %v1569_v23, %v4195_v38  ;;  %v1410_v24 = vsel %vm1224_vm5, %v1378_v8, %v1362_v31  ;;  %v1538_v22 = vrot.slane %v3700_v33, 2 }
  0xe1   : > { %v4216_v5 = vmax.f32 %v1393_v30, %v1653_v37  ;;  %v1494_v51 = vsel %vm157_vm8, %v1410_v24, %v4205_v61  ;;  %v1394_v48 = vsel %vm1224_vm5, %v1362_v31, %v1378_v8  ;;  %v4225_v60 = vrot.slane %v3700_v33, %v3075_v57 }
  0xe2   : > { %5388 = vst [vmem:[#allocation25_spill] sm:$0xff] %v4208_v28  ;;  %2484 = vst.msk [vmem:[%s3247_s17 + $0x110] sm:$0xff] %vm196_vm0, %v4208_v28  ;;  %v1554_v54 = vsel %vm1091_vm4, %v1522_v35, %v1538_v22  ;;  %v1570_v30 = vsel %vm1091_vm4, %v1538_v22, %v1522_v35  ;;  %v1363_v23 = vrot.slane %v3732_v40, 6  ;;  %v1379_v37 = vrot.slane %v3734_v63, 6 }
  0xe3   : > { %5389 = vst [vmem:[#allocation26_spill] sm:$0xff] %v4216_v5  ;;  %2485 = vst.msk [vmem:[%s3247_s17 + $0x118] sm:$0xff] %vm196_vm0, %v4216_v5  ;;  %v4239_v31 = vmax.f32 %v1494_v51, %v1554_v54  ;;  %v1655_v8 = vsel %vm156_vm7, %v1570_v30, %v4225_v60  ;;  %v4246_v24 = vrot.slane %v3732_v40, %v3063_v50  ;;  %v1523_v35 = vrot.slane %v3732_v40, 2 }
  0xe4   : > { %v4249_v22 = vmax.f32 %v1394_v48, %v1655_v8  ;;  %v1411_v20 = vsel %vm1224_vm5, %v1379_v37, %v1363_v23  ;;  %v1395_v51 = vsel %vm1224_vm5, %v1363_v23, %v1379_v37  ;;  %v4264_v30 = vrot.slane %v3734_v63, %v3075_v57 }
  0xe5   : > { %5390 = vst [vmem:[#allocation27_spill] sm:$0xff] %v4239_v31  ;;  %2486 = vst.msk [vmem:[%s3247_s17 + $0x120] sm:$0xff] %vm196_vm0, %v4239_v31  ;;  %v1496_v54 = vsel %vm157_vm8, %v1411_v20, %v4246_v24  ;;  %v1364_v48 = vrot.slane %v3766_v32, 6  ;;  %v1380_v8 = vrot.slane %v3768_v19, 6  ;;  %v1555_v23 = vsel %vm1091_vm4, %v1523_v35, %v1539_v36 }
  0xe6   : > { %5391 = vst [vmem:[#allocation28_spill] sm:$0xff] %v4249_v22  ;;  %2487 = vst.msk [vmem:[%s3247_s17 + $0x128] sm:$0xff] %vm196_vm0, %v4249_v22  ;;  %v1571_v37 = vsel %vm1091_vm4, %v1539_v36, %v1523_v35  ;;  %v4277_v20 = vrot.slane %v3766_v32, %v3063_v50  ;;  %v4280_v0 = vmax.f32 %v1496_v54, %v1555_v23  ;;  %v1540_v31 = vrot.slane %v3768_v19, 2 }
  0xe7   : > { %v1657_v3 = vsel %vm156_vm7, %v1571_v37, %v4264_v30  ;;  %v1412_v22 = vsel %vm1224_vm5, %v1380_v8, %v1364_v48  ;;  %v1396_v35 = vsel %vm1224_vm5, %v1364_v48, %v1380_v8  ;;  %v4297_v54 = vrot.slane %v3768_v19, %v3075_v57 }
  0xe8   : > { %5392 = vst [vmem:[#allocation29_spill] sm:$0xff] %v4280_v0  ;;  %v4288_v5 = vmax.f32 %v1395_v51, %v1657_v3  ;;  %v1498_v36 = vsel %vm157_vm8, %v1412_v22, %v4277_v20  ;;  %2488 = vst.msk [vmem:[%s3247_s17 + $0x130] sm:$0xff] %vm196_vm0, %v4280_v0  ;;  %v1556_v23 = vsel %vm1091_vm4, %v1524_v11, %v1540_v31  ;;  %v1365_v51 = vrot.slane %v3800_v18, 6 }
  0xe9   : > { %v1572_v3 = vsel %vm1091_vm4, %v1540_v31, %v1524_v11  ;;  %v1381_v22 = vrot.slane %v3802_v7, 6  ;;  %v4311_v48 = vmax.f32 %v1498_v36, %v1556_v23  ;;  %v4318_v37 = vrot.slane %v3800_v18, %v3063_v50 }
  0xea   : > { %5393 = vst [vmem:[#allocation30_spill] sm:$0xff] %v4288_v5  ;;  %2489 = vst.msk [vmem:[%s3247_s17 + $0x138] sm:$0xff] %vm196_vm0, %v4288_v5  ;;  %v1659_v8 = vsel %vm156_vm7, %v1572_v3, %v4297_v54  ;;  %v1525_v11 = vrot.slane %v3800_v18, 2  ;;  %v4336_v3 = vrot.slane %v3802_v7, %v3075_v57  ;;  %v1542_v14 = vrot.slane %v3842_v53, 2  ;;  %v5433_v56 = vld [vmem:[#allocation26_spill] sm:$0xff] }
  0xeb   : > { %5394 = vst [vmem:[#allocation31_spill] sm:$0xff] %v4311_v48  ;;  %v4321_v31 = vmax.f32 %v1396_v35, %v1659_v8  ;;  %v1413_v0 = vsel %vm1224_vm5, %v1381_v22, %v1365_v51  ;;  %v1397_v36 = vsel %vm1224_vm5, %v1365_v51, %v1381_v22  ;;  %2490 = vst.msk [vmem:[%s3247_s17 + $0x140] sm:$0xff] %vm196_vm0, %v4311_v48  ;;  %v1366_v35 = vrot.slane %v3840_v6, 6  ;;  %v4984_v43 = vld [vmem:[%s3247_s17 + $0x118] sm:$0xff] }
  0xec   : > { %v1500_v23 = vsel %vm157_vm8, %v1413_v0, %v4318_v37  ;;  %v1382_v8 = vrot.slane %v3842_v53, 6  ;;  %v1557_v51 = vsel %vm1091_vm4, %v1525_v11, %v1541_v55  ;;  %v1573_v22 = vsel %vm1091_vm4, %v1541_v55, %v1525_v11 }
  0xed   : > { %5395 = vst [vmem:[#allocation32_spill] sm:$0xff] %v4321_v31  ;;  %2491 = vst.msk [vmem:[%s3247_s17 + $0x148] sm:$0xff] %vm196_vm0, %v4321_v31  ;;  %v4349_v0 = vrot.slane %v3840_v6, %v3063_v50  ;;  %v1526_v48 = vrot.slane %v3840_v6, 2  ;;  %v4352_v5 = vmax.f32 %v1500_v23, %v1557_v51  ;;  %v1661_v28 = vsel %vm156_vm7, %v1573_v22, %v4336_v3 }
  0xee   : > { %v1414_v31 = vsel %vm1224_vm5, %v1382_v8, %v1366_v35  ;;  %v4360_v15 = vmax.f32 %v1397_v36, %v1661_v28  ;;  %v1398_v11 = vsel %vm1224_vm5, %v1366_v35, %v1382_v8  ;;  %v4369_v23 = vrot.slane %v3842_v53, %v3075_v57 }
  0xef   : > { %5396 = vst [vmem:[#allocation33_spill] sm:$0xff] %v4352_v5  ;;  %v1502_v55 = vsel %vm157_vm8, %v1414_v31, %v4349_v0  ;;  %2492 = vst.msk [vmem:[%s3247_s17 + $0x150] sm:$0xff] %vm196_vm0, %v4352_v5  ;;  %v1558_v51 = vsel %vm1091_vm4, %v1526_v48, %v1542_v14  ;;  %v1574_v28 = vsel %vm1091_vm4, %v1542_v14, %v1526_v48  ;;  %v1367_v36 = vrot.slane %v3953_v13, 6 }
  0xf0   : > { %5397 = vst [vmem:[#allocation34_spill] sm:$0xff] %v4360_v15  ;;  %v1383_v31 = vrot.slane %v3956_v41, 6  ;;  %2493 = vst.msk [vmem:[%s3247_s17 + $0x158] sm:$0xff] %vm196_vm0, %v4360_v15  ;;  %v4383_v35 = vmax.f32 %v1502_v55, %v1558_v51  ;;  %v1663_v8 = vsel %vm156_vm7, %v1574_v28, %v4369_v23  ;;  %v4390_v22 = vrot.slane %v3953_v13, %v3063_v50 }
  0xf1   : > { %v1527_v14 = vrot.slane %v3953_v13, 2  ;;  %v4393_v48 = vmax.f32 %v1398_v11, %v1663_v8  ;;  %v1543_v42 = vrot.slane %v3956_v41, 2  ;;  %v4408_v28 = vrot.slane %v3956_v41, %v3075_v57 }
  0xf2   : > { %5398 = vst [vmem:[#allocation35_spill] sm:$0xff] %v4383_v35  ;;  %v1415_v5 = vsel %vm1224_vm5, %v1383_v31, %v1367_v36  ;;  %v1399_v55 = vsel %vm1224_vm5, %v1367_v36, %v1383_v31  ;;  %2494 = vst.msk [vmem:[%s3247_s17 + $0x160] sm:$0xff] %vm196_vm0, %v4383_v35  ;;  %v1368_v11 = vrot.slane %v4039_v52, 6  ;;  %v1384_v8 = vrot.slane %v4041_v39, 6 }
  0xf3   : > { %5399 = vst [vmem:[#allocation36_spill] sm:$0xff] %v4393_v48  ;;  %v1504_v51 = vsel %vm157_vm8, %v1415_v5, %v4390_v22  ;;  %2495 = vst.msk [vmem:[%s3247_s17 + $0x168] sm:$0xff] %vm196_vm0, %v4393_v48  ;;  %v1559_v36 = vsel %vm1091_vm4, %v1527_v14, %v1543_v42  ;;  %v1575_v31 = vsel %vm1091_vm4, %v1543_v42, %v1527_v14  ;;  %v1528_v35 = vrot.slane %v4039_v52, 2 }
  0xf4   : > { %v4421_v5 = vrot.slane %v4039_v52, %v3063_v50  ;;  %v4424_v15 = vmax.f32 %v1504_v51, %v1559_v36  ;;  %v1665_v12 = vsel %vm156_vm7, %v1575_v31, %v4408_v28  ;;  %v1416_v48 = vsel %vm1224_vm5, %v1384_v8, %v1368_v11 }
  0xf5   : > { %v1544_v45 = vrot.slane %v4041_v39, 2  ;;  %v4432_v4 = vmax.f32 %v1399_v55, %v1665_v12  ;;  %v1400_v14 = vsel %vm1224_vm5, %v1368_v11, %v1384_v8  ;;  %v4441_v51 = vrot.slane %v4041_v39, %v3075_v57 }
  0xf6   : > { %5400 = vst [vmem:[#allocation37_spill] sm:$0xff] %v4424_v15  ;;  %v1506_v42 = vsel %vm157_vm8, %v1416_v48, %v4421_v5  ;;  %2496 = vst.msk [vmem:[%s3247_s17 + $0x170] sm:$0xff] %vm196_vm0, %v4424_v15  ;;  %v1369_v55 = vrot.slane %v4074_v9, 6  ;;  %v1385_v48 = vrot.slane %v4076_v44, 6  ;;  %v4460_v31 = vrot.slane %v4074_v9, %v3063_v50 }
  0xf7   : > { %5401 = vst [vmem:[#allocation38_spill] sm:$0xff] %v4432_v4  ;;  %5402 = vst [vmem:[#allocation39_spill] sm:$0xff] %v4441_v51  ;;  %v1560_v36 = vsel %vm1091_vm4, %v1528_v35, %v1544_v45  ;;  %v1576_v12 = vsel %vm1091_vm4, %v1544_v45, %v1528_v35  ;;  %v1529_v15 = vrot.slane %v4074_v9, 2  ;;  %v1545_v2 = vrot.slane %v4076_v44, 2 }
  0xf8   : > { %2497 = vst.msk [vmem:[%s3247_s17 + $0x178] sm:$0xff] %vm196_vm0, %v4432_v4  ;;  %v1698_v11 = vmax.f32 %v1506_v42, %v1560_v36  ;;  %v1667_v8 = vsel %vm156_vm7, %v1576_v12, %v4441_v51  ;;  %5403 = vst [vmem:[#allocation40_spill] sm:$0xff] %v4460_v31  ;;  %v1417_v35 = vsel %vm1224_vm5, %v1385_v48, %v1369_v55  ;;  %v1386_v12 = vrot.slane %v4110_v49, 6 }
  0xf9   : > { %v1699_v45 = vmax.f32 %v1400_v14, %v1667_v8  ;;  %v1401_v4 = vsel %vm1224_vm5, %v1369_v55, %v1385_v48  ;;  %v1508_v42 = vsel %vm157_vm8, %v1417_v35, %v4460_v31  ;;  %v4475_v36 = vrot.slane %v4076_v44, %v3075_v57 }
  0xfa   : > { %2498 = vst.msk [vmem:[%s3247_s17 + $0x180] sm:$0xff] %vm196_vm0, %v1698_v11  ;;  %v1370_v14 = vrot.slane %v4108_v46, 6  ;;  %v1561_v55 = vsel %vm1091_vm4, %v1529_v15, %v1545_v2  ;;  %v1577_v48 = vsel %vm1091_vm4, %v1545_v2, %v1529_v15  ;;  %v4487_v8 = vrot.slane %v4108_v46, %v3063_v50 }
  0xfb   : > { %5404 = vst [vmem:[#allocation41_spill] sm:$0xff] %v4475_v36  ;;  %2499 = vst.msk [vmem:[%s3247_s17 + $0x188] sm:$0xff] %vm196_vm0, %v1699_v45  ;;  %v1530_v35 = vrot.slane %v4108_v46, 2  ;;  %v1700_v58 = vmax.f32 %v1508_v42, %v1561_v55  ;;  %v1669_v17 = vsel %vm156_vm7, %v1577_v48, %v4475_v36  ;;  %v1546_v59 = vrot.slane %v4110_v49, 2  ;;  %v2536_v36 = vld [vmem:[%s3247_s17 + $0x1d0] sm:$0xff] }
  0xfc   : > { %5405 = vst [vmem:[#allocation42_spill] sm:$0xff] %v4487_v8  ;;  %v1418_v62 = vsel %vm1224_vm5, %v1386_v12, %v1370_v14  ;;  %v1701_v2 = vmax.f32 %v1401_v4, %v1669_v17  ;;  %v1402_v31 = vsel %vm1224_vm5, %v1370_v14, %v1386_v12  ;;  %v4503_v42 = vrot.slane %v4110_v49, %v3075_v57  ;;  %v2534_v14 = vld [vmem:[%s3247_s17 + $0x1c0] sm:$0xff]  ;;  %v2535_v12 = vld [vmem:[%s3247_s17 + $0x1c8] sm:$0xff]  ;;  %v2537_v49 = vld [vmem:[%s3247_s17 + $0x1d8] sm:$0xff] }
  0xfd   : > { %v1510_v15 = vsel %vm157_vm8, %v1418_v62, %v4487_v8  ;;  %2500 = vst.msk [vmem:[%s3247_s17 + $0x190] sm:$0xff] %vm196_vm0, %v1700_v58  ;;  %v1562_v55 = vsel %vm1091_vm4, %v1530_v35, %v1546_v59  ;;  %v1578_v17 = vsel %vm1091_vm4, %v1546_v59, %v1530_v35  ;;  %v1371_v4 = vrot.slane %v4162_v27, 6 }
  0xfe   : > { %5406 = vst [vmem:[#allocation43_spill] sm:$0xff] %v4503_v42  ;;  %v1387_v62 = vrot.slane %v4164_v47, 6  ;;  %2501 = vst.msk [vmem:[%s3247_s17 + $0x198] sm:$0xff] %vm196_vm0, %v1701_v2  ;;  %v1702_v48 = vmax.f32 %v1510_v15, %v1562_v55  ;;  %v1671_v8 = vsel %vm156_vm7, %v1578_v17, %v4503_v42  ;;  %v4522_v59 = vrot.slane %v4162_v27, %v3063_v50  ;;  %v2538_v17 = vld [vmem:[%s3247_s17 + $0x1e0] sm:$0xff]  ;;  %v2539_v42 = vld [vmem:[%s3247_s17 + $0x1e8] sm:$0xff] }
  0xff   : > { %v1531_v35 = vrot.slane %v4162_v27, 2  ;;  %v1703_v46 = vmax.f32 %v1402_v31, %v1671_v8  ;;  %v1547_v15 = vrot.slane %v4164_v47, 2  ;;  %v4541_v31 = vrot.slane %v4164_v47, %v3075_v57 }
 0x100   : > { %5407 = vst [vmem:[#allocation44_spill] sm:$0xff] %v4522_v59  ;;  %v1419_v44 = vsel %vm1224_vm5, %v1387_v62, %v1371_v4  ;;  %v1403_v55 = vsel %vm1224_vm5, %v1371_v4, %v1387_v62  ;;  %2502 = vst.msk [vmem:[%s3247_s17 + $0x1a0] sm:$0xff] %vm196_vm0, %v1702_v48  ;;  %v1793_v8 = vmax.f32 %v2534_v14, %v1698_v11 }
 0x101   : > { %v1512_v50 = vsel %vm157_vm8, %v1419_v44, %v4522_v59  ;;  %v1794_v27 = vmax.f32 %v2535_v12, %v1699_v45  ;;  %2503 = vst.msk [vmem:[%s3247_s17 + $0x1a8] sm:$0xff] %vm196_vm0, %v1703_v46  ;;  %v1563_v4 = vsel %vm1091_vm4, %v1531_v35, %v1547_v15  ;;  %v1579_v62 = vsel %vm1091_vm4, %v1547_v15, %v1531_v35  ;;  %v2540_v59 = vld [vmem:[%s3247_s17 + $0x1f0] sm:$0xff]  ;;  %v2541_v12 = vld [vmem:[%s3247_s17 + $0x1f8] sm:$0xff] }
 0x102   : > { %v1795_v51 = vmax.f32 %v2536_v36, %v1700_v58  ;;  %v1796_v44 = vmax.f32 %v2537_v49, %v1701_v2  ;;  %v1704_v57 = vmax.f32 %v1512_v50, %v1563_v4  ;;  %v1673_v11 = vsel %vm156_vm7, %v1579_v62, %v4541_v31  ;;  %2562 = vst.msk [vmem:[%s3247_s17 + $0x1c0] sm:$0xff] %vm196_vm0, %v1793_v8 }
 0x103   : > { %2563 = vst.msk [vmem:[%s3247_s17 + $0x1c8] sm:$0xff] %vm196_vm0, %v1794_v27  ;;  %v1797_v45 = vmax.f32 %v2538_v17, %v1702_v48  ;;  %v1798_v14 = vmax.f32 %v2539_v42, %v1703_v46  ;;  %v1705_v35 = vmax.f32 %v1403_v55, %v1673_v11  ;;  %v1843_v58 = vrot.slane %v3630_v25, 4 }
 0x104   : > { %2564 = vst.msk [vmem:[%s3247_s17 + $0x1d0] sm:$0xff] %vm196_vm0, %v1795_v51  ;;  %2565 = vst.msk [vmem:[%s3247_s17 + $0x1d8] sm:$0xff] %vm196_vm0, %v1796_v44  ;;  %v1859_v49 = vrot.slane %v3632_v26, 4  ;;  %v1844_v36 = vrot.slane %v3664_v16, 4  ;;  %v1799_v46 = vmax.f32 %v2540_v59, %v1704_v57  ;;  %v1860_v27 = vrot.slane %v3666_v21, 4 }
 0x105   : > { %2504 = vst.msk [vmem:[%s3247_s17 + $0x1b0] sm:$0xff] %vm196_vm0, %v1704_v57  ;;  %2566 = vst.msk [vmem:[%s3247_s17 + $0x1e0] sm:$0xff] %vm196_vm0, %v1797_v45  ;;  %v1845_v51 = vrot.slane %v3698_v10, 4  ;;  %v1861_v2 = vrot.slane %v3700_v33, 4  ;;  %v1800_v42 = vmax.f32 %v2541_v12, %v1705_v35  ;;  %v1846_v55 = vrot.slane %v3732_v40, 4 }
 0x106   : > { %2567 = vst.msk [vmem:[%s3247_s17 + $0x1e8] sm:$0xff] %vm196_vm0, %v1798_v14  ;;  %2505 = vst.msk [vmem:[%s3247_s17 + $0x1b8] sm:$0xff] %vm196_vm0, %v1705_v35  ;;  %v1876_v48 = vsel %vm1873_vm9, %v1843_v58, %v1859_v49  ;;  %v1892_v15 = vsel %vm1873_vm9, %v1859_v49, %v1843_v58  ;;  %v1877_v50 = vsel %vm1873_vm9, %v1844_v36, %v1860_v27 }
 0x107   : > { %2568 = vst.msk [vmem:[%s3247_s17 + $0x1f0] sm:$0xff] %vm196_vm0, %v1799_v46  ;;  %v1914_v59 = vsel %vm161_vm10, %v1892_v15, %v4132_v1  ;;  %v1951_v17 = vsel %vm160_vm11, %v1892_v15, %v4138_v29  ;;  %v1893_v8 = vsel %vm1873_vm9, %v1860_v27, %v1844_v36  ;;  %2569 = vst.msk [vmem:[%s3247_s17 + $0x1f8] sm:$0xff] %vm196_vm0, %v1800_v42  ;;  %v1864_v46 = vrot.slane %v3802_v7, 4 }
 0x108   : > { %v1982_v4 = vmax.f32 %v1914_v59, %v1876_v48  ;;  %v1983_v62 = vmax.f32 %v1876_v48, %v1951_v17  ;;  %v1916_v1 = vsel %vm161_vm10, %v1893_v8, %v4170_v34  ;;  %v1953_v29 = vsel %vm160_vm11, %v1893_v8, %v4195_v38 }
 0x109   : > { %v1984_v44 = vmax.f32 %v1916_v1, %v1877_v50  ;;  %v1985_v57 = vmax.f32 %v1877_v50, %v1953_v29  ;;  %v1878_v11 = vsel %vm1873_vm9, %v1845_v51, %v1861_v2  ;;  %v1894_v45 = vsel %vm1873_vm9, %v1861_v2, %v1845_v51 }
 0x10a   : > { %v4606_v14 = vmax.f32 %v3630_v25, %v1982_v4  ;;  %v4609_v12 = vmax.f32 %v3632_v26, %v1983_v62  ;;  %v1918_v34 = vsel %vm161_vm10, %v1894_v45, %v4205_v61  ;;  %v1955_v38 = vsel %vm160_vm11, %v1894_v45, %v4225_v60 }
 0x10b   : > { %v4618_v35 = vmax.f32 %v3664_v16, %v1984_v44  ;;  %v4621_v58 = vmax.f32 %v3666_v21, %v1985_v57  ;;  %v1986_v49 = vmax.f32 %v1918_v34, %v1878_v11  ;;  %v1987_v25 = vmax.f32 %v1878_v11, %v1955_v38 }
 0x10c   : > { %2046 = vst.msk [vmem:[%s3247_s17 + $0x20] sm:$0xff] %vm196_vm0, %v4606_v14  ;;  %2047 = vst.msk [vmem:[%s3247_s17 + $0x28] sm:$0xff] %vm196_vm0, %v4609_v12  ;;  %v1862_v26 = vrot.slane %v3734_v63, 4  ;;  %v1847_v61 = vrot.slane %v3766_v32, 4  ;;  %v1863_v16 = vrot.slane %v3768_v19, 4  ;;  %v1848_v60 = vrot.slane %v3800_v18, 4 }
 0x10d   : > { %2048 = vst.msk [vmem:[%s3247_s17 + $0x30] sm:$0xff] %vm196_vm0, %v4618_v35  ;;  %2049 = vst.msk [vmem:[%s3247_s17 + $0x38] sm:$0xff] %vm196_vm0, %v4621_v58  ;;  %v4640_v21 = vmax.f32 %v3698_v10, %v1986_v49  ;;  %v4643_v36 = vmax.f32 %v3700_v33, %v1987_v25  ;;  %v1849_v27 = vrot.slane %v3840_v6, 4  ;;  %v1850_v4 = vrot.slane %v3953_v13, 4 }
 0x10e   : > { %v1879_v51 = vsel %vm1873_vm9, %v1846_v55, %v1862_v26  ;;  %v1895_v2 = vsel %vm1873_vm9, %v1862_v26, %v1846_v55  ;;  %v1880_v42 = vsel %vm1873_vm9, %v1847_v61, %v1863_v16  ;;  %v1896_v10 = vsel %vm1873_vm9, %v1863_v16, %v1847_v61 }
 0x10f   : > { %2050 = vst.msk [vmem:[%s3247_s17 + $0x40] sm:$0xff] %vm196_vm0, %v4640_v21  ;;  %2051 = vst.msk [vmem:[%s3247_s17 + $0x48] sm:$0xff] %vm196_vm0, %v4643_v36  ;;  %v1920_v33 = vsel %vm161_vm10, %v1895_v2, %v4246_v24  ;;  %v1957_v48 = vsel %vm160_vm11, %v1895_v2, %v4264_v30  ;;  %v1922_v15 = vsel %vm161_vm10, %v1896_v10, %v4277_v20  ;;  %v1865_v20 = vrot.slane %v3842_v53, 4 }
 0x110   : > { %v1959_v55 = vsel %vm160_vm11, %v1896_v10, %v4297_v54  ;;  %v1988_v59 = vmax.f32 %v1920_v33, %v1879_v51  ;;  %v1989_v17 = vmax.f32 %v1879_v51, %v1957_v48  ;;  %v1990_v50 = vmax.f32 %v1922_v15, %v1880_v42  ;;  %v5409_v10 = vld [vmem:[#allocation19_spill] sm:$0xff]  ;;  %v5410_v48 = vld [vmem:[#allocation20_spill] sm:$0xff] }
 0x111   : > { %v1991_v8 = vmax.f32 %v1880_v42, %v1959_v55  ;;  %v1881_v24 = vsel %vm1873_vm9, %v1848_v60, %v1864_v46  ;;  %v1897_v30 = vsel %vm1873_vm9, %v1864_v46, %v1848_v60  ;;  %v1866_v34 = vrot.slane %v3956_v41, 4 }
 0x112   : > { %v4680_v54 = vmax.f32 %v3732_v40, %v1988_v59  ;;  %v4683_v62 = vmax.f32 %v3734_v63, %v1989_v17  ;;  %v4686_v1 = vmax.f32 %v3766_v32, %v1990_v50  ;;  %v1924_v44 = vsel %vm161_vm10, %v1897_v30, %v4318_v37  ;;  %v5412_v50 = vld [vmem:[#allocation23_spill] sm:$0xff] }
 0x113   : > { %v4689_v29 = vmax.f32 %v3768_v19, %v1991_v8  ;;  %v1961_v57 = vsel %vm160_vm11, %v1897_v30, %v4336_v3  ;;  %v1882_v40 = vsel %vm1873_vm9, %v1849_v27, %v1865_v20  ;;  %v1898_v63 = vsel %vm1873_vm9, %v1865_v20, %v1849_v27 }
 0x114   : > { %2052 = vst.msk [vmem:[%s3247_s17 + $0x50] sm:$0xff] %vm196_vm0, %v4680_v54  ;;  %2053 = vst.msk [vmem:[%s3247_s17 + $0x58] sm:$0xff] %vm196_vm0, %v4683_v62  ;;  %v1992_v32 = vmax.f32 %v1924_v44, %v1881_v24  ;;  %v1993_v19 = vmax.f32 %v1881_v24, %v1961_v57  ;;  %v1926_v37 = vsel %vm161_vm10, %v1898_v63, %v4349_v0  ;;  %v1851_v38 = vrot.slane %v4039_v52, 4 }
 0x115   : > { %2054 = vst.msk [vmem:[%s3247_s17 + $0x60] sm:$0xff] %vm196_vm0, %v4686_v1  ;;  %2055 = vst.msk [vmem:[%s3247_s17 + $0x68] sm:$0xff] %vm196_vm0, %v4689_v29  ;;  %v1963_v3 = vsel %vm160_vm11, %v1898_v63, %v4369_v23  ;;  %v1994_v11 = vmax.f32 %v1926_v37, %v1882_v40  ;;  %v1867_v0 = vrot.slane %v4041_v39, 4  ;;  %v1852_v26 = vrot.slane %v4074_v9, 4  ;;  %v2583_v63 = vld [vmem:[%s3247_s17 + $0xe8] sm:$0xff]  ;;  %v5415_v37 = vld [vmem:[#allocation42_spill] sm:$0xff] }
 0x116   : > { %v1995_v45 = vmax.f32 %v1882_v40, %v1963_v3  ;;  %v4722_v49 = vmax.f32 %v3800_v18, %v1992_v32  ;;  %v4725_v25 = vmax.f32 %v3802_v7, %v1993_v19  ;;  %v1883_v16 = vsel %vm1873_vm9, %v1850_v4, %v1866_v34 }
 0x117   : > { %v4730_v23 = vmax.f32 %v3840_v6, %v1994_v11  ;;  %v1899_v18 = vsel %vm1873_vm9, %v1866_v34, %v1850_v4  ;;  %v1900_v60 = vsel %vm1873_vm9, %v1867_v0, %v1851_v38  ;;  %v1868_v33 = vrot.slane %v5409_v10, 4  ;;  %v2582_v4 = vld [vmem:[%s3247_s17 + $0xe0] sm:$0xff] }
 0x118   : > { %v4733_v61 = vmax.f32 %v3842_v53, %v1995_v45  ;;  %2056 = vst.msk [vmem:[%s3247_s17 + $0x70] sm:$0xff] %vm196_vm0, %v4722_v49  ;;  %2057 = vst.msk [vmem:[%s3247_s17 + $0x78] sm:$0xff] %vm196_vm0, %v4725_v25  ;;  %v1928_v7 = vsel %vm161_vm10, %v1899_v18, %v4390_v22  ;;  %v1965_v6 = vsel %vm160_vm11, %v1899_v18, %v4408_v28  ;;  %v5408_v28 = vld [vmem:[#allocation39_spill] sm:$0xff]  ;;  %v1853_v15 = vrot.slane %v5410_v48, 4 }
 0x119   : > { %v1884_v53 = vsel %vm1873_vm9, %v1851_v38, %v1867_v0  ;;  %2058 = vst.msk [vmem:[%s3247_s17 + $0x80] sm:$0xff] %vm196_vm0, %v4730_v23  ;;  %v1996_v46 = vmax.f32 %v1928_v7, %v1883_v16  ;;  %v1997_v27 = vmax.f32 %v1883_v16, %v1965_v6  ;;  %v1930_v22 = vsel %vm161_vm10, %v1900_v60, %v4421_v5  ;;  %v5411_v5 = vld [vmem:[#allocation21_spill] sm:$0xff]  ;;  %v5416_v11 = vld [vmem:[#allocation43_spill] sm:$0xff] }
 0x11a   : > { %2059 = vst.msk [vmem:[%s3247_s17 + $0x88] sm:$0xff] %vm196_vm0, %v4733_v61  ;;  %v1967_v51 = vsel %vm160_vm11, %v1900_v60, %v5408_v28  ;;  %v1998_v2 = vmax.f32 %v1930_v22, %v1884_v53  ;;  %v1869_v17 = vrot.slane %v5411_v5, 4  ;;  %v1854_v8 = vrot.slane %v5412_v50, 4  ;;  %v2074_v18 = vld [vmem:[%s3247_s17] sm:$0xff] }
 0x11b   : > { %v1999_v42 = vmax.f32 %v1884_v53, %v1967_v51  ;;  %v4770_v55 = vmax.f32 %v3953_v13, %v1996_v46  ;;  %v4773_v59 = vmax.f32 %v3956_v41, %v1997_v27  ;;  %v1885_v20 = vsel %vm1873_vm9, %v1852_v26, %v1868_v33  ;;  %v5413_v41 = vld [vmem:[#allocation40_spill] sm:$0xff]  ;;  %v5418_v53 = vld [vmem:[#allocation5_spill] sm:$0xff] }
 0x11c   : > { %v4778_v24 = vmax.f32 %v4039_v52, %v1998_v2  ;;  %v1901_v13 = vsel %vm1873_vm9, %v1868_v33, %v1852_v26  ;;  %v1886_v57 = vsel %vm1873_vm9, %v1853_v15, %v1869_v17  ;;  %v1902_v40 = vsel %vm1873_vm9, %v1869_v17, %v1853_v15  ;;  %v5417_v26 = vld [vmem:[#allocation4_spill] sm:$0xff]  ;;  %v2076_v2 = vld [vmem:[%s3247_s17 + $0x10] sm:$0xff] }
 0x11d   : > { %v4781_v30 = vmax.f32 %v4041_v39, %v1999_v42  ;;  %2060 = vst.msk [vmem:[%s3247_s17 + $0x90] sm:$0xff] %vm196_vm0, %v4770_v55  ;;  %2061 = vst.msk [vmem:[%s3247_s17 + $0x98] sm:$0xff] %vm196_vm0, %v4773_v59  ;;  %v1932_v52 = vsel %vm161_vm10, %v1901_v13, %v5413_v41  ;;  %v5414_v39 = vld [vmem:[#allocation41_spill] sm:$0xff]  ;;  %v1934_v3 = vsel %vm161_vm10, %v1902_v40, %v5415_v37  ;;  %v1870_v0 = vrot.slane %v4164_v47, 4  ;;  %v2075_v51 = vld [vmem:[%s3247_s17 + $0x8] sm:$0xff] }
 0x11e   : > { %v1969_v44 = vsel %vm160_vm11, %v1901_v13, %v5414_v39  ;;  %2062 = vst.msk [vmem:[%s3247_s17 + $0xa0] sm:$0xff] %vm196_vm0, %v4778_v24  ;;  %v2000_v32 = vmax.f32 %v1932_v52, %v1885_v20  ;;  %v1971_v45 = vsel %vm160_vm11, %v1902_v40, %v5416_v11  ;;  %v2002_v34 = vmax.f32 %v1934_v3, %v1886_v57  ;;  %v5419_v42 = vld [vmem:[#allocation44_spill] sm:$0xff]  ;;  %v2616_v17 = vld [vmem:[%s3247_s17 + $0xf0] sm:$0xff]  ;;  %v5420_v52 = vld [vmem:[#allocation3_spill] sm:$0xff] }
 0x11f   : > { %2063 = vst.msk [vmem:[%s3247_s17 + $0xa8] sm:$0xff] %vm196_vm0, %v4781_v30  ;;  %v2001_v19 = vmax.f32 %v1885_v20, %v1969_v44  ;;  %v2003_v38 = vmax.f32 %v1886_v57, %v1971_v45  ;;  %v2159_v16 = vmax.f32 %v2582_v4, %v5417_v26  ;;  %v2160_v60 = vmax.f32 %v2583_v63, %v5418_v53  ;;  %v2617_v4 = vld [vmem:[%s3247_s17 + $0xf8] sm:$0xff]  ;;  %v5421_v44 = vld [vmem:[#allocation8_spill] sm:$0xff] }
 0x120   : > { %v4821_v7 = vmax.f32 %v4074_v9, %v2000_v32  ;;  %v2098_v46 = vmax.f32 %v2074_v18, %v4640_v21  ;;  %v4829_v27 = vmax.f32 %v5410_v48, %v2002_v34  ;;  %v1887_v9 = vsel %vm1873_vm9, %v1854_v8, %v1870_v0  ;;  %v2515_v37 = vld [vmem:[%s3247_s17 + $0x128] sm:$0xff]  ;;  %v5422_v3 = vld [vmem:[#allocation10_spill] sm:$0xff] }
 0x121   : > { %v4824_v6 = vmax.f32 %v5409_v10, %v2001_v19  ;;  %v4832_v22 = vmax.f32 %v5411_v5, %v2003_v38  ;;  %v1903_v28 = vsel %vm1873_vm9, %v1870_v0, %v1854_v8  ;;  %2590 = vst.msk [vmem:[%s3247_s17 + $0xe0] sm:$0xff] %vm196_vm0, %v2159_v16  ;;  %2591 = vst.msk [vmem:[%s3247_s17 + $0xe8] sm:$0xff] %vm196_vm0, %v2160_v60  ;;  %v2077_v5 = vld [vmem:[%s3247_s17 + $0x18] sm:$0xff]  ;;  %v1374_v39 = vrot.slane %v5420_v52, 6  ;;  %v2514_v19 = vld [vmem:[%s3247_s17 + $0x120] sm:$0xff] }
 0x122   : > { %2064 = vst.msk [vmem:[%s3247_s17 + $0xb0] sm:$0xff] %vm196_vm0, %v4821_v7  ;;  %v1936_v10 = vsel %vm161_vm10, %v1903_v28, %v5419_v42  ;;  %v1973_v33 = vsel %vm160_vm11, %v1903_v28, %v4541_v31  ;;  %2122 = vst.msk [vmem:[%s3247_s17] sm:$0xff] %vm196_vm0, %v2098_v46  ;;  %v2099_v48 = vmax.f32 %v2075_v51, %v4643_v36  ;;  %v1518_v57 = vrot.slane %v5421_v44, 2  ;;  %v5423_v45 = vld [vmem:[#allocation6_spill] sm:$0xff]  ;;  %v2518_v60 = vld [vmem:[%s3247_s17 + $0x140] sm:$0xff] }
 0x123   : > { %2065 = vst.msk [vmem:[%s3247_s17 + $0xb8] sm:$0xff] %vm196_vm0, %v4824_v6  ;;  %v2100_v15 = vmax.f32 %v2076_v2, %v4680_v54  ;;  %2066 = vst.msk [vmem:[%s3247_s17 + $0xc0] sm:$0xff] %vm196_vm0, %v4829_v27  ;;  %v2004_v31 = vmax.f32 %v1936_v10, %v1887_v9  ;;  %v2005_v8 = vmax.f32 %v1887_v9, %v1973_v33  ;;  %v1534_v40 = vrot.slane %v5420_v52, 2  ;;  %v2519_v46 = vld [vmem:[%s3247_s17 + $0x148] sm:$0xff]  ;;  %v2520_v9 = vld [vmem:[%s3247_s17 + $0x150] sm:$0xff] }
 0x124   : > { %2067 = vst.msk [vmem:[%s3247_s17 + $0xc8] sm:$0xff] %vm196_vm0, %v4832_v22  ;;  %v2101_v20 = vmax.f32 %v2077_v5, %v4683_v62  ;;  %v2218_v13 = vmax.f32 %v2616_v17, %v4821_v7  ;;  %2123 = vst.msk [vmem:[%s3247_s17 + $0x8] sm:$0xff] %vm196_vm0, %v2099_v48  ;;  %v2219_v41 = vmax.f32 %v2617_v4, %v4824_v6  ;;  %v1359_v11 = vrot.slane %v5422_v3, 6  ;;  %v5426_v28 = vld [vmem:[#allocation9_spill] sm:$0xff]  ;;  %v5427_v2 = vld [vmem:[#allocation7_spill] sm:$0xff] }
 0x125   : > { %2124 = vst.msk [vmem:[%s3247_s17 + $0x10] sm:$0xff] %vm196_vm0, %v2100_v15  ;;  %v4880_v63 = vmax.f32 %v5412_v50, %v2004_v31  ;;  %v4883_v32 = vmax.f32 %v4164_v47, %v2005_v8  ;;  %v1375_v34 = vrot.slane %v5423_v45, 6  ;;  %v5424_v50 = vrot.slane %v5421_v44, 6  ;;  %v2521_v48 = vld [vmem:[%s3247_s17 + $0x158] sm:$0xff]  ;;  %v2522_v15 = vld [vmem:[%s3247_s17 + $0x160] sm:$0xff]  ;;  %v2523_v5 = vld [vmem:[%s3247_s17 + $0x168] sm:$0xff] }
 0x126   : > { %2125 = vst.msk [vmem:[%s3247_s17 + $0x18] sm:$0xff] %vm196_vm0, %v2101_v20  ;;  %2640 = vst.msk [vmem:[%s3247_s17 + $0xf0] sm:$0xff] %vm196_vm0, %v2218_v13  ;;  %v1550_v38 = vsel %vm1091_vm4, %v1518_v57, %v1534_v40  ;;  %v1566_v18 = vsel %vm1091_vm4, %v1534_v40, %v1518_v57  ;;  %v1519_v33 = vrot.slane %v5422_v3, 2  ;;  %v5428_v8 = vld [vmem:[#allocation11_spill] sm:$0xff]  ;;  %v1535_v13 = vrot.slane %v5423_v45, 2  ;;  %v2516_v4 = vld [vmem:[%s3247_s17 + $0x130] sm:$0xff] }
 0x127   : > { %2641 = vst.msk [vmem:[%s3247_s17 + $0xf8] sm:$0xff] %vm196_vm0, %v2219_v41  ;;  %v1406_v47 = vsel %vm1224_vm5, %v1374_v39, %v5424_v50  ;;  %v5425_v0 = vmov %v5424_v50  ;;  %2068 = vst.msk [vmem:[%s3247_s17 + $0xd0] sm:$0xff] %vm196_vm0, %v4880_v63  ;;  %v1647_v42 = vsel %vm156_vm7, %v1566_v18, %v5427_v2  ;;  %v1407_v10 = vsel %vm1224_vm5, %v1375_v34, %v1359_v11  ;;  %v2524_v41 = vld [vmem:[%s3247_s17 + $0x170] sm:$0xff]  ;;  %v2525_v52 = vld [vmem:[%s3247_s17 + $0x178] sm:$0xff] }
 0x128   : > { %v1390_v16 = vsel %vm1224_vm5, %v5425_v0, %v1374_v39  ;;  %2069 = vst.msk [vmem:[%s3247_s17 + $0xd8] sm:$0xff] %vm196_vm0, %v4883_v32  ;;  %v1486_v51 = vsel %vm157_vm8, %v1406_v47, %v5426_v28  ;;  %v1488_v20 = vsel %vm157_vm8, %v1407_v10, %v5428_v8  ;;  %v2526_v39 = vld [vmem:[%s3247_s17 + $0x180] sm:$0xff]  ;;  %v1391_v44 = vsel %vm1224_vm5, %v1359_v11, %v1375_v34  ;;  %v2517_v57 = vld [vmem:[%s3247_s17 + $0x138] sm:$0xff]  ;;  %v5430_v50 = vld [vmem:[#allocation24_spill] sm:$0xff] }
 0x129   : > { %v4928_v17 = vmax.f32 %v1486_v51, %v1550_v38  ;;  %v4930_v31 = vmax.f32 %v1390_v16, %v1647_v42  ;;  %v5429_v40 = vld [vmem:[#allocation22_spill] sm:$0xff]  ;;  %v1778_v47 = vmax.f32 %v2519_v46, %v5430_v50  ;;  %v5431_v38 = vld [vmem:[#allocation25_spill] sm:$0xff]  ;;  %v2527_v0 = vld [vmem:[%s3247_s17 + $0x188] sm:$0xff]  ;;  %v1551_v34 = vsel %vm1091_vm4, %v1519_v33, %v1535_v13 }
 0x12a   : > { %v1777_v3 = vmax.f32 %v2518_v60, %v5429_v40  ;;  %v1779_v45 = vmax.f32 %v2520_v9, %v5431_v38  ;;  %v2528_v16 = vld [vmem:[%s3247_s17 + $0x190] sm:$0xff]  ;;  %v4949_v18 = vld [vmem:[%s3247_s17 + $0x198] sm:$0xff]  ;;  %v1567_v60 = vsel %vm1091_vm4, %v1535_v13, %v1519_v33  ;;  %v2530_v46 = vld [vmem:[%s3247_s17 + $0x1a0] sm:$0xff]  ;;  %v1780_v33 = vmax.f32 %v2521_v48, %v5433_v56 }
 0x12b   : > { %v1773_v28 = vmax.f32 %v2514_v19, %v4928_v17  ;;  %v1774_v11 = vmax.f32 %v2515_v37, %v4930_v31  ;;  %v2531_v9 = vld [vmem:[%s3247_s17 + $0x1a8] sm:$0xff]  ;;  %v4960_v51 = vld [vmem:[%s3247_s17 + $0x1b0] sm:$0xff]  ;;  %v4963_v19 = vld [vmem:[%s3247_s17 + $0x100] sm:$0xff]  ;;  %v1680_v37 = vmax.f32 %v1488_v20, %v1551_v34  ;;  %2547 = vst.msk [vmem:[%s3247_s17 + $0x148] sm:$0xff] %vm196_vm0, %v1778_v47 }
 0x12c   : > { %v4966_v2 = vld [vmem:[%s3247_s17 + $0x108] sm:$0xff]  ;;  %v5432_v42 = vld [vmem:[#allocation14_spill] sm:$0xff]  ;;  %2546 = vst.msk [vmem:[%s3247_s17 + $0x140] sm:$0xff] %vm196_vm0, %v1777_v3  ;;  %2548 = vst.msk [vmem:[%s3247_s17 + $0x150] sm:$0xff] %vm196_vm0, %v1779_v45 }
 0x12d   : > { %v1649_v10 = vsel %vm156_vm7, %v1567_v60, %v5432_v42  ;;  %v5434_v8 = vld [vmem:[#allocation27_spill] sm:$0xff]  ;;  %v2533_v40 = vld [vmem:[%s3247_s17 + $0x1b8] sm:$0xff]  ;;  %v4981_v20 = vld [vmem:[%s3247_s17 + $0x110] sm:$0xff]  ;;  %2542 = vst.msk [vmem:[%s3247_s17 + $0x120] sm:$0xff] %vm196_vm0, %v1773_v28 }
 0x12e   : > { %v1781_v13 = vmax.f32 %v2522_v15, %v5434_v8  ;;  %v4987_v3 = vld [vmem:[%s3247_s17 + $0x20] sm:$0xff]  ;;  %v4990_v50 = vld [vmem:[%s3247_s17 + $0x28] sm:$0xff]  ;;  %2543 = vst.msk [vmem:[%s3247_s17 + $0x128] sm:$0xff] %vm196_vm0, %v1774_v11  ;;  %v1681_v48 = vmax.f32 %v1391_v44, %v1649_v10  ;;  %v5436_v38 = vld [vmem:[#allocation29_spill] sm:$0xff]  ;;  %v1775_v11 = vmax.f32 %v2516_v4, %v1680_v37 }
 0x12f   : > { %v5435_v47 = vld [vmem:[#allocation28_spill] sm:$0xff]  ;;  %v1783_v45 = vmax.f32 %v2524_v41, %v5436_v38  ;;  %v5437_v34 = vld [vmem:[#allocation30_spill] sm:$0xff]  ;;  %v5000_v42 = vld [vmem:[%s3247_s17 + $0x30] sm:$0xff]  ;;  %2549 = vst.msk [vmem:[%s3247_s17 + $0x158] sm:$0xff] %vm196_vm0, %v1780_v33 }
 0x130   : > { %v1782_v15 = vmax.f32 %v2523_v5, %v5435_v47  ;;  %v1784_v60 = vmax.f32 %v2525_v52, %v5437_v34  ;;  %v5003_v56 = vld [vmem:[%s3247_s17 + $0x38] sm:$0xff]  ;;  %v5006_v28 = vld [vmem:[%s3247_s17 + $0x40] sm:$0xff]  ;;  %v5009_v8 = vld [vmem:[%s3247_s17 + $0x48] sm:$0xff]  ;;  %2550 = vst.msk [vmem:[%s3247_s17 + $0x160] sm:$0xff] %vm196_vm0, %v1781_v13  ;;  %v1776_v33 = vmax.f32 %v2517_v57, %v1681_v48 }
 0x131   : > { %v5438_v5 = vld [vmem:[#allocation31_spill] sm:$0xff]  ;;  %v5439_v52 = vld [vmem:[#allocation32_spill] sm:$0xff]  ;;  %v5440_v10 = vld [vmem:[#allocation33_spill] sm:$0xff]  ;;  %2552 = vst.msk [vmem:[%s3247_s17 + $0x170] sm:$0xff] %vm196_vm0, %v1783_v45  ;;  %v1833_v45 = vmax.f32 %v4963_v19, %v4928_v17  ;;  %v1836_v19 = vmax.f32 %v4984_v43, %v4930_v31  ;;  %v2107_v43 = vmax.f32 %v5009_v8, %v4733_v61 }
 0x132   : > { %v1785_v41 = vmax.f32 %v2526_v39, %v5438_v5  ;;  %v1786_v44 = vmax.f32 %v2527_v0, %v5439_v52  ;;  %v1787_v47 = vmax.f32 %v2528_v16, %v5440_v10  ;;  %v5019_v38 = vld [vmem:[%s3247_s17 + $0x50] sm:$0xff]  ;;  %v5022_v4 = vld [vmem:[%s3247_s17 + $0x58] sm:$0xff]  ;;  %v5025_v37 = vld [vmem:[%s3247_s17 + $0x60] sm:$0xff]  ;;  %2551 = vst.msk [vmem:[%s3247_s17 + $0x168] sm:$0xff] %vm196_vm0, %v1782_v15 }
 0x133   : > { %2553 = vst.msk [vmem:[%s3247_s17 + $0x178] sm:$0xff] %vm196_vm0, %v1784_v60  ;;  %v5441_v39 = vld [vmem:[#allocation34_spill] sm:$0xff]  ;;  %v5442_v16 = vld [vmem:[#allocation35_spill] sm:$0xff]  ;;  %v5443_v34 = vld [vmem:[#allocation36_spill] sm:$0xff]  ;;  %v1834_v60 = vmax.f32 %v4966_v2, %v4930_v31  ;;  %v2102_v2 = vmax.f32 %v4987_v3, %v4686_v1  ;;  %v2105_v31 = vmax.f32 %v5003_v56, %v4725_v25  ;;  %v2109_v56 = vmax.f32 %v5022_v4, %v4773_v59 }
 0x134   : > { %v1788_v0 = vmax.f32 %v4949_v18, %v5441_v39  ;;  %v1789_v13 = vmax.f32 %v2530_v46, %v5442_v16  ;;  %v1790_v5 = vmax.f32 %v2531_v9, %v5443_v34  ;;  %v2087_v52 = vld [vmem:[%s3247_s17 + $0x68] sm:$0xff]  ;;  %v5039_v57 = vld [vmem:[%s3247_s17 + $0x70] sm:$0xff]  ;;  %v5042_v48 = vld [vmem:[%s3247_s17 + $0x78] sm:$0xff]  ;;  %2544 = vst.msk [vmem:[%s3247_s17 + $0x130] sm:$0xff] %vm196_vm0, %v1775_v11 }
 0x135   : > { %2554 = vst.msk [vmem:[%s3247_s17 + $0x180] sm:$0xff] %vm196_vm0, %v1785_v41  ;;  %2555 = vst.msk [vmem:[%s3247_s17 + $0x188] sm:$0xff] %vm196_vm0, %v1786_v44  ;;  %v5444_v18 = vld [vmem:[#allocation37_spill] sm:$0xff]  ;;  %v5445_v9 = vld [vmem:[#allocation38_spill] sm:$0xff]  ;;  %v2111_v8 = vmax.f32 %v2087_v52, %v4781_v30  ;;  %v2113_v4 = vmax.f32 %v5042_v48, %v4824_v6 }
 0x136   : > { %2556 = vst.msk [vmem:[%s3247_s17 + $0x190] sm:$0xff] %vm196_vm0, %v1787_v47  ;;  %v1791_v46 = vmax.f32 %v4960_v51, %v5444_v18  ;;  %v1792_v15 = vmax.f32 %v2533_v40, %v5445_v9  ;;  %v2090_v11 = vld [vmem:[%s3247_s17 + $0x80] sm:$0xff]  ;;  %v2091_v41 = vld [vmem:[%s3247_s17 + $0x88] sm:$0xff]  ;;  %v5062_v44 = vld [vmem:[%s3247_s17 + $0x90] sm:$0xff]  ;;  %v1835_v51 = vmax.f32 %v4981_v20, %v4928_v17  ;;  %v2103_v40 = vmax.f32 %v4990_v50, %v4689_v29 }
 0x137   : > { %2545 = vst.msk [vmem:[%s3247_s17 + $0x138] sm:$0xff] %vm196_vm0, %v1776_v33  ;;  %2557 = vst.msk [vmem:[%s3247_s17 + $0x198] sm:$0xff] %vm196_vm0, %v1788_v0  ;;  %v2093_v10 = vld [vmem:[%s3247_s17 + $0x98] sm:$0xff]  ;;  %v2094_v47 = vld [vmem:[%s3247_s17 + $0xa0] sm:$0xff]  ;;  %v2104_v17 = vmax.f32 %v5000_v42, %v4722_v49  ;;  %v2106_v20 = vmax.f32 %v5006_v28, %v4730_v23  ;;  %v2108_v42 = vmax.f32 %v5019_v38, %v4770_v55 }
 0x138   : > { %2558 = vst.msk [vmem:[%s3247_s17 + $0x1a0] sm:$0xff] %vm196_vm0, %v1789_v13  ;;  %2559 = vst.msk [vmem:[%s3247_s17 + $0x1a8] sm:$0xff] %vm196_vm0, %v1790_v5  ;;  %v2095_v33 = vld [vmem:[%s3247_s17 + $0xa8] sm:$0xff]  ;;  %v2096_v3 = vld [vmem:[%s3247_s17 + $0xb0] sm:$0xff]  ;;  %v2110_v28 = vmax.f32 %v5025_v37, %v4778_v24  ;;  %v2112_v38 = vmax.f32 %v5039_v57, %v4821_v7  ;;  %v2114_v37 = vmax.f32 %v2090_v11, %v4829_v27 }
 0x139   : > { %2560 = vst.msk [vmem:[%s3247_s17 + $0x1b0] sm:$0xff] %vm196_vm0, %v1791_v46  ;;  %2561 = vst.msk [vmem:[%s3247_s17 + $0x1b8] sm:$0xff] %vm196_vm0, %v1792_v15  ;;  %v2097_v50 = vld [vmem:[%s3247_s17 + $0xb8] sm:$0xff]  ;;  %v2614_v39 = vld [vmem:[%s3247_s17 + $0xe0] sm:$0xff]  ;;  %v2115_v34 = vmax.f32 %v2091_v41, %v4832_v22  ;;  %v2116_v7 = vmax.f32 %v5062_v44, %v4880_v63  ;;  %v2117_v6 = vmax.f32 %v2093_v10, %v4883_v32 }
 0x13a   : > { %2574 = vst.msk [vmem:[%s3247_s17 + $0x100] sm:$0xff] %vm196_vm0, %v1833_v45  ;;  %2575 = vst.msk [vmem:[%s3247_s17 + $0x108] sm:$0xff] %vm196_vm0, %v1834_v60  ;;  %v2578_v0 = vld [vmem:[%s3247_s17 + $0xc0] sm:$0xff]  ;;  %v2579_v16 = vld [vmem:[%s3247_s17 + $0xc8] sm:$0xff]  ;;  %v2120_v63 = vmax.f32 %v2096_v3, %v5417_v26  ;;  %v2121_v32 = vmax.f32 %v2097_v50, %v5418_v53  ;;  %v2216_v44 = vmax.f32 %v2614_v39, %v4778_v24 }
 0x13b   : > { %2576 = vst.msk [vmem:[%s3247_s17 + $0x110] sm:$0xff] %vm196_vm0, %v1835_v51  ;;  %2577 = vst.msk [vmem:[%s3247_s17 + $0x118] sm:$0xff] %vm196_vm0, %v1836_v19  ;;  %v2615_v13 = vld [vmem:[%s3247_s17 + $0xe8] sm:$0xff]  ;;  %v2580_v5 = vld [vmem:[%s3247_s17 + $0xd0] sm:$0xff]  ;;  %v2155_v45 = vmax.f32 %v2578_v0, %v5417_v26  ;;  %v2156_v60 = vmax.f32 %v2579_v16, %v5418_v53 }
 0x13c   : > { %2126 = vst.msk [vmem:[%s3247_s17 + $0x20] sm:$0xff] %vm196_vm0, %v2102_v2  ;;  %2127 = vst.msk [vmem:[%s3247_s17 + $0x28] sm:$0xff] %vm196_vm0, %v2103_v40  ;;  %v2581_v52 = vld [vmem:[%s3247_s17 + $0xd8] sm:$0xff]  ;;  %v2244_v18 = vld [vmem:[%s3247_s17] sm:$0xff]  ;;  %v2157_v11 = vmax.f32 %v2580_v5, %v5417_v26  ;;  %v2217_v51 = vmax.f32 %v2615_v13, %v4781_v30 }
 0x13d   : > { %2128 = vst.msk [vmem:[%s3247_s17 + $0x30] sm:$0xff] %vm196_vm0, %v2104_v17  ;;  %2129 = vst.msk [vmem:[%s3247_s17 + $0x38] sm:$0xff] %vm196_vm0, %v2105_v31  ;;  %v5446_v27 = vld [vmem:[#allocation17_spill] sm:$0xff]  ;;  %v5447_v57 = vld [vmem:[#allocation18_spill] sm:$0xff]  ;;  %v2158_v41 = vmax.f32 %v2581_v52, %v5418_v53 }
 0x13e   : > { %2130 = vst.msk [vmem:[%s3247_s17 + $0x40] sm:$0xff] %vm196_vm0, %v2106_v20  ;;  %2131 = vst.msk [vmem:[%s3247_s17 + $0x48] sm:$0xff] %vm196_vm0, %v2107_v43  ;;  %v2118_v22 = vmax.f32 %v2094_v47, %v5446_v27  ;;  %v2119_v48 = vmax.f32 %v2095_v33, %v5447_v57  ;;  %v2245_v46 = vld [vmem:[%s3247_s17 + $0x8] sm:$0xff]  ;;  %v2246_v9 = vld [vmem:[%s3247_s17 + $0x10] sm:$0xff] }
 0x13f   : > { %2132 = vst.msk [vmem:[%s3247_s17 + $0x50] sm:$0xff] %vm196_vm0, %v2108_v42  ;;  %2133 = vst.msk [vmem:[%s3247_s17 + $0x58] sm:$0xff] %vm196_vm0, %v2109_v56  ;;  %v2247_v15 = vld [vmem:[%s3247_s17 + $0x18] sm:$0xff]  ;;  %v5448_v26 = vld [vmem:[#allocation13_spill] sm:$0xff] }
 0x140   : > { %2134 = vst.msk [vmem:[%s3247_s17 + $0x60] sm:$0xff] %vm196_vm0, %v2110_v28  ;;  %2135 = vst.msk [vmem:[%s3247_s17 + $0x68] sm:$0xff] %vm196_vm0, %v2111_v8  ;;  %v2252_v53 = vmax.f32 %v2244_v18, %v5448_v26  ;;  %v5449_v19 = vld [vmem:[#allocation12_spill] sm:$0xff]  ;;  %v2254_v2 = vmax.f32 %v2246_v9, %v5448_v26  ;;  %v5450_v28 = vld [vmem:[#allocation15_spill] sm:$0xff] }
 0x141   : > { %2136 = vst.msk [vmem:[%s3247_s17 + $0x70] sm:$0xff] %vm196_vm0, %v2112_v38  ;;  %2137 = vst.msk [vmem:[%s3247_s17 + $0x78] sm:$0xff] %vm196_vm0, %v2113_v4  ;;  %v2253_v24 = vmax.f32 %v2245_v46, %v5449_v19  ;;  %v2255_v30 = vmax.f32 %v2247_v15, %v5449_v19  ;;  %v5451_v0 = vld [vmem:[#allocation16_spill] sm:$0xff] }
 0x142   : > { %2138 = vst.msk [vmem:[%s3247_s17 + $0x80] sm:$0xff] %vm196_vm0, %v2114_v37  ;;  %2139 = vst.msk [vmem:[%s3247_s17 + $0x88] sm:$0xff] %vm196_vm0, %v2115_v34 }
 0x143   : > { %2140 = vst.msk [vmem:[%s3247_s17 + $0x90] sm:$0xff] %vm196_vm0, %v2116_v7  ;;  %2141 = vst.msk [vmem:[%s3247_s17 + $0x98] sm:$0xff] %vm196_vm0, %v2117_v6  ;;  %v2248_v40 = vld [vmem:[%s3247_s17 + $0x20] sm:$0xff]  ;;  %v2249_v10 = vld [vmem:[%s3247_s17 + $0x28] sm:$0xff] }
 0x144   : > { %2142 = vst.msk [vmem:[%s3247_s17 + $0xa0] sm:$0xff] %vm196_vm0, %v2118_v22  ;;  %2143 = vst.msk [vmem:[%s3247_s17 + $0xa8] sm:$0xff] %vm196_vm0, %v2119_v48  ;;  %v2256_v17 = vmax.f32 %v2248_v40, %v5448_v26  ;;  %v2257_v31 = vmax.f32 %v2249_v10, %v5449_v19  ;;  %v2250_v20 = vld [vmem:[%s3247_s17 + $0x30] sm:$0xff] }
 0x145   : > { %2144 = vst.msk [vmem:[%s3247_s17 + $0xb0] sm:$0xff] %vm196_vm0, %v2120_v63  ;;  %2145 = vst.msk [vmem:[%s3247_s17 + $0xb8] sm:$0xff] %vm196_vm0, %v2121_v32  ;;  %v2594_v47 = vld [vmem:[%s3247_s17 + $0x40] sm:$0xff]  ;;  %v2595_v33 = vld [vmem:[%s3247_s17 + $0x48] sm:$0xff]  ;;  %v2258_v56 = vmax.f32 %v2250_v20, %v5448_v26 }
 0x146   : > { %2586 = vst.msk [vmem:[%s3247_s17 + $0xc0] sm:$0xff] %vm196_vm0, %v2155_v45  ;;  %2587 = vst.msk [vmem:[%s3247_s17 + $0xc8] sm:$0xff] %vm196_vm0, %v2156_v60  ;;  %v2196_v43 = vmax.f32 %v2594_v47, %v5448_v26  ;;  %v2197_v3 = vmax.f32 %v2595_v33, %v5449_v19  ;;  %v2596_v50 = vld [vmem:[%s3247_s17 + $0x50] sm:$0xff]  ;;  %v2597_v39 = vld [vmem:[%s3247_s17 + $0x58] sm:$0xff] }
 0x147   : > { %2588 = vst.msk [vmem:[%s3247_s17 + $0xd0] sm:$0xff] %vm196_vm0, %v2157_v11  ;;  %2589 = vst.msk [vmem:[%s3247_s17 + $0xd8] sm:$0xff] %vm196_vm0, %v2158_v41  ;;  %v2598_v42 = vld [vmem:[%s3247_s17 + $0x60] sm:$0xff]  ;;  %v2198_v8 = vmax.f32 %v2596_v50, %v5450_v28  ;;  %v2199_v16 = vmax.f32 %v2597_v39, %v5451_v0  ;;  %v2599_v38 = vld [vmem:[%s3247_s17 + $0x68] sm:$0xff] }
 0x148   : > { %2638 = vst.msk [vmem:[%s3247_s17 + $0xe0] sm:$0xff] %vm196_vm0, %v2216_v44  ;;  %2639 = vst.msk [vmem:[%s3247_s17 + $0xe8] sm:$0xff] %vm196_vm0, %v2217_v51  ;;  %v2200_v13 = vmax.f32 %v2598_v42, %v4606_v14  ;;  %v2600_v4 = vld [vmem:[%s3247_s17 + $0x70] sm:$0xff]  ;;  %v2601_v37 = vld [vmem:[%s3247_s17 + $0x78] sm:$0xff]  ;;  %v2201_v34 = vmax.f32 %v2599_v38, %v4609_v12 }
 0x149   : > { %2260 = vst.msk [vmem:[%s3247_s17] sm:$0xff] %vm196_vm0, %v2252_v53  ;;  %2261 = vst.msk [vmem:[%s3247_s17 + $0x8] sm:$0xff] %vm196_vm0, %v2253_v24  ;;  %v2202_v14 = vmax.f32 %v2600_v4, %v4618_v35  ;;  %v2203_v5 = vmax.f32 %v2601_v37, %v4621_v58  ;;  %v2602_v52 = vld [vmem:[%s3247_s17 + $0x80] sm:$0xff]  ;;  %v2603_v18 = vld [vmem:[%s3247_s17 + $0x88] sm:$0xff] }
 0x14a   : > { %2262 = vst.msk [vmem:[%s3247_s17 + $0x10] sm:$0xff] %vm196_vm0, %v2254_v2  ;;  %2263 = vst.msk [vmem:[%s3247_s17 + $0x18] sm:$0xff] %vm196_vm0, %v2255_v30  ;;  %v2604_v7 = vld [vmem:[%s3247_s17 + $0x90] sm:$0xff]  ;;  %v2204_v12 = vmax.f32 %v2602_v52, %v4640_v21  ;;  %v2205_v35 = vmax.f32 %v2603_v18, %v4643_v36  ;;  %v2605_v6 = vld [vmem:[%s3247_s17 + $0x98] sm:$0xff] }
 0x14b   : > { %2264 = vst.msk [vmem:[%s3247_s17 + $0x20] sm:$0xff] %vm196_vm0, %v2256_v17  ;;  %2265 = vst.msk [vmem:[%s3247_s17 + $0x28] sm:$0xff] %vm196_vm0, %v2257_v31  ;;  %v2206_v58 = vmax.f32 %v2604_v7, %v4680_v54  ;;  %v2606_v27 = vld [vmem:[%s3247_s17 + $0xa0] sm:$0xff]  ;;  %v2607_v22 = vld [vmem:[%s3247_s17 + $0xa8] sm:$0xff]  ;;  %v2207_v21 = vmax.f32 %v2605_v6, %v4683_v62 }
 0x14c   : > { %2618 = vst.msk [vmem:[%s3247_s17 + $0x40] sm:$0xff] %vm196_vm0, %v2196_v43  ;;  %2619 = vst.msk [vmem:[%s3247_s17 + $0x48] sm:$0xff] %vm196_vm0, %v2197_v3  ;;  %v2208_v36 = vmax.f32 %v2606_v27, %v4686_v1  ;;  %v2209_v54 = vmax.f32 %v2607_v22, %v4689_v29  ;;  %v2608_v57 = vld [vmem:[%s3247_s17 + $0xb0] sm:$0xff]  ;;  %v2609_v48 = vld [vmem:[%s3247_s17 + $0xb8] sm:$0xff] }
 0x14d   : > { %2266 = vst.msk [vmem:[%s3247_s17 + $0x30] sm:$0xff] %vm196_vm0, %v2258_v56  ;;  %2620 = vst.msk [vmem:[%s3247_s17 + $0x50] sm:$0xff] %vm196_vm0, %v2198_v8  ;;  %v2610_v46 = vld [vmem:[%s3247_s17 + $0xc0] sm:$0xff]  ;;  %v2210_v62 = vmax.f32 %v2608_v57, %v4722_v49  ;;  %v2211_v1 = vmax.f32 %v2609_v48, %v4725_v25  ;;  %v2611_v9 = vld [vmem:[%s3247_s17 + $0xc8] sm:$0xff] }
 0x14e   : > { %2621 = vst.msk [vmem:[%s3247_s17 + $0x58] sm:$0xff] %vm196_vm0, %v2199_v16  ;;  %2622 = vst.msk [vmem:[%s3247_s17 + $0x60] sm:$0xff] %vm196_vm0, %v2200_v13  ;;  %v2212_v29 = vmax.f32 %v2610_v46, %v4730_v23  ;;  %v2612_v15 = vld [vmem:[%s3247_s17 + $0xd0] sm:$0xff]  ;;  %v2613_v63 = vld [vmem:[%s3247_s17 + $0xd8] sm:$0xff]  ;;  %v2213_v32 = vmax.f32 %v2611_v9, %v4733_v61 }
 0x14f   : > { %2623 = vst.msk [vmem:[%s3247_s17 + $0x68] sm:$0xff] %vm196_vm0, %v2201_v34  ;;  %2624 = vst.msk [vmem:[%s3247_s17 + $0x70] sm:$0xff] %vm196_vm0, %v2202_v14  ;;  %v2214_v49 = vmax.f32 %v2612_v15, %v4770_v55  ;;  %v2215_v25 = vmax.f32 %v2613_v63, %v4773_v59  ;;  %v2251_v45 = vld [vmem:[%s3247_s17 + $0x38] sm:$0xff] }
 0x150   : > { %2625 = vst.msk [vmem:[%s3247_s17 + $0x78] sm:$0xff] %vm196_vm0, %v2203_v5  ;;  %2626 = vst.msk [vmem:[%s3247_s17 + $0x80] sm:$0xff] %vm196_vm0, %v2204_v12  ;;  %v2259_v23 = vmax.f32 %v2251_v45, %v5449_v19 }
 0x151   : > { %2627 = vst.msk [vmem:[%s3247_s17 + $0x88] sm:$0xff] %vm196_vm0, %v2205_v35  ;;  %2628 = vst.msk [vmem:[%s3247_s17 + $0x90] sm:$0xff] %vm196_vm0, %v2206_v58 }
 0x152   : > { %2629 = vst.msk [vmem:[%s3247_s17 + $0x98] sm:$0xff] %vm196_vm0, %v2207_v21  ;;  %2630 = vst.msk [vmem:[%s3247_s17 + $0xa0] sm:$0xff] %vm196_vm0, %v2208_v36 }
 0x153   : > { %2631 = vst.msk [vmem:[%s3247_s17 + $0xa8] sm:$0xff] %vm196_vm0, %v2209_v54  ;;  %2632 = vst.msk [vmem:[%s3247_s17 + $0xb0] sm:$0xff] %vm196_vm0, %v2210_v62 }
 0x154   : > { %2633 = vst.msk [vmem:[%s3247_s17 + $0xb8] sm:$0xff] %vm196_vm0, %v2211_v1  ;;  %2634 = vst.msk [vmem:[%s3247_s17 + $0xc0] sm:$0xff] %vm196_vm0, %v2212_v29 }
 0x155   : > { %2635 = vst.msk [vmem:[%s3247_s17 + $0xc8] sm:$0xff] %vm196_vm0, %v2213_v32  ;;  %2636 = vst.msk [vmem:[%s3247_s17 + $0xd0] sm:$0xff] %vm196_vm0, %v2214_v49 }
 0x156   : > { %2637 = vst.msk [vmem:[%s3247_s17 + $0xd8] sm:$0xff] %vm196_vm0, %v2215_v25  ;;  %2267 = vst.msk [vmem:[%s3247_s17 + $0x38] sm:$0xff] %vm196_vm0, %v2259_v23 }
 0x157 PF: > { %s11_s8 = sadd.s32 1, %s2692_s8   ;;  %s5452_s6 = smov %s2688_s7 }
 0x158   : > { %p8_p5 = scmp.ge.s32.totalorder %s11_s8, 4   ;;  %s5453_s7 = smov %s5455_s9 }
 0x15a   :  { %10 = sbr.rel (!%p8_p5) target bundleno = 2 (0x2), region = 65 }

</bundles_post_ra>
